<compile_context>
chip_gen: v5e
topology: v5e:2x2
jax: 0.10.0
libtpu: 0.0.40
codegen_flags: <defaults>
</compile_context>

<pallas_src>
import numpy as np

import jax
import jax.numpy as jnp
from jax.experimental import pallas as pl
from jax.experimental.pallas import tpu as pltpu


# ---------------------------------------------------------------------------
# Fused forward kernel
# ---------------------------------------------------------------------------
def _lenet_fused_kernel(x_ref, w1_ref, b1_ref, w2_ref, b2_ref,
                        v1_ref, fb1_ref, w3_ref, fb2_ref, mask_ref, o_ref):
    f32, bf16 = jnp.float32, jnp.bfloat16

    # out[r, :] = t[(r + k) % R, :] — pure data movement (sublane shifts),
    # never the MXU.  Wrapped/garbage rows either hit zero weights or are
    # masked before the softmax.
    def shift_rows(t, k):
        if k == 0:
            return t
        return jnp.concatenate([t[k:, :], t[:k, :]], axis=0)

    # out[:, l] = t[:, (l + k) % L]
    def shift_lanes(t, k):
        return jnp.concatenate([t[:, k:], t[:, :k]], axis=1)

    def mxu(a, b):
        return jnp.dot(a, b, preferred_element_type=f32)

    # ---- conv1 (1->10, 5x5): one deep-K matmul (R,140)x(140,240)
    x = x_ref[...]                                            # (B*28, 28) f32
    xcat = jnp.concatenate([shift_rows(x, ki) for ki in range(5)],
                           axis=1).astype(bf16)               # (R, 140) bf16
    z1 = mxu(xcat, w1_ref[...]) + b1_ref[...]                 # (R, 240) f32, lanes=(ow,oc)

    # ---- maxpool 2x2 + relu, in f32 on the accumulator; neighbour max via
    #      row/lane shifts, NO compaction (w2's zero pattern skips stale data).
    m1 = jnp.maximum(z1, shift_rows(z1, 1))                   # h pairs
    m1 = jnp.maximum(m1, shift_lanes(m1, 10))                 # w pairs (lane stride 10)
    p1 = jnp.maximum(m1, 0.0).astype(bf16)                    # single cast before MXU

    # ---- conv2 (10->20, 5x5) on the uncompacted pool1 slab:
    #      one deep-K matmul (R,1200)x(1200,160)
    # TODO(synk): nn.Dropout2d is identity here (eval semantics).
    xcat2 = jnp.concatenate([shift_rows(p1, 2 * ki) for ki in range(5)], axis=1)
    z2 = mxu(xcat2, w2_ref[...]) + b2_ref[...]                # (R, 160) f32, lanes=(ow2,oc)

    # ---- maxpool 2x2 + relu
    m2 = jnp.maximum(z2, shift_rows(z2, 2))
    m2 = jnp.maximum(m2, shift_lanes(m2, 20))
    p2 = jnp.maximum(m2, 0.0).astype(bf16)

    # ---- fc1 (320->50) as ONE matmul (R,640)x(640,50); the PyTorch NCHW
    #      .view(-1, 320) order and the uncompacted lane pattern are folded
    #      into v1 at prepare time.
    feat = jnp.concatenate([shift_rows(p2, 4 * h) for h in range(4)], axis=1)
    h1 = jnp.maximum(mxu(feat, v1_ref[...]) + fb1_ref[...], 0.0)     # (R, 50) f32
    # TODO(synk): F.dropout is identity here (eval semantics).

    # ---- fc2 (50->10)
    logits = mxu(h1.astype(bf16), w3_ref[...]) + fb2_ref[...]        # (R, 10) f32

    # ---- log_softmax over dim 0 (batch), exactly as in the reference model.
    #      mask adds -1e30 to the 27 padding rows of each example so that only
    #      row b*28 (example b's real logits) takes part in the reduction.
    ml = logits + mask_ref[...]
    mx = jnp.max(ml, axis=0, keepdims=True)
    lse = mx + jnp.log(jnp.sum(jnp.exp(ml - mx), axis=0, keepdims=True))
    o_ref[...] = (ml - lse).astype(o_ref.dtype)


# ---------------------------------------------------------------------------
# One-time parameter preparation (all weight layout transforms hoisted out of
# the hot path; all matrices are batch-size independent)
# ---------------------------------------------------------------------------
def prepare_params(params):
    f32, bf16 = np.float32, jnp.bfloat16
    c1w = np.asarray(params["conv1_w"], f32)   # (10, 1, 5, 5)
    c1b = np.asarray(params["conv1_b"], f32)
    c2w = np.asarray(params["conv2_w"], f32)   # (20, 10, 5, 5)
    c2b = np.asarray(params["conv2_b"], f32)
    f1w = np.asarray(params["fc1_w"], f32)     # (50, 320)
    f1b = np.asarray(params["fc1_b"], f32)
    f2w = np.asarray(params["fc2_w"], f32)     # (10, 50)
    f2b = np.asarray(params["fc2_b"], f32)

    # conv1 deep-K block-Toeplitz: w1[ki*28 + ow + kj, ow*10 + oc] = c1w[oc,0,ki,kj]
    w1 = np.zeros((5 * 28, 24 * 10), f32)
    ki, kj, ow, oc = np.meshgrid(np.arange(5), np.arange(5), np.arange(24),
                                 np.arange(10), indexing="ij")
    w1[ki * 28 + ow + kj, ow * 10 + oc] = c1w[oc, 0, ki, kj]

    # conv2 deep-K block-Toeplitz over the UNCOMPACTED pool1 lanes (240 wide):
    #   w2[ki*240 + 20*(ow2+kj) + ic, ow2*20 + oc] = c2w[oc, ic, ki, kj]
    # (lanes 20*w + 10..19 are stale pool data and stay zero here)
    w2 = np.zeros((5 * 240, 8 * 20), f32)
    ki, kj, ic, ow, oc = np.meshgrid(np.arange(5), np.arange(5), np.arange(10),
                                     np.arange(8), np.arange(20), indexing="ij")
    w2[ki * 240 + 20 * (ow + kj) + ic, ow * 20 + oc] = c2w[oc, ic, ki, kj]

    # fc1 with the PyTorch NCHW flatten folded in; features are 4 uncompacted
    # pool2 rows (160 lanes each) concatenated along K:
    #   v1[h*160 + 40*w + c, n] = f1w[n, c*16 + h*4 + w]
    v1 = np.zeros((4 * 160, 50), f32)
    h, w, c, n = np.meshgrid(np.arange(4), np.arange(4), np.arange(20),
                             np.arange(50), indexing="ij")
    v1[h * 160 + 40 * w + c, n] = f1w[n, c * 16 + h * 4 + w]

    return {
        "w1": jnp.asarray(w1, bf16), "b1": jnp.asarray(np.tile(c1b, 24)[None, :]),
        "w2": jnp.asarray(w2, bf16), "b2": jnp.asarray(np.tile(c2b, 8)[None, :]),
        "v1": jnp.asarray(v1, bf16), "fb1": jnp.asarray(f1b[None, :]),
        "w3": jnp.asarray(f2w.T, bf16), "fb2": jnp.asarray(f2b[None, :]),
    }


# ---------------------------------------------------------------------------
# Model
# ---------------------------------------------------------------------------
def init_params(key):
    ks = jax.random.split(key, 8)

    def u(k, shape, fan_in):
        bound = 1.0 / jnp.sqrt(jnp.float32(fan_in))
        return jax.random.uniform(k, shape, jnp.float32, -bound, bound)

    return {
        "conv1_w": u(ks[0], (10, 1, 5, 5), 1 * 5 * 5),
        "conv1_b": u(ks[1], (10,), 1 * 5 * 5),
        "conv2_w": u(ks[2], (20, 10, 5, 5), 10 * 5 * 5),
        "conv2_b": u(ks[3], (20,), 10 * 5 * 5),
        "fc1_w": u(ks[4], (50, 320), 320),
        "fc1_b": u(ks[5], (50,), 320),
        "fc2_w": u(ks[6], (10, 50), 50),
        "fc2_b": u(ks[7], (10,), 50),
    }


def forward(prepared, x_nchw):
    # x: (B, 1, 28, 28) NCHW (PyTorch convention), f32.
    B = x_nchw.shape[0]
    assert x_nchw.shape[1:] == (1, 28, 28)
    R = B * 28
    x2d = x_nchw.reshape(R, 28)          # rows=(b,h); bf16 cast happens in-kernel

    # Additive row mask for the dim-0 log_softmax: 0 on each example's row 0
    # (the row carrying its logits), -1e30 on the 27 padding rows.  O(B) tiny.
    mask = np.full((R, 1), -1e30, np.float32)
    mask[::28, :] = 0.0
    mask = jnp.asarray(mask)

    args = (x2d, prepared["w1"], prepared["b1"], prepared["w2"], prepared["b2"],
            prepared["v1"], prepared["fb1"], prepared["w3"], prepared["fb2"],
            mask)

    # No grid -> nothing to pipeline -> no double-buffering of the constant
    # operands; everything sits once in VMEM (< 1 MiB at this size).
    vmem = pl.BlockSpec(memory_space=pltpu.MemorySpace.VMEM)
    out = pl.pallas_call(
        _lenet_fused_kernel,
        out_shape=jax.ShapeDtypeStruct((R, 10), jnp.float32),
        in_specs=[vmem] * len(args),
        out_specs=vmem,
    )(*args)

    # Row b*28 of the padded result holds example b's log-probs.
    return out[::28, :]


# ---------------------------------------------------------------------------
# Pure-JAX reference (f32) for a correctness sanity check
# ---------------------------------------------------------------------------
def reference_forward(params, x):
    dn = ("NCHW", "OIHW", "NCHW")
    out = jax.lax.conv_general_dilated(x, params["conv1_w"], (1, 1), "VALID",
                                       dimension_numbers=dn)
    out = out + params["conv1_b"][None, :, None, None]
    out = jax.lax.reduce_window(out, -jnp.inf, jax.lax.max,
                                (1, 1, 2, 2), (1, 1, 2, 2), "VALID")
    out = jax.nn.relu(out)
    out = jax.lax.conv_general_dilated(out, params["conv2_w"], (1, 1), "VALID",
                                       dimension_numbers=dn)
    out = out + params["conv2_b"][None, :, None, None]
    out = jax.lax.reduce_window(out, -jnp.inf, jax.lax.max,
                                (1, 1, 2, 2), (1, 1, 2, 2), "VALID")
    out = jax.nn.relu(out)
    out = out.reshape(out.shape[0], -1)                  # NCHW flatten -> (B, 320)
    out = jax.nn.relu(out @ params["fc1_w"].T + params["fc1_b"])
    out = out @ params["fc2_w"].T + params["fc2_b"]
    return jax.nn.log_softmax(out, axis=0)


if __name__ == "__main__":
    key = jax.random.PRNGKey(0)
    pkey, xkey = jax.random.split(key)
    params = init_params(pkey)
    prepared = prepare_params(params)

    # fc1 expects 320 = 20*4*4 features -> input must be (B, 1, 28, 28)
    x = jax.random.normal(xkey, (2, 1, 28, 28), jnp.float32)

    out = jax.block_until_ready(jax.jit(forward)(prepared, x))
    assert out.shape == (2, 10) and out.dtype == jnp.float32
    assert bool(jnp.all(jnp.isfinite(out)))

    ref = jax.block_until_ready(reference_forward(params, x))
    # bf16 MXU operands -> loose tolerance vs. the f32 reference.
    np.testing.assert_allclose(np.asarray(out), np.asarray(ref),
                               atol=0.05, rtol=0.0)
    print("KERNEL_OK")
</pallas_src>

<mosaic_0001>
module attributes {stable_mosaic.version = 11 : i64} {
  func.func @_lenet_fused_kernel(%arg0: memref<56x28xf32, #tpu.memory_space<vmem>>, %arg1: memref<140x240xbf16, #tpu.memory_space<vmem>>, %arg2: memref<1x240xf32, #tpu.memory_space<vmem>>, %arg3: memref<1200x160xbf16, #tpu.memory_space<vmem>>, %arg4: memref<1x160xf32, #tpu.memory_space<vmem>>, %arg5: memref<640x50xbf16, #tpu.memory_space<vmem>>, %arg6: memref<1x50xf32, #tpu.memory_space<vmem>>, %arg7: memref<50x10xbf16, #tpu.memory_space<vmem>>, %arg8: memref<1x10xf32, #tpu.memory_space<vmem>>, %arg9: memref<56x1xf32, #tpu.memory_space<vmem>>, %arg10: memref<56x10xf32, #tpu.memory_space<vmem>>) attributes {dimension_semantics = [], scalar_prefetch = 0 : i64, scratch_operands = 0 : i64, tpu.core_type = #tpu.core_type<tc>} {
    %c0 = arith.constant 0 : index
    %c0_0 = arith.constant 0 : index
    %0 = vector.load %arg0[%c0, %c0_0] : memref<56x28xf32, #tpu.memory_space<vmem>>, vector<56x28xf32>
    %1 = vector.extract_strided_slice %0 {offsets = [1, 0], sizes = [55, 28], strides = [1, 1]} : vector<56x28xf32> to vector<55x28xf32>
    %2 = vector.extract_strided_slice %0 {offsets = [0, 0], sizes = [1, 28], strides = [1, 1]} : vector<56x28xf32> to vector<1x28xf32>
    %3 = tpu.concatenate %1, %2 in 0 : vector<55x28xf32>, vector<1x28xf32> -> vector<56x28xf32>
    %4 = vector.extract_strided_slice %0 {offsets = [2, 0], sizes = [54, 28], strides = [1, 1]} : vector<56x28xf32> to vector<54x28xf32>
    %5 = vector.extract_strided_slice %0 {offsets = [0, 0], sizes = [2, 28], strides = [1, 1]} : vector<56x28xf32> to vector<2x28xf32>
    %6 = tpu.concatenate %4, %5 in 0 : vector<54x28xf32>, vector<2x28xf32> -> vector<56x28xf32>
    %7 = vector.extract_strided_slice %0 {offsets = [3, 0], sizes = [53, 28], strides = [1, 1]} : vector<56x28xf32> to vector<53x28xf32>
    %8 = vector.extract_strided_slice %0 {offsets = [0, 0], sizes = [3, 28], strides = [1, 1]} : vector<56x28xf32> to vector<3x28xf32>
    %9 = tpu.concatenate %7, %8 in 0 : vector<53x28xf32>, vector<3x28xf32> -> vector<56x28xf32>
    %10 = vector.extract_strided_slice %0 {offsets = [4, 0], sizes = [52, 28], strides = [1, 1]} : vector<56x28xf32> to vector<52x28xf32>
    %11 = vector.extract_strided_slice %0 {offsets = [0, 0], sizes = [4, 28], strides = [1, 1]} : vector<56x28xf32> to vector<4x28xf32>
    %12 = tpu.concatenate %10, %11 in 0 : vector<52x28xf32>, vector<4x28xf32> -> vector<56x28xf32>
    %13 = tpu.concatenate %0, %3, %6, %9, %12 in 1 : vector<56x28xf32>, vector<56x28xf32>, vector<56x28xf32>, vector<56x28xf32>, vector<56x28xf32> -> vector<56x140xf32>
    %14 = arith.truncf %13 : vector<56x140xf32> to vector<56x140xbf16>
    %c0_1 = arith.constant 0 : index
    %c0_2 = arith.constant 0 : index
    %15 = vector.load %arg1[%c0_1, %c0_2] : memref<140x240xbf16, #tpu.memory_space<vmem>>, vector<140x240xbf16>
    %cst = arith.constant dense<0.000000e+00> : vector<56x240xf32>
    %16 = tpu.matmul %14, %15, %cst {dimension_numbers = #tpu.dot_dimension_numbers<[1], [0], [0], [1], [0, 0, 1, 1], [], []>} : vector<56x140xbf16>, vector<140x240xbf16>, vector<56x240xf32> -> vector<56x240xf32>
    %c0_3 = arith.constant 0 : index
    %c0_4 = arith.constant 0 : index
    %17 = vector.load %arg2[%c0_3, %c0_4] : memref<1x240xf32, #tpu.memory_space<vmem>>, vector<1x240xf32>
    %18 = vector.broadcast %17 : vector<1x240xf32> to vector<56x240xf32>
    %19 = arith.addf %16, %18 : vector<56x240xf32>
    %20 = vector.extract_strided_slice %19 {offsets = [1, 0], sizes = [55, 240], strides = [1, 1]} : vector<56x240xf32> to vector<55x240xf32>
    %21 = vector.extract_strided_slice %19 {offsets = [0, 0], sizes = [1, 240], strides = [1, 1]} : vector<56x240xf32> to vector<1x240xf32>
    %22 = tpu.concatenate %20, %21 in 0 : vector<55x240xf32>, vector<1x240xf32> -> vector<56x240xf32>
    %23 = arith.maximumf %19, %22 : vector<56x240xf32>
    %24 = vector.extract_strided_slice %23 {offsets = [0, 10], sizes = [56, 230], strides = [1, 1]} : vector<56x240xf32> to vector<56x230xf32>
    %25 = vector.extract_strided_slice %23 {offsets = [0, 0], sizes = [56, 10], strides = [1, 1]} : vector<56x240xf32> to vector<56x10xf32>
    %26 = tpu.concatenate %24, %25 in 1 : vector<56x230xf32>, vector<56x10xf32> -> vector<56x240xf32>
    %27 = arith.maximumf %23, %26 : vector<56x240xf32>
    %cst_5 = arith.constant 0.000000e+00 : f32
    %28 = vector.broadcast %cst_5 : f32 to vector<56x240xf32>
    %29 = arith.maximumf %27, %28 : vector<56x240xf32>
    %30 = arith.truncf %29 : vector<56x240xf32> to vector<56x240xbf16>
    %31 = vector.extract_strided_slice %30 {offsets = [2, 0], sizes = [54, 240], strides = [1, 1]} : vector<56x240xbf16> to vector<54x240xbf16>
    %32 = vector.extract_strided_slice %30 {offsets = [0, 0], sizes = [2, 240], strides = [1, 1]} : vector<56x240xbf16> to vector<2x240xbf16>
    %33 = tpu.concatenate %31, %32 in 0 : vector<54x240xbf16>, vector<2x240xbf16> -> vector<56x240xbf16>
    %34 = vector.extract_strided_slice %30 {offsets = [4, 0], sizes = [52, 240], strides = [1, 1]} : vector<56x240xbf16> to vector<52x240xbf16>
    %35 = vector.extract_strided_slice %30 {offsets = [0, 0], sizes = [4, 240], strides = [1, 1]} : vector<56x240xbf16> to vector<4x240xbf16>
    %36 = tpu.concatenate %34, %35 in 0 : vector<52x240xbf16>, vector<4x240xbf16> -> vector<56x240xbf16>
    %37 = vector.extract_strided_slice %30 {offsets = [6, 0], sizes = [50, 240], strides = [1, 1]} : vector<56x240xbf16> to vector<50x240xbf16>
    %38 = vector.extract_strided_slice %30 {offsets = [0, 0], sizes = [6, 240], strides = [1, 1]} : vector<56x240xbf16> to vector<6x240xbf16>
    %39 = tpu.concatenate %37, %38 in 0 : vector<50x240xbf16>, vector<6x240xbf16> -> vector<56x240xbf16>
    %40 = vector.extract_strided_slice %30 {offsets = [8, 0], sizes = [48, 240], strides = [1, 1]} : vector<56x240xbf16> to vector<48x240xbf16>
    %41 = vector.extract_strided_slice %30 {offsets = [0, 0], sizes = [8, 240], strides = [1, 1]} : vector<56x240xbf16> to vector<8x240xbf16>
    %42 = tpu.concatenate %40, %41 in 0 : vector<48x240xbf16>, vector<8x240xbf16> -> vector<56x240xbf16>
    %43 = tpu.concatenate %30, %33, %36, %39, %42 in 1 : vector<56x240xbf16>, vector<56x240xbf16>, vector<56x240xbf16>, vector<56x240xbf16>, vector<56x240xbf16> -> vector<56x1200xbf16>
    %c0_6 = arith.constant 0 : index
    %c0_7 = arith.constant 0 : index
    %44 = vector.load %arg3[%c0_6, %c0_7] : memref<1200x160xbf16, #tpu.memory_space<vmem>>, vector<1200x160xbf16>
    %cst_8 = arith.constant dense<0.000000e+00> : vector<56x160xf32>
    %45 = tpu.matmul %43, %44, %cst_8 {dimension_numbers = #tpu.dot_dimension_numbers<[1], [0], [0], [1], [0, 0, 1, 1], [], []>} : vector<56x1200xbf16>, vector<1200x160xbf16>, vector<56x160xf32> -> vector<56x160xf32>
    %c0_9 = arith.constant 0 : index
    %c0_10 = arith.constant 0 : index
    %46 = vector.load %arg4[%c0_9, %c0_10] : memref<1x160xf32, #tpu.memory_space<vmem>>, vector<1x160xf32>
    %47 = vector.broadcast %46 : vector<1x160xf32> to vector<56x160xf32>
    %48 = arith.addf %45, %47 : vector<56x160xf32>
    %49 = vector.extract_strided_slice %48 {offsets = [2, 0], sizes = [54, 160], strides = [1, 1]} : vector<56x160xf32> to vector<54x160xf32>
    %50 = vector.extract_strided_slice %48 {offsets = [0, 0], sizes = [2, 160], strides = [1, 1]} : vector<56x160xf32> to vector<2x160xf32>
    %51 = tpu.concatenate %49, %50 in 0 : vector<54x160xf32>, vector<2x160xf32> -> vector<56x160xf32>
    %52 = arith.maximumf %48, %51 : vector<56x160xf32>
    %53 = vector.extract_strided_slice %52 {offsets = [0, 20], sizes = [56, 140], strides = [1, 1]} : vector<56x160xf32> to vector<56x140xf32>
    %54 = vector.extract_strided_slice %52 {offsets = [0, 0], sizes = [56, 20], strides = [1, 1]} : vector<56x160xf32> to vector<56x20xf32>
    %55 = tpu.concatenate %53, %54 in 1 : vector<56x140xf32>, vector<56x20xf32> -> vector<56x160xf32>
    %56 = arith.maximumf %52, %55 : vector<56x160xf32>
    %cst_11 = arith.constant 0.000000e+00 : f32
    %57 = vector.broadcast %cst_11 : f32 to vector<56x160xf32>
    %58 = arith.maximumf %56, %57 : vector<56x160xf32>
    %59 = arith.truncf %58 : vector<56x160xf32> to vector<56x160xbf16>
    %60 = vector.extract_strided_slice %59 {offsets = [4, 0], sizes = [52, 160], strides = [1, 1]} : vector<56x160xbf16> to vector<52x160xbf16>
    %61 = vector.extract_strided_slice %59 {offsets = [0, 0], sizes = [4, 160], strides = [1, 1]} : vector<56x160xbf16> to vector<4x160xbf16>
    %62 = tpu.concatenate %60, %61 in 0 : vector<52x160xbf16>, vector<4x160xbf16> -> vector<56x160xbf16>
    %63 = vector.extract_strided_slice %59 {offsets = [8, 0], sizes = [48, 160], strides = [1, 1]} : vector<56x160xbf16> to vector<48x160xbf16>
    %64 = vector.extract_strided_slice %59 {offsets = [0, 0], sizes = [8, 160], strides = [1, 1]} : vector<56x160xbf16> to vector<8x160xbf16>
    %65 = tpu.concatenate %63, %64 in 0 : vector<48x160xbf16>, vector<8x160xbf16> -> vector<56x160xbf16>
    %66 = vector.extract_strided_slice %59 {offsets = [12, 0], sizes = [44, 160], strides = [1, 1]} : vector<56x160xbf16> to vector<44x160xbf16>
    %67 = vector.extract_strided_slice %59 {offsets = [0, 0], sizes = [12, 160], strides = [1, 1]} : vector<56x160xbf16> to vector<12x160xbf16>
    %68 = tpu.concatenate %66, %67 in 0 : vector<44x160xbf16>, vector<12x160xbf16> -> vector<56x160xbf16>
    %69 = tpu.concatenate %59, %62, %65, %68 in 1 : vector<56x160xbf16>, vector<56x160xbf16>, vector<56x160xbf16>, vector<56x160xbf16> -> vector<56x640xbf16>
    %c0_12 = arith.constant 0 : index
    %c0_13 = arith.constant 0 : index
    %70 = vector.load %arg5[%c0_12, %c0_13] : memref<640x50xbf16, #tpu.memory_space<vmem>>, vector<640x50xbf16>
    %cst_14 = arith.constant dense<0.000000e+00> : vector<56x50xf32>
    %71 = tpu.matmul %69, %70, %cst_14 {dimension_numbers = #tpu.dot_dimension_numbers<[1], [0], [0], [1], [0, 0, 1, 1], [], []>} : vector<56x640xbf16>, vector<640x50xbf16>, vector<56x50xf32> -> vector<56x50xf32>
    %c0_15 = arith.constant 0 : index
    %c0_16 = arith.constant 0 : index
    %72 = vector.load %arg6[%c0_15, %c0_16] : memref<1x50xf32, #tpu.memory_space<vmem>>, vector<1x50xf32>
    %73 = vector.broadcast %72 : vector<1x50xf32> to vector<56x50xf32>
    %74 = arith.addf %71, %73 : vector<56x50xf32>
    %cst_17 = arith.constant 0.000000e+00 : f32
    %75 = vector.broadcast %cst_17 : f32 to vector<56x50xf32>
    %76 = arith.maximumf %74, %75 : vector<56x50xf32>
    %77 = arith.truncf %76 : vector<56x50xf32> to vector<56x50xbf16>
    %c0_18 = arith.constant 0 : index
    %c0_19 = arith.constant 0 : index
    %78 = vector.load %arg7[%c0_18, %c0_19] : memref<50x10xbf16, #tpu.memory_space<vmem>>, vector<50x10xbf16>
    %cst_20 = arith.constant dense<0.000000e+00> : vector<56x10xf32>
    %79 = tpu.matmul %77, %78, %cst_20 {dimension_numbers = #tpu.dot_dimension_numbers<[1], [0], [0], [1], [0, 0, 1, 1], [], []>} : vector<56x50xbf16>, vector<50x10xbf16>, vector<56x10xf32> -> vector<56x10xf32>
    %c0_21 = arith.constant 0 : index
    %c0_22 = arith.constant 0 : index
    %80 = vector.load %arg8[%c0_21, %c0_22] : memref<1x10xf32, #tpu.memory_space<vmem>>, vector<1x10xf32>
    %81 = vector.broadcast %80 : vector<1x10xf32> to vector<56x10xf32>
    %82 = arith.addf %79, %81 : vector<56x10xf32>
    %c0_23 = arith.constant 0 : index
    %c0_24 = arith.constant 0 : index
    %83 = vector.load %arg9[%c0_23, %c0_24] : memref<56x1xf32, #tpu.memory_space<vmem>>, vector<56x1xf32>
    %84 = vector.broadcast %83 : vector<56x1xf32> to vector<56x10xf32>
    %85 = arith.addf %82, %84 : vector<56x10xf32>
    %cst_25 = arith.constant dense<0xFF800000> : vector<10xf32>
    %86 = vector.multi_reduction <maximumf>, %85, %cst_25 [0] : vector<56x10xf32> to vector<10xf32>
    %87 = vector.shape_cast %86 : vector<10xf32> to vector<1x10xf32>
    %88 = vector.broadcast %87 : vector<1x10xf32> to vector<56x10xf32>
    %89 = arith.subf %85, %88 : vector<56x10xf32>
    %90 = math.exp %89 : vector<56x10xf32>
    %cst_26 = arith.constant dense<0.000000e+00> : vector<10xf32>
    %91 = vector.multi_reduction <add>, %90, %cst_26 [0] : vector<56x10xf32> to vector<10xf32>
    %92 = vector.shape_cast %91 : vector<10xf32> to vector<1x10xf32>
    %93 = math.log %92 : vector<1x10xf32>
    %94 = arith.addf %87, %93 : vector<1x10xf32>
    %95 = vector.broadcast %94 : vector<1x10xf32> to vector<56x10xf32>
    %96 = arith.subf %85, %95 : vector<56x10xf32>
    %c0_27 = arith.constant 0 : index
    %c0_28 = arith.constant 0 : index
    %97 = vector.load %arg10[%c0_27, %c0_28] : memref<56x10xf32, #tpu.memory_space<vmem>>, vector<56x10xf32>
    tpu.vector_store %arg10[%c0_27, %c0_28], %96 {strides = array<i32>} : memref<56x10xf32, #tpu.memory_space<vmem>>, vector<56x10xf32>,
    return
  }
}

</mosaic_0001>

<bundles_post_ra>
// kernel: forward.1
= control target key start
LH: loop header
LB: loop body
LE: loop exit
PB: predicated region body
PF: predicated region fallthrough
CT: control target
= control target key end

     0   :  { %vm84_vm0 = vcmask 1044480   ;;  %vm50_vm1 = vcmask 1046528   ;;  %vm101_vm2 = vcmask 1043456   ;;  %vm67_vm3 = vcmask 1045504   ;;  %s4816_s19 = smov 84   ;;  %s4817_s22 = smov 28   ;;  %s7300_s0 = inlined_call_operand.vmem [shape: f32[56,28], index: 0, kind: input, shape index: {}]   ;;  %s7301_s1 = inlined_call_operand.vmem [shape: bf16[140,240], index: 1, kind: input, shape index: {}]   ;;  %s7302_s2 = inlined_call_operand.vmem [shape: f32[1,240], index: 2, kind: input, shape index: {}]   ;;  %s7303_s3 = inlined_call_operand.vmem [shape: bf16[1200,160], index: 3, kind: input, shape index: {}]   ;;  %s7304_s4 = inlined_call_operand.vmem [shape: f32[1,160], index: 4, kind: input, shape index: {}]   ;;  %s7305_s5 = inlined_call_operand.vmem [shape: bf16[640,50], index: 5, kind: input, shape index: {}]   ;;  %s7306_s6 = inlined_call_operand.vmem [shape: f32[1,50], index: 6, kind: input, shape index: {}]   ;;  %s7307_s7 = inlined_call_operand.vmem [shape: bf16[50,10], index: 7, kind: input, shape index: {}]   ;;  %s7308_s8 = inlined_call_operand.vmem [shape: f32[1,10], index: 8, kind: input, shape index: {}]   ;;  %s7309_s9 = inlined_call_operand.vmem [shape: f32[56,1], index: 9, kind: input, shape index: {}]   ;;  %s7310_s10 = inlined_call_operand.vmem [shape: f32[56,10], index: 10, kind: output, shape index: {}]  }
   0x1   :  { %v4887_v0 = vld [vmem:[%s7300_s0] sm:$0xff]  ;;  %v4892_v1 = vld [vmem:[%s7300_s0 + $0x8] sm:$0xff]  ;;  %v4897_v2 = vld [vmem:[%s7300_s0 + $0x10] sm:$0xff]  ;;  %s4818_s25 = smov 112   ;;  %s4819_s28 = smov 56   ;;  %vm206_vm4 = vcmask 228352  }
   0x2   :  { %v85_v3 = vrot.slane %v4887_v0, 3  ;;  %v86_v4 = vrot.slane %v4892_v1, 3  ;;  %v88_v5 = vrot.slane %v4897_v2, 3  ;;  %v51_v6 = vrot.slane %v4887_v0, 1  ;;  %v4923_v21 = vld [vmem:[%s7300_s0 + $0x18] sm:$0xff]  ;;  %v4933_v24 = vld [vmem:[%s7300_s0 + $0x20] sm:$0xff] }
   0x3   :  { %v52_v7 = vrot.slane %v4892_v1, 1  ;;  %v54_v8 = vrot.slane %v4897_v2, 1  ;;  %v102_v9 = vrot.slane %v4887_v0, 4  ;;  %v103_v12 = vrot.slane %v4892_v1, 4  ;;  %v4958_v42 = vld [vmem:[%s7300_s0 + $0x28] sm:$0xff]  ;;  %v4964_v43 = vld [vmem:[%s7300_s0 + $0x30] sm:$0xff] }
   0x4   :  { %v87_v10 = vsel %vm84_vm0, %v85_v3, %v86_v4  ;;  %v89_v11 = vsel %vm84_vm0, %v86_v4, %v88_v5  ;;  %v105_v13 = vrot.slane %v4897_v2, 4  ;;  %v68_v17 = vrot.slane %v4887_v0, 2  ;;  %v3589_v46 = vld [vmem:[%s7301_s1 + $0x70] sm:$0xf]  ;;  %v4410_v47 = vld [vmem:[%s7301_s1 + $0x74] sm:$0xf0] }
   0x5   :  { %v4645_v14 = vpack.i.bf16 %v89_v11, %v87_v10  ;;  %v53_v15 = vsel %vm50_vm1, %v51_v6, %v52_v7  ;;  %v55_v16 = vsel %vm50_vm1, %v52_v7, %v54_v8  ;;  %v69_v19 = vrot.slane %v4892_v1, 2  ;;  %v4409_v51 = vld [vmem:[%s7301_s1 + $0x74] sm:$0xf]  ;;  %v3591_v52 = vld [vmem:[%s7301_s1 + $0x78] sm:$0xf0]  ;;  %s4821_s30 = smov 102  }
   0x6   :  { %v4635_v18 = vpack.i.bf16 %v55_v16, %v53_v15  ;;  %v71_v20 = vrot.slane %v4897_v2, 2  ;;  %v104_v22 = vsel %vm101_vm2, %v102_v9, %v103_v12  ;;  %v106_v23 = vsel %vm101_vm2, %v103_v12, %v105_v13  ;;  %v3581_v53 = vld [vmem:[%s7301_s1 + $0x60] sm:$0xf]  ;;  %v4408_v55 = vld [vmem:[%s7301_s1 + $0x64] sm:$0xf0]  ;;  %s4822_s17 = smov 96  }
   0x7   :  { %4646 = vrot.lane.b32.xlu1 %v4645_v14, %s4816_s19  ;;  %v56_v25 = vrot.slane %v4923_v21, 1  ;;  %v70_v26 = vsel %vm67_vm3, %v68_v17, %v69_v19  ;;  %v58_v29 = vrot.slane %v4933_v24, 1  ;;  %v4650_v30 = vpack.i.bf16 %v106_v23, %v104_v22  ;;  %v4407_v56 = vld [vmem:[%s7301_s1 + $0x64] sm:$0xf]  ;;  %v3583_v57 = vld [vmem:[%s7301_s1 + $0x68] sm:$0xf0] }
   0x8   :  { %4636 = vrot.lane.b32.xlu0 %v4635_v18, %s4817_s22  ;;  %v72_v27 = vsel %vm67_vm3, %v69_v19, %v71_v20  ;;  %v107_v31 = vrot.slane %v4923_v21, 4  ;;  %v109_v32 = vrot.slane %v4933_v24, 4  ;;  %v73_v35 = vrot.slane %v4923_v21, 2  ;;  %v3573_v11 = vld [vmem:[%s7301_s1 + $0x50] sm:$0xf]  ;;  %s4823_s29 = smov 80  }
   0x9   :  { %v57_v28 = vsel %vm50_vm1, %v54_v8, %v56_v25  ;;  %v4640_v33 = vpack.i.bf16 %v72_v27, %v70_v26  ;;  %v59_v34 = vsel %vm50_vm1, %v56_v25, %v58_v29  ;;  %v90_v36 = vrot.slane %v4923_v21, 3  ;;  %v4406_v12 = vld [vmem:[%s7301_s1 + $0x54] sm:$0xf0]  ;;  %v3575_v14 = vld [vmem:[%s7301_s1 + $0x58] sm:$0xf0]  ;;  %s4826_s0 = smov 12  }
   0xa   :  { %v92_v37 = vrot.slane %v4933_v24, 3  ;;  %v4655_v38 = vpack.i.bf16 %v59_v34, %v57_v28  ;;  %v75_v39 = vrot.slane %v4933_v24, 2  ;;  %v108_v40 = vsel %vm101_vm2, %v105_v13, %v107_v31  ;;  %v4405_v13 = vld [vmem:[%s7301_s1 + $0x54] sm:$0xf]  ;;  %v3565_v26 = vld [vmem:[%s7301_s1 + $0x40] sm:$0xf] }
   0xb   :  { %v110_v41 = vsel %vm101_vm2, %v107_v31, %v109_v32  ;;  %v74_v44 = vsel %vm67_vm3, %v71_v20, %v73_v35  ;;  %v91_v48 = vsel %vm84_vm0, %v88_v5, %v90_v36  ;;  %v3590_v50 = vor.u32 %v4410_v47, %v3589_v46  ;;  %v4404_v27 = vld [vmem:[%s7301_s1 + $0x44] sm:$0xf0]  ;;  %v4403_v28 = vld [vmem:[%s7301_s1 + $0x44] sm:$0xf]  ;;  %s4827_s14 = smov 32  }
   0xc   :  { %4656 = vrot.lane.b32.xlu2 %v4655_v38, %s4817_s22  ;;  %v76_v45 = vsel %vm67_vm3, %v73_v35, %v75_v39  ;;  %v93_v49 = vsel %vm84_vm0, %v90_v36, %v92_v37  ;;  %v4670_v54 = vpack.i.bf16 %v110_v41, %v108_v40  ;;  %v94_v58 = vrot.slane %v4958_v42, 3 }
   0xd   :  { %v96_v59 = vrot.slane %v4964_v43, 3  ;;  %v4660_v60 = vpack.i.bf16 %v76_v45, %v74_v44  ;;  %377 = vmatpush.bf16.msra.mxu0 %v3590_v50  ;;  %v3594_v61 = vor.u32 %v4409_v51, %v3591_v52  ;;  %v4665_v62 = vpack.i.bf16 %v93_v49, %v91_v48  ;;  %v3549_v48 = vld [vmem:[%s7301_s1 + $0x20] sm:$0xf]  ;;  %v4400_v49 = vld [vmem:[%s7301_s1 + $0x24] sm:$0xf0] }
   0xe   :  { %v62_v63 = vrot.slane %v4964_v43, 1  ;;  %v60_v4 = vrot.slane %v4958_v42, 1  ;;  %v3582_v5 = vor.u32 %v4408_v55, %v3581_v53  ;;  %v77_v7 = vrot.slane %v4958_v42, 2  ;;  %v4399_v50 = vld [vmem:[%s7301_s1 + $0x24] sm:$0xf] }
   0xf   :  { %4651 = vrot.lane.b32.xlu1 %v4650_v30, %s4818_s25  ;;  %v79_v8 = vrot.slane %v4964_v43, 2  ;;  %433 = vmatpush.bf16.msra.mxu2 %v3594_v61  ;;  %v3586_v10 = vor.u32 %v4407_v56, %v3583_v57  ;;  %v95_v15 = vsel %vm84_vm0, %v92_v37, %v94_v58  ;;  %v97_v16 = vsel %vm84_vm0, %v94_v58, %v96_v59  ;;  %v3551_v52 = vld [vmem:[%s7301_s1 + $0x28] sm:$0xf0]  ;;  %v4398_v55 = vld [vmem:[%s7301_s1 + $0x14] sm:$0xf0] }
  0x10   :  { %4641 = vrot.lane.b32.xlu0 %v4640_v33, %s4819_s28  ;;  %v61_v18 = vsel %vm50_vm1, %v58_v29, %v60_v4  ;;  %v63_v19 = vsel %vm50_vm1, %v60_v4, %v62_v63  ;;  %v3574_v20 = vor.u32 %v4406_v12, %v3573_v11  ;;  %v78_v22 = vsel %vm67_vm3, %v75_v39, %v77_v7  ;;  %v3567_v29 = vld [vmem:[%s7301_s1 + $0x48] sm:$0xf0]  ;;  %v4397_v56 = vld [vmem:[%s7301_s1 + $0x14] sm:$0xf]  ;;  %v3543_v58 = vld [vmem:[%s7301_s1 + $0x18] sm:$0xf0] }
  0x11   :  { %378 = vmatpush.bf16.msra.mxu0 %v3582_v5  ;;  %v80_v23 = vsel %vm67_vm3, %v77_v7, %v79_v8  ;;  %v3578_v25 = vor.u32 %v4405_v13, %v3575_v14  ;;  %v4685_v30 = vpack.i.bf16 %v97_v16, %v95_v15  ;;  %v4675_v31 = vpack.i.bf16 %v63_v19, %v61_v18  ;;  %v3599_v4 = vld [vmem:[%s7301_s1 + $0x88] sm:$0x30]  ;;  %v4395_v13 = vld [vmem:[%s7301_s1 + $0x4] sm:$0xf] }
  0x12   :  { %v4680_v33 = vpack.i.bf16 %v80_v23, %v78_v22  ;;  %v113_v34 = vrot.slane %v4964_v43, 4  ;;  %v111_v35 = vrot.slane %v4958_v42, 4  ;;  %v3566_v36 = vor.u32 %v4404_v27, %v3565_v26  ;;  %v3535_v14 = vld [vmem:[%s7301_s1 + $0x8] sm:$0xf0] }
  0x13   :  { %434 = vmatpush.bf16.msra.mxu2 %v3586_v10  ;;  %v3570_v37 = vor.u32 %v4403_v28, %v3567_v29  ;;  %v83_v41 = vsel %vm67_vm3, %v79_v8, %v68_v17  ;;  %v66_v44 = vsel %vm50_vm1, %v62_v63, %v51_v6  ;;  %v3557_v6 = vld [vmem:[%s7301_s1 + $0x30] sm:$0xf]  ;;  %v4402_v17 = vld [vmem:[%s7301_s1 + $0x34] sm:$0xf0]  ;;  %v3550_v51 = vor.u32 %v4400_v49, %v3549_v48  ;;  %v4411_v63 = vld [vmem:[%s7301_s1 + $0x84] sm:$0xf] }
  0x14   :  { %4661 = vrot.lane.b32.xlu2 %v4660_v60, %s4819_s28  ;;  %v112_v38 = vsel %vm101_vm2, %v109_v32, %v111_v35  ;;  %v114_v39 = vsel %vm101_vm2, %v111_v35, %v113_v34  ;;  %v100_v32 = vsel %vm84_vm0, %v96_v59, %v85_v3  ;;  %v117_v45 = vsel %vm101_vm2, %v113_v34, %v102_v9  ;;  %v4401_v3 = vld [vmem:[%s7301_s1 + $0x34] sm:$0xf]  ;;  %v3559_v9 = vld [vmem:[%s7301_s1 + $0x38] sm:$0xf0]  ;;  %v3597_v59 = vld [vmem:[%s7301_s1 + $0x80] sm:$0xf] }
  0x15   :  { %379 = vmatpush.bf16.msra.mxu0 %v3574_v20  ;;  %v4690_v40 = vpack.i.bf16 %v114_v39, %v112_v38  ;;  %v3558_v46 = vor.u32 %v4402_v17, %v3557_v6  ;;  %v3562_v47 = vor.u32 %v4401_v3, %v3559_v9  ;;  %v3554_v53 = vor.u32 %v4399_v50, %v3551_v52  ;;  %v4412_v60 = vld [vmem:[%s7301_s1 + $0x84] sm:$0x30]  ;;  %v3533_v8 = vld [vmem:[%s7301_s1] sm:$0xf] }
  0x16   :  { %v3546_v61 = vor.u32 %v4397_v56, %v3543_v58  ;;  %v3602_v5 = vor.u32 %v4411_v63, %v3599_v4  ;;  %v4396_v10 = vld [vmem:[%s7301_s1 + $0x4] sm:$0xf0]  ;;  %v3538_v15 = vor.u32 %v4395_v13, %v3535_v14  ;;  %vm214_vm5 = vcmask 457728  }
  0x17   :  { %4671 = vrot.lane.b32.xlu1 %v4670_v54, %s4818_s25  ;;  %435 = vmatpush.bf16.msra.mxu2 %v3578_v25  ;;  %v3541_v54 = vld [vmem:[%s7301_s1 + $0x10] sm:$0xf]  ;;  %v3534_v12 = vor.u32 %v4396_v10, %v3533_v8  ;;  %vm358_vm6 = vcmask 97280   ;;  %vm222_vm7 = vcmask 687104   ;;  %vm230_vm8 = vcmask 916480  }
  0x18   :  { %4666 = vrot.lane.b32.xlu0 %v4665_v62, %s4816_s19  ;;  %v3542_v57 = vor.u32 %v4398_v55, %v3541_v54  ;;  %v3598_v62 = vor.u32 %v4412_v60, %v3597_v59  ;;  %v375_v11 = vsel %vm67_vm3, %v3602_v5, 0  ;;  %vm646_vm9 = vcmask 834560  }
  0x19   :  { %380 = vmatpush.bf16.msra.mxu0 %v3566_v36  ;;  %468 = vmatpush.bf16.msra.mxu3 %v375_v11  ;;  %vm603_vm10 = vcmask 965632   ;;  %vm737_vm11 = vcmask 1042432   ;;  %vm761_vm12 = vcmask 1041408   ;;  %vm785_vm13 = vcmask 1040384  }
  0x1a   :  { %v372_v7 = vsel %vm67_vm3, %v3598_v62, 0  ;;  %vm847_vm14 = vcmask 785408   ;;  %vm899_vm15 = vcmask 523264   ;;  %vm2568_vm2 = vcmask 883712  }
  0x1b   :  { %436 = vmatpush.bf16.msra.mxu2 %v3570_v37  ;;  %412 = vmatpush.bf16.msra.mxu1 %v372_v7 }
  0x1c   :  { %4676 = vrot.lane.b32.xlu2 %v4675_v31, %s4817_s22 }
  0x1d   :  { %381 = vmatpush.bf16.msra.mxu0 %v3558_v46 }
  0x1f   :  { %4686 = vrot.lane.b32.xlu1 %v4685_v30, %s4816_s19  ;;  %437 = vmatpush.bf16.msra.mxu2 %v3562_v47 }
  0x20   :  { %4681 = vrot.lane.b32.xlu0 %v4680_v33, %s4819_s28 }
  0x21   :  { %382 = vmatpush.bf16.msra.mxu0 %v3550_v51 }
  0x23   :  { %438 = vmatpush.bf16.msra.mxu2 %v3554_v53 }
  0x24   :  { %4691 = vrot.lane.b32.xlu2 %v4690_v40, %s4818_s25 }
  0x25   :  { %383 = vmatpush.bf16.msra.mxu0 %v3542_v57 }
  0x27   :  { %153 = vrot.lane.b32.xlu1 %v83_v41, %s4819_s28  ;;  %439 = vmatpush.bf16.msra.mxu2 %v3546_v61 }
  0x28   :  { %131 = vrot.lane.b32.xlu0 %v66_v44, %s4817_s22 }
  0x29   :  { %384 = vmatpush.bf16.msra.mxu0 %v3534_v12 }
  0x2b   :  { %440 = vmatpush.bf16.msra.mxu2 %v3538_v15 }
  0x2c   :  { %175 = vrot.lane.b32.xlu2 %v100_v32, %s4816_s19 }
  0x30   :  { %197 = vrot.lane.b32.xlu0 %v117_v45, %s4818_s25 }
  0x66   :  { %v4657_v19 = vpop.permute.xlu2 %4656 }
  0x67   :  { %v4659_v41 = vunpack.i.h.bf16 %v4657_v19  ;;  %v4658_v44 = vunpack.i.l.bf16 %v4657_v19 }
  0x69   :  { %v210_v3 = vsel %vm206_vm4, %v4923_v21, %v4659_v41  ;;  %v209_v46 = vsel %vm206_vm4, %v4897_v2, %v4658_v44 }
  0x6e   :  { %v4662_v32 = vpop.permute.xlu2 %4661 }
  0x6f   :  { %v4664_v45 = vunpack.i.h.bf16 %v4662_v32  ;;  %v4663_v6 = vunpack.i.l.bf16 %v4662_v32 }
  0x71   :  { %v217_v49 = vsel %vm214_vm5, %v209_v46, %v4663_v6  ;;  %v218_v50 = vsel %vm214_vm5, %v210_v3, %v4664_v45 }
  0x76   :  { %v4677_v56 = vpop.permute.xlu2 %4676 }
  0x77   :  { %v4679_v2 = vunpack.i.h.bf16 %v4677_v56  ;;  %v4678_v58 = vunpack.i.l.bf16 %v4677_v56 }
  0x79   :  { %v4647_v16 = vpop.permute.xlu1 %4646  ;;  %v212_v4 = vsel %vm206_vm4, %v4958_v42, %v4679_v2  ;;  %v211_v5 = vsel %vm206_vm4, %v4933_v24, %v4678_v58 }
  0x7a   :  { %v4637_v18 = vpop.permute.xlu0 %4636  ;;  %v4649_v28 = vunpack.i.h.bf16 %v4647_v16  ;;  %v4648_v31 = vunpack.i.l.bf16 %v4647_v16 }
  0x7b   :  { %v4639_v20 = vunpack.i.h.bf16 %v4637_v18  ;;  %v4638_v22 = vunpack.i.l.bf16 %v4637_v18 }
  0x7d   :  { %v208_v33 = vsel %vm206_vm4, %v4892_v1, %v4639_v20  ;;  %v207_v34 = vsel %vm206_vm4, %v4887_v0, %v4638_v22 }
  0x7e   :  { %v4692_v7 = vpop.permute.xlu2 %4691 }
  0x7f   :  { %v4694_v13 = vunpack.i.h.bf16 %v4692_v7  ;;  %v4693_v14 = vunpack.i.l.bf16 %v4692_v7 }
  0x81   :  { %v4652_v23 = vpop.permute.xlu1 %4651  ;;  %v243_v15 = vpack.c.bf16 %v4694_v13, %v4693_v14 }
  0x82   :  { %v4654_v25 = vunpack.i.h.bf16 %v4652_v23  ;;  %v4653_v26 = vunpack.i.l.bf16 %v4652_v23  ;;  %v4642_v27 = vpop.permute.xlu0 %4641 }
  0x83   :  { %v4644_v29 = vunpack.i.h.bf16 %v4642_v27  ;;  %v4643_v30 = vunpack.i.l.bf16 %v4642_v27 }
  0x84   :  { %v239_v35 = vpack.c.bf16 %v4654_v25, %v4653_v26 }
  0x85   :  { %v215_v36 = vsel %vm214_vm5, %v207_v34, %v4643_v30  ;;  %v216_v37 = vsel %vm214_vm5, %v208_v33, %v4644_v29 }
  0x86   :  { %3603 = vmatmul.msk.bf16.vlgmr.msra.gmra.mxu1 %vm358_vm6, %v239_v35  ;;  %3607 = vmatmul.msk.bf16.vlgmr.msra.gmra.mxu3 %vm358_vm6, %v239_v35  ;;  %v223_v38 = vsel %vm222_vm7, %v215_v36, %v4648_v31  ;;  %v224_v39 = vsel %vm222_vm7, %v216_v37, %v4649_v28 }
  0x87   :  { %v231_v40 = vsel %vm230_vm8, %v223_v38, %v4653_v26  ;;  %v232_v1 = vsel %vm230_vm8, %v224_v39, %v4654_v25  ;;  %v176_v26 = vpop.permute.xlu2 %175 }
  0x88   :  { %v238_v0 = vpack.c.bf16 %v232_v1, %v231_v40 }
  0x89   :  { %v4672_v9 = vpop.permute.xlu1 %4671 }
  0x8a   :  { %385 = vmatmul.bf16.vlgmr.msra.gmra.mxu0 %v238_v0  ;;  %441 = vmatmul.bf16.vlgmr.msra.gmra.mxu2 %v238_v0  ;;  %v4667_v17 = vpop.permute.xlu0 %4666  ;;  %v4674_v51 = vunpack.i.h.bf16 %v4672_v9  ;;  %v4673_v52 = vunpack.i.l.bf16 %v4672_v9 }
  0x8b   :  { %v4669_v47 = vunpack.i.h.bf16 %v4667_v17  ;;  %v4668_v48 = vunpack.i.l.bf16 %v4667_v17 }
  0x8c   :  { %v241_v53 = vpack.c.bf16 %v4674_v51, %v4673_v52 }
  0x8d   :  { %v225_v54 = vsel %vm222_vm7, %v217_v49, %v4668_v48  ;;  %v226_v55 = vsel %vm222_vm7, %v218_v50, %v4669_v47 }
  0x8e   :  { %v233_v21 = vsel %vm230_vm8, %v225_v54, %v4673_v52  ;;  %v234_v57 = vsel %vm230_vm8, %v226_v55, %v4674_v51 }
  0x8f   :  { %v240_v59 = vpack.c.bf16 %v234_v57, %v233_v21 }
  0x91   :  { %v4687_v63 = vpop.permute.xlu1 %4686 }
  0x92   :  { %v4682_v60 = vpop.permute.xlu0 %4681  ;;  %v4689_v8 = vunpack.i.h.bf16 %v4687_v63  ;;  %v4688_v10 = vunpack.i.l.bf16 %v4687_v63 }
  0x93   :  { %v4684_v61 = vunpack.i.h.bf16 %v4682_v60  ;;  %v4683_v62 = vunpack.i.l.bf16 %v4682_v60 }
  0x95   :  { %v220_v11 = vsel %vm214_vm5, %v212_v4, %v4684_v61  ;;  %v219_v12 = vsel %vm214_vm5, %v211_v5, %v4683_v62 }
  0x96   :  { %3604 = vmatmul.msk.bf16.gmra.mxu1 %vm358_vm6, %v241_v53  ;;  %3608 = vmatmul.msk.bf16.gmra.mxu3 %vm358_vm6, %v241_v53  ;;  %v227_v16 = vsel %vm222_vm7, %v219_v12, %v4688_v10  ;;  %v228_v18 = vsel %vm222_vm7, %v220_v11, %v4689_v8 }
  0x97   :  { %v235_v19 = vsel %vm230_vm8, %v227_v16, %v4693_v14  ;;  %v236_v42 = vsel %vm230_vm8, %v228_v18, %v4694_v13 }
  0x98   :  { %v242_v24 = vpack.c.bf16 %v236_v42, %v235_v19 }
  0x99   :  { %v154_v23 = vpop.permute.xlu1 %153 }
  0x9a   :  { %390 = vmatmul.bf16.gmra.mxu0 %v240_v59  ;;  %446 = vmatmul.bf16.gmra.mxu2 %v240_v59  ;;  %v132_v20 = vpop.permute.xlu0 %131 }
  0x9b   :  { %v213_v22 = vsel %vm206_vm4, %v4964_v43, %v132_v20  ;;  %v264_v43 = vld [vmem:[%s7302_s2] sm:$0x3]  ;;  %s4820_s2 = smov 118   ;;  %vm3357_vm4 = vcmask 408576  }
  0x9c   :  { %v221_v25 = vsel %vm214_vm5, %v213_v22, %v154_v23  ;;  %v5167_v37 = vperm.slane %v264_v43, 0  ;;  %v5169_v39 = vperm.slane %v264_v43, 1  ;;  %vm3450_vm5 = vcmask 80896  }
  0x9d   :  { %v229_v28 = vsel %vm222_vm7, %v221_v25, %v176_v26 }
  0xa2   :  { %v198_v27 = vpop.permute.xlu0 %197 }
  0xa3   :  { %v245_v29 = vpack.c.bf16 %v198_v27, %v198_v27  ;;  %v237_v30 = vsel %vm230_vm8, %v229_v28, %v198_v27 }
  0xa4   :  { %v244_v31 = vpack.c.bf16 %v237_v30, %v237_v30 }
  0xa6   :  { %3605 = vmatmul.msk.bf16.gmra.mxu1 %vm358_vm6, %v243_v15  ;;  %3609 = vmatmul.msk.bf16.gmra.mxu3 %vm358_vm6, %v243_v15 }
  0xaa   :  { %395 = vmatmul.bf16.gmra.mxu0 %v242_v24  ;;  %451 = vmatmul.bf16.gmra.mxu2 %v242_v24 }
  0xb6   :  { %3606 = vmatmul.msk.bf16.gmra.mxu1 %vm358_vm6, %v245_v29  ;;  %3610 = vmatmul.msk.bf16.gmra.mxu3 %vm358_vm6, %v245_v29 }
  0xba   :  { %400 = vmatmul.bf16.gmra.mxu0 %v244_v31  ;;  %456 = vmatmul.bf16.gmra.mxu2 %v244_v31 }
 0x103   :  { %v414_v33 = vpop.f32.mrf.mxu1 }
 0x107   :  { %v386_v34 = vpop.f32.mrf.mxu0 }
 0x108   :  { %v387_v1 = vadd.f32 %v386_v34, %v5167_v37 }
 0x109   :  { %v470_v35 = vpop.f32.mrf.mxu3 }
 0x10a   :  { %v5174_v6 = vadd.f32 %v414_v33, %v387_v1 }
 0x10b   :  { %v416_v36 = vpop.f32.mrf.mxu1 }
 0x10c   :  { %v503_v48 = vrot.slane %v5174_v6, 1 }
 0x10d   :  { %v442_v38 = vpop.f32.mrf.mxu2 }
 0x10e   :  { %v443_v0 = vadd.f32 %v442_v38, %v5169_v39 }
 0x10f   :  { %v388_v40 = vpop.f32.mrf.mxu0 }
 0x110   :  { %v389_v41 = vadd.f32 %v388_v40, %v5167_v37  ;;  %v5176_v3 = vadd.f32 %v470_v35, %v443_v0  ;;  %v4428_v0 = vld [vmem:[%s7303_s3 + $0x74] sm:$0xf0] }
 0x111   :  { %v472_v44 = vpop.f32.mrf.mxu3 }
 0x112   :  { %v417_v32 = vadd.f32 %v416_v36, %v389_v41  ;;  %v506_v52 = vrot.slane %v5176_v3, 1 }
 0x113   :  { %v419_v45 = vpop.f32.mrf.mxu1 }
 0x114   :  { %v504_v46 = vrot.slane %v417_v32, 1 }
 0x115   :  { %v444_v17 = vpop.f32.mrf.mxu2 }
 0x116   :  { %v445_v9 = vadd.f32 %v444_v17, %v5169_v39  ;;  %v505_v55 = vsel %vm50_vm1, %v503_v48, %v504_v46 }
 0x117   :  { %v391_v47 = vpop.f32.mrf.mxu0  ;;  %v5189_v2 = vmax.f32 %v5174_v6, %v505_v55 }
 0x118   :  { %v473_v49 = vadd.f32 %v472_v44, %v445_v9  ;;  %v392_v50 = vadd.f32 %v391_v47, %v5167_v37  ;;  %v3669_v44 = vld [vmem:[%s7303_s3 + $0x70] sm:$0xf] }
 0x119   :  { %v475_v51 = vpop.f32.mrf.mxu3  ;;  %v3670_v17 = vor.u32 %v4428_v0, %v3669_v44  ;;  %v4418_v44 = vld [vmem:[%s7303_s3 + $0x24] sm:$0xf0] }
 0x11a   :  { %v507_v53 = vrot.slane %v473_v49, 1  ;;  %v420_v54 = vadd.f32 %v419_v45, %v392_v50 }
 0x11b   :  { %v421_v56 = vpop.f32.mrf.mxu1  ;;  %1894 = vmatpush.bf16.msrb.mxu1 %v3670_v17 }
 0x11c   :  { %v508_v21 = vsel %vm50_vm1, %v506_v52, %v507_v53  ;;  %v509_v59 = vrot.slane %v420_v54, 1 }
 0x11d   :  { %v447_v57 = vpop.f32.mrf.mxu2  ;;  %v5192_v58 = vmax.f32 %v5176_v3, %v508_v21  ;;  %v3661_v3 = vld [vmem:[%s7303_s3 + $0x60] sm:$0xf] }
 0x11e   :  { %v448_v60 = vadd.f32 %v447_v57, %v5169_v39  ;;  %v510_v7 = vsel %vm50_vm1, %v504_v46, %v509_v59 }
 0x11f   :  { %v393_v61 = vpop.f32.mrf.mxu0  ;;  %v4695_v62 = vpack.i.bf16 %v5192_v58, %v5189_v2  ;;  %v5201_v14 = vmax.f32 %v417_v32, %v510_v7 }
 0x120   :  { %v476_v63 = vadd.f32 %v475_v51, %v448_v60  ;;  %v394_v4 = vadd.f32 %v393_v61, %v5167_v37 }
 0x121   :  { %4696 = vrot.lane.b32.xlu1 %v4695_v62, %s4820_s2  ;;  %v477_v5 = vpop.f32.mrf.mxu3  ;;  %v4715_v36 = vpack.i.bf16 %v5201_v14, %v5189_v2 }
 0x122   :  { %v511_v8 = vrot.slane %v476_v63, 1  ;;  %v422_v10 = vadd.f32 %v421_v56, %v394_v4 }
 0x123   :  { %v424_v11 = vpop.f32.mrf.mxu1 }
 0x124   :  { %v512_v12 = vsel %vm50_vm1, %v507_v53, %v511_v8  ;;  %v513_v16 = vrot.slane %v422_v10, 1 }
 0x125   :  { %v449_v13 = vpop.f32.mrf.mxu2  ;;  %v5203_v15 = vmax.f32 %v473_v49, %v512_v12 }
 0x126   :  { %v450_v18 = vadd.f32 %v449_v13, %v5169_v39  ;;  %v514_v26 = vsel %vm50_vm1, %v509_v59, %v513_v16 }
 0x127   :  { %v396_v19 = vpop.f32.mrf.mxu0  ;;  %v4700_v42 = vpack.i.bf16 %v5203_v15, %v5201_v14  ;;  %v5212_v31 = vmax.f32 %v420_v54, %v514_v26 }
 0x128   :  { %v478_v20 = vadd.f32 %v477_v5, %v450_v18  ;;  %v397_v24 = vadd.f32 %v396_v19, %v5167_v37 }
 0x129   :  { %4701 = vrot.lane.b32.xlu2 %v4700_v42, %s4820_s2  ;;  %v480_v22 = vpop.f32.mrf.mxu3 }
 0x12a   :  { %v515_v23 = vrot.slane %v478_v20, 1  ;;  %v425_v25 = vadd.f32 %v424_v11, %v397_v24 }
 0x12b   :  { %v426_v27 = vpop.f32.mrf.mxu1 }
 0x12c   :  { %v517_v28 = vrot.slane %v425_v25, 1  ;;  %v516_v29 = vsel %vm50_vm1, %v511_v8, %v515_v23 }
 0x12d   :  { %v452_v30 = vpop.f32.mrf.mxu2  ;;  %v5214_v33 = vmax.f32 %v476_v63, %v516_v29  ;;  %v3653_v29 = vld [vmem:[%s7303_s3 + $0x50] sm:$0xf] }
 0x12e   :  { %v453_v34 = vadd.f32 %v452_v30, %v5169_v39  ;;  %v518_v38 = vsel %vm50_vm1, %v513_v16, %v517_v28  ;;  %v4424_v30 = vld [vmem:[%s7303_s3 + $0x54] sm:$0xf0] }
 0x12f   :  { %v398_v43 = vpop.f32.mrf.mxu0  ;;  %v4705_v35 = vpack.i.bf16 %v5214_v33, %v5212_v31  ;;  %v5231_v9 = vmax.f32 %v422_v10, %v518_v38  ;;  %v3637_v38 = vld [vmem:[%s7303_s3 + $0x30] sm:$0xf] }
 0x130   :  { %v481_v40 = vadd.f32 %v480_v22, %v453_v34  ;;  %v399_v1 = vadd.f32 %v398_v43, %v5167_v37  ;;  %v3654_v34 = vor.u32 %v4424_v30, %v3653_v29  ;;  %v3645_v43 = vld [vmem:[%s7303_s3 + $0x40] sm:$0xf] }
 0x131   :  { %4706 = vrot.lane.b32.xlu0 %v4705_v35, %s4820_s2  ;;  %4716 = vrot.lane.b32.xlu2 %v4715_v36, %s4821_s30  ;;  %v482_v41 = vpop.f32.mrf.mxu3  ;;  %v4720_v55 = vpack.i.bf16 %v5231_v9, %v5212_v31  ;;  %v4422_v35 = vld [vmem:[%s7303_s3 + $0x44] sm:$0xf0] }
 0x132   :  { %v519_v32 = vrot.slane %v481_v40, 1  ;;  %v427_v45 = vadd.f32 %v426_v27, %v399_v1  ;;  %v3646_v36 = vor.u32 %v4422_v35, %v3645_v43 }
 0x133   :  { %v429_v46 = vpop.f32.mrf.mxu1 }
 0x134   :  { %v520_v47 = vsel %vm50_vm1, %v515_v23, %v519_v32  ;;  %v521_v51 = vrot.slane %v427_v45, 1 }
 0x135   :  { %v454_v49 = vpop.f32.mrf.mxu2  ;;  %v5234_v50 = vmax.f32 %v478_v20, %v520_v47  ;;  %v4414_v47 = vld [vmem:[%s7303_s3 + $0x4] sm:$0xf0] }
 0x136   :  { %v455_v53 = vadd.f32 %v454_v49, %v5169_v39  ;;  %v522_v62 = vsel %vm50_vm1, %v517_v28, %v521_v51 }
 0x137   :  { %v401_v54 = vpop.f32.mrf.mxu0  ;;  %v4710_v56 = vpack.i.bf16 %v5234_v50, %v5231_v9  ;;  %v5246_v8 = vmax.f32 %v425_v25, %v522_v62 }
 0x138   :  { %v483_v21 = vadd.f32 %v482_v41, %v455_v53  ;;  %v402_v57 = vadd.f32 %v401_v54, %v5167_v37  ;;  %v3629_v41 = vld [vmem:[%s7303_s3 + $0x20] sm:$0xf] }
 0x139   :  { %4721 = vrot.lane.b32.xlu0 %v4720_v55, %s4821_s30  ;;  %4711 = vrot.lane.b32.xlu1 %v4710_v56, %s4820_s2  ;;  %v485_v59 = vpop.f32.mrf.mxu3  ;;  %v3630_v0 = vor.u32 %v4418_v44, %v3629_v41 }
 0x13a   :  { %v523_v60 = vrot.slane %v483_v21, 1  ;;  %v430_v61 = vadd.f32 %v429_v46, %v402_v57  ;;  %v3613_v46 = vld [vmem:[%s7303_s3] sm:$0xf] }
 0x13b   :  { %v431_v63 = vpop.f32.mrf.mxu1  ;;  %v3614_v49 = vor.u32 %v4414_v47, %v3613_v46 }
 0x13c   :  { %v525_v4 = vrot.slane %v430_v61, 1  ;;  %v524_v5 = vsel %vm50_vm1, %v519_v32, %v523_v60  ;;  %v3621_v32 = vld [vmem:[%s7303_s3 + $0x10] sm:$0xf] }
 0x13d   :  { %v457_v7 = vpop.f32.mrf.mxu2  ;;  %v5248_v10 = vmax.f32 %v481_v40, %v524_v5  ;;  %v4420_v40 = vld [vmem:[%s7303_s3 + $0x34] sm:$0xf0] }
 0x13e   :  { %v526_v37 = vsel %vm50_vm1, %v521_v51, %v525_v4  ;;  %v458_v11 = vadd.f32 %v457_v7, %v5169_v39  ;;  %v545_v20 = vsel %vm50_vm1, %v525_v4, %v503_v48  ;;  %v3638_v1 = vor.u32 %v4420_v40, %v3637_v38 }
 0x13f   :  { %v403_v12 = vpop.f32.mrf.mxu0  ;;  %v4725_v13 = vpack.i.bf16 %v5248_v10, %v5246_v8  ;;  %v5254_v16 = vmax.f32 %v427_v45, %v526_v37  ;;  %v5267_v23 = vmax.f32 %v430_v61, %v545_v20  ;;  %v4416_v45 = vld [vmem:[%s7303_s3 + $0x14] sm:$0xf0] }
 0x140   :  { %v486_v18 = vadd.f32 %v485_v59, %v458_v11  ;;  %v3622_v17 = vor.u32 %v4416_v45, %v3621_v32 }
 0x141   :  { %4726 = vrot.lane.b32.xlu1 %v4725_v13, %s4820_s2  ;;  %v487_v19 = vpop.f32.mrf.mxu3  ;;  %v4735_v42 = vpack.i.bf16 %v5254_v16, %v5246_v8 }
 0x142   :  { %v527_v24 = vrot.slane %v486_v18, 1 }
 0x143   :  { %4736 = vrot.lane.b32.xlu0 %v4735_v42, %s4821_s30 }
 0x144   :  { %v546_v39 = vsel %vm50_vm1, %v527_v24, %v506_v52  ;;  %v528_v22 = vsel %vm50_vm1, %v523_v60, %v527_v24  ;;  %v4426_v52 = vld [vmem:[%s7303_s3 + $0x64] sm:$0xf0] }
 0x145   :  { %v5269_v25 = vmax.f32 %v486_v18, %v546_v39  ;;  %v459_v26 = vpop.f32.mrf.mxu2  ;;  %v5271_v27 = vmax.f32 %v483_v21, %v528_v22  ;;  %v3662_v28 = vor.u32 %v4426_v52, %v3661_v3 }
 0x147   :  { %v4730_v6 = vpack.i.bf16 %v5271_v27, %v5254_v16  ;;  %v4740_v48 = vpack.i.bf16 %v5269_v25, %v5267_v23  ;;  %1895 = vmatpush.bf16.msrb.mxu1 %v3662_v28 }
 0x149   :  { %4731 = vrot.lane.b32.xlu2 %v4730_v6, %s4820_s2  ;;  %4741 = vrot.lane.b32.xlu1 %v4740_v48, %s4820_s2  ;;  %s4824_s2 = smov 64  }
 0x14b   :  { %1896 = vmatpush.bf16.msrb.mxu1 %v3654_v34 }
 0x14f   :  { %1897 = vmatpush.bf16.msrb.mxu1 %v3646_v36 }
 0x151   :  { %637 = vrot.lane.b32.xlu2 %v5267_v23, %s4821_s30 }
 0x153   :  { %1898 = vmatpush.bf16.msrb.mxu1 %v3638_v1 }
 0x157   :  { %1899 = vmatpush.bf16.msrb.mxu1 %v3630_v0 }
 0x15b   :  { %1900 = vmatpush.bf16.msrb.mxu1 %v3622_v17 }
 0x15f   :  { %1901 = vmatpush.bf16.msrb.mxu1 %v3614_v49 }
 0x183   :  { %v4702_v51 = vpop.permute.xlu2 %4701 }
 0x184   :  { %v4704_v54 = vunpack.i.h.bf16 %v4702_v51  ;;  %v4703_v55 = vunpack.i.l.bf16 %v4702_v51 }
 0x186   :  { %v605_v57 = vsel %vm603_vm10, %v4703_v55, %v4704_v54 }
 0x187   :  { %v656_v60 = vmax.f32 %v5201_v14, %v605_v57 }
 0x189   :  { %v670_v11 = vmax.f32 %v656_v60, 0.0 }
 0x18b   :  { %v4717_v53 = vpop.permute.xlu2 %4716 }
 0x18c   :  { %v4719_v56 = vunpack.i.h.bf16 %v4717_v53  ;;  %v4718_v62 = vunpack.i.l.bf16 %v4717_v53 }
 0x18e   :  { %v648_v21 = vsel %vm646_vm9, %v4704_v54, %v4719_v56 }
 0x18f   :  { %v657_v59 = vmax.f32 %v5203_v15, %v648_v21 }
 0x191   :  { %v671_v5 = vmax.f32 %v657_v59, 0.0 }
 0x193   :  { %v4697_v61 = vpop.permute.xlu1 %4696  ;;  %v5331_v18 = vpack.c.bf16 %v671_v5, %v670_v11 }
 0x194   :  { %v4699_v63 = vunpack.i.h.bf16 %v4697_v61  ;;  %v4698_v4 = vunpack.i.l.bf16 %v4697_v61 }
 0x195   :  { %v698_v14 = vunpack.c.l.b16 %v5331_v18  ;;  %v699_v45 = vunpack.c.h.b16 %v5331_v18  ;;  %v4472_v18 = vld [vmem:[%s7303_s3 + $0x1d4] sm:$0xf0] }
 0x196   :  { %v647_v7 = vsel %vm646_vm9, %v4699_v63, %v4718_v62  ;;  %v604_v37 = vsel %vm603_vm10, %v4698_v4, %v4699_v63 }
 0x197   :  { %v655_v12 = vmax.f32 %v5192_v58, %v647_v7  ;;  %v654_v13 = vmax.f32 %v5189_v2, %v604_v37 }
 0x199   :  { %v669_v19 = vmax.f32 %v655_v12, 0.0  ;;  %v668_v15 = vmax.f32 %v654_v13, 0.0 }
 0x19b   :  { %v682_v42 = vpack.c.bf16 %v669_v19, %v668_v15 }
 0x19d   :  { %v5334_v20 = vunpack.c.l.b16 %v682_v42  ;;  %v5348_v1 = vunpack.c.h.b16 %v682_v42 }
 0x19f   :  { %v5339_v24 = vpack.c.b16 %v698_v14, %v5334_v20 }
 0x1a1   :  { %1902 = vmatmul.bf16.vlgmr.msrb.gmra.mxu1 %v5339_v24 }
 0x1a3   :  { %v4707_v39 = vpop.permute.xlu0 %4706  ;;  %v4732_v2 = vpop.permute.xlu2 %4731 }
 0x1a4   :  { %v4709_v58 = vunpack.i.h.bf16 %v4707_v39  ;;  %v4708_v22 = vunpack.i.l.bf16 %v4707_v39  ;;  %v4734_v48 = vunpack.i.h.bf16 %v4732_v2  ;;  %v4733_v30 = vunpack.i.l.bf16 %v4732_v2 }
 0x1a6   :  { %v606_v26 = vsel %vm603_vm10, %v4708_v22, %v4709_v58 }
 0x1a7   :  { %v658_v29 = vmax.f32 %v5212_v31, %v606_v26  ;;  %v609_v31 = vsel %vm603_vm10, %v4733_v30, %v4734_v48 }
 0x1a8   :  { %v664_v49 = vmax.f32 %v5254_v16, %v609_v31 }
 0x1a9   :  { %v672_v0 = vmax.f32 %v658_v29, 0.0 }
 0x1aa   :  { %v678_v12 = vmax.f32 %v664_v49, 0.0 }
 0x1ab   :  { %v4722_v6 = vpop.permute.xlu0 %4721  ;;  %v4712_v28 = vpop.permute.xlu1 %4711 }
 0x1ac   :  { %v4724_v3 = vunpack.i.h.bf16 %v4722_v6  ;;  %v4723_v52 = vunpack.i.l.bf16 %v4722_v6  ;;  %v4714_v34 = vunpack.i.h.bf16 %v4712_v28  ;;  %v4713_v43 = vunpack.i.l.bf16 %v4712_v28 }
 0x1ae   :  { %v649_v35 = vsel %vm646_vm9, %v4709_v58, %v4723_v52  ;;  %v650_v38 = vsel %vm646_vm9, %v4714_v34, %v4724_v3  ;;  %v607_v40 = vsel %vm603_vm10, %v4713_v43, %v4714_v34  ;;  %v745_v58 = vrot.slane %v5339_v24, 2  ;;  %v638_v3 = vpop.permute.xlu2 %637 }
 0x1af   :  { %v659_v36 = vmax.f32 %v5214_v33, %v649_v35  ;;  %v661_v41 = vmax.f32 %v5234_v50, %v650_v38  ;;  %v660_v44 = vmax.f32 %v5231_v9, %v607_v40  ;;  %v5357_v33 = vpack.c.b16 %v699_v45, %v5348_v1 }
 0x1b1   :  { %v673_v32 = vmax.f32 %v659_v36, 0.0  ;;  %v675_v17 = vmax.f32 %v661_v41, 0.0  ;;  %v674_v46 = vmax.f32 %v660_v44, 0.0  ;;  %v722_v13 = vrot.slane %v5357_v33, 1 }
 0x1b3   :  { %v5354_v47 = vpack.c.bf16 %v673_v32, %v672_v0  ;;  %v5360_v51 = vpack.c.bf16 %v675_v17, %v674_v46  ;;  %v4727_v50 = vpop.permute.xlu1 %4726  ;;  %v719_v17 = vrot.slane %v5339_v24, 1 }
 0x1b4   :  { %v4729_v54 = vunpack.i.h.bf16 %v4727_v50  ;;  %v4728_v55 = vunpack.i.l.bf16 %v4727_v50 }
 0x1b5   :  { %v700_v9 = vunpack.c.l.b16 %v5354_v47  ;;  %v701_v53 = vunpack.c.h.b16 %v5354_v47  ;;  %v4737_v56 = vpop.permute.xlu0 %4736  ;;  %v702_v21 = vunpack.c.l.b16 %v5360_v51  ;;  %v703_v57 = vunpack.c.h.b16 %v5360_v51  ;;  %v4470_v51 = vld [vmem:[%s7303_s3 + $0x1c4] sm:$0xf0] }
 0x1b6   :  { %v4739_v59 = vunpack.i.h.bf16 %v4737_v56  ;;  %v4738_v60 = vunpack.i.l.bf16 %v4737_v56  ;;  %v608_v61 = vsel %vm603_vm10, %v4728_v55, %v4729_v54 }
 0x1b7   :  { %v5367_v62 = vpack.c.b16 %v701_v53, %v699_v45  ;;  %v5369_v16 = vpack.c.b16 %v703_v57, %v701_v53  ;;  %v662_v63 = vmax.f32 %v5246_v8, %v608_v61  ;;  %v5380_v11 = vpack.c.b16 %v702_v21, %v700_v9 }
 0x1b8   :  { %v651_v4 = vsel %vm646_vm9, %v4729_v54, %v4738_v60  ;;  %v652_v5 = vsel %vm646_vm9, %v4734_v48, %v4739_v59 }
 0x1b9   :  { %v663_v7 = vmax.f32 %v5248_v10, %v651_v4  ;;  %v665_v37 = vmax.f32 %v5271_v27, %v652_v5  ;;  %v723_v19 = vrot.slane %v5369_v16, 1  ;;  %v676_v8 = vmax.f32 %v662_v63, 0.0  ;;  %1907 = vmatmul.bf16.gmra.mxu1 %v5380_v11 }
 0x1ba   :  { %v746_v10 = vrot.slane %v5380_v11, 2  ;;  %v720_v41 = vrot.slane %v5380_v11, 1  ;;  %v5444_v5 = vpack.c.b16 %v5334_v20, %v5334_v20 }
 0x1bb   :  { %v677_v15 = vmax.f32 %v663_v7, 0.0  ;;  %v679_v42 = vmax.f32 %v665_v37, 0.0  ;;  %v4742_v39 = vpop.permute.xlu1 %4741  ;;  %v724_v27 = vsel %vm50_vm1, %v722_v13, %v723_v19  ;;  %v5448_v7 = vpack.c.b16 %v5348_v1, %v5348_v1  ;;  %v3861_v37 = vld [vmem:[%s7303_s3 + $0x1f0] sm:$0xf] }
 0x1bc   :  { %v4744_v26 = vunpack.i.h.bf16 %v4742_v39  ;;  %v4743_v6 = vunpack.i.l.bf16 %v4742_v39  ;;  %806 = vrot.lane.b32.xlu0 %v724_v27, %s4818_s25  ;;  %v747_v48 = vsel %vm67_vm3, %v745_v58, %v746_v10  ;;  %v759_v1 = vrot.slane %v5444_v5, 6  ;;  %v4474_v39 = vld [vmem:[%s7303_s3 + $0x1e4] sm:$0xf0] }
 0x1bd   :  { %v5388_v22 = vpack.c.bf16 %v677_v15, %v676_v8  ;;  %v5390_v2 = vpack.c.bf16 %v679_v42, %v678_v12  ;;  %831 = vrot.lane.b32.xlu1 %v747_v48, %s4822_s17  ;;  %v4476_v12 = vld [vmem:[%s7303_s3 + $0x1f4] sm:$0xf0]  ;;  %v736_v20 = vrot.slane %v5448_v7, 5  ;;  %v773_v58 = vrot.slane %v5369_v16, 3 }
 0x1be   :  { %v653_v34 = vsel %vm646_vm9, %v4744_v26, %v638_v3  ;;  %v610_v43 = vsel %vm603_vm10, %v4743_v6, %v4744_v26  ;;  %v3862_v13 = vor.u32 %v4476_v12, %v3861_v37  ;;  %v772_v26 = vrot.slane %v5357_v33, 3  ;;  %v3829_v37 = vld [vmem:[%s7303_s3 + $0x1b0] sm:$0xf]  ;;  %v4468_v12 = vld [vmem:[%s7303_s3 + $0x1b4] sm:$0xf0] }
 0x1bf   :  { %v704_v52 = vunpack.c.l.b16 %v5388_v22  ;;  %v705_v28 = vunpack.c.h.b16 %v5388_v22  ;;  %v706_v29 = vunpack.c.l.b16 %v5390_v2  ;;  %v707_v30 = vunpack.c.h.b16 %v5390_v2 }
 0x1c0   :  { %v667_v38 = vmax.f32 %v5269_v25, %v653_v34  ;;  %v666_v40 = vmax.f32 %v5267_v23, %v610_v43  ;;  %v721_v25 = vsel %vm50_vm1, %v719_v17, %v720_v41  ;;  %1978 = vmatpush.bf16.msrb.mxu2 %v3862_v13  ;;  %v735_v6 = vrot.slane %v5444_v5, 5  ;;  %v4458_v17 = vld [vmem:[%s7303_s3 + $0x164] sm:$0xf0]  ;;  %v3725_v13 = vld [vmem:[%s7303_s3 + $0xe0] sm:$0xf] }
 0x1c1   :  { %v5405_v35 = vpack.c.b16 %v706_v29, %v704_v52  ;;  %v5407_v36 = vpack.c.b16 %v707_v30, %v705_v28  ;;  %v5412_v44 = vpack.c.b16 %v705_v28, %v703_v57  ;;  %v792_v48 = vpack.c.b16 %v700_v9, %v698_v14  ;;  %v3797_v14 = vld [vmem:[%s7303_s3 + $0x170] sm:$0xf]  ;;  %v4460_v9 = vld [vmem:[%s7303_s3 + $0x174] sm:$0xf0] }
 0x1c2   :  { %v681_v0 = vmax.f32 %v667_v38, 0.0  ;;  %v680_v31 = vmax.f32 %v666_v40, 0.0  ;;  %v774_v3 = vsel %vm84_vm0, %v772_v26, %v773_v58  ;;  %v749_v34 = vrot.slane %v5369_v16, 2  ;;  %v3773_v26 = vld [vmem:[%s7303_s3 + $0x140] sm:$0xf] }
 0x1c3   :  { %v727_v32 = vrot.slane %v5407_v36, 1  ;;  %v751_v45 = vrot.slane %v5405_v35, 2  ;;  %v725_v57 = vrot.slane %v5405_v35, 1  ;;  %v777_v43 = vrot.slane %v5407_v36, 3 }
 0x1c4   :  { %v688_v46 = vpack.c.bf16 %v681_v0, %v680_v31  ;;  %v3798_v38 = vor.u32 %v4460_v9, %v3797_v14  ;;  %v748_v40 = vrot.slane %v5357_v33, 2  ;;  %v784_v2 = vrot.slane %v5448_v7, 7  ;;  %v3813_v9 = vld [vmem:[%s7303_s3 + $0x190] sm:$0xf] }
 0x1c5   :  { %v728_v49 = vsel %vm50_vm1, %v723_v19, %v727_v32  ;;  %v752_v50 = vsel %vm67_vm3, %v746_v10, %v751_v45  ;;  %804 = vrot.lane.b32.xlu1 %v721_v25, %s4818_s25  ;;  %v726_v4 = vsel %vm50_vm1, %v720_v41, %v725_v57  ;;  %v3853_v10 = vld [vmem:[%s7303_s3 + $0x1e0] sm:$0xf]  ;;  %v794_v41 = vpack.c.b16 %v704_v52, %v702_v21  ;;  %v3733_v21 = vld [vmem:[%s7303_s3 + $0xf0] sm:$0xf]  ;;  %v4444_v52 = vld [vmem:[%s7303_s3 + $0xf4] sm:$0xf0] }
 0x1c6   :  { %810 = vrot.lane.b32.xlu2 %v728_v49, %s4818_s25  ;;  %835 = vrot.lane.b32.xlu0 %v752_v50, %s4822_s17  ;;  %v5422_v23 = vunpack.c.l.b16 %v688_v46  ;;  %v709_v53 = vunpack.c.h.b16 %v688_v46  ;;  %v3854_v27 = vor.u32 %v4474_v39, %v3853_v10  ;;  %v750_v0 = vsel %vm67_vm3, %v748_v40, %v749_v34  ;;  %v3821_v10 = vld [vmem:[%s7303_s3 + $0x1a0] sm:$0xf]  ;;  %v4466_v39 = vld [vmem:[%s7303_s3 + $0x1a4] sm:$0xf0] }
 0x1c7   :  { %1950 = vmatpush.bf16.msrb.mxu0 %v3798_v38  ;;  %v778_v31 = vsel %vm84_vm0, %v773_v58, %v777_v43  ;;  %v753_v46 = vrot.slane %v5407_v36, 2  ;;  %v770_v49 = vrot.slane %v5380_v11, 3  ;;  %v3734_v50 = vor.u32 %v4444_v52, %v3733_v21  ;;  %v4440_v58 = vld [vmem:[%s7303_s3 + $0xd4] sm:$0xf0]  ;;  %v3925_v38 = vld [vmem:[%s7303_s3 + $0x270] sm:$0xf] }
 0x1c8   :  { %v5427_v54 = vpack.c.b16 %v5422_v23, %v5422_v23  ;;  %v5429_v55 = vpack.c.b16 %v709_v53, %v709_v53  ;;  %v5431_v56 = vpack.c.b16 %v709_v53, %v707_v30  ;;  %1979 = vmatpush.bf16.msrb.mxu2 %v3854_v27  ;;  %v3845_v30 = vld [vmem:[%s7303_s3 + $0x1d0] sm:$0xf]  ;;  %v4492_v40 = vld [vmem:[%s7303_s3 + $0x274] sm:$0xf0]  ;;  %v783_v52 = vrot.slane %v5444_v5, 7 }
 0x1c9   :  { %1912 = vmatmul.bf16.gmra.mxu1 %v5405_v35  ;;  %v3846_v47 = vor.u32 %v4472_v18, %v3845_v30  ;;  %1922 = vmatpush.bf16.msrb.mxu3 %v3734_v50  ;;  %v3717_v27 = vld [vmem:[%s7303_s3 + $0xd0] sm:$0xf]  ;;  %v3805_v50 = vld [vmem:[%s7303_s3 + $0x180] sm:$0xf] }
 0x1ca   :  { %v731_v59 = vrot.slane %v5429_v55, 1  ;;  %v755_v60 = vrot.slane %v5427_v54, 2  ;;  %v729_v19 = vrot.slane %v5427_v54, 1  ;;  %v781_v53 = vrot.slane %v5429_v55, 3 }
 0x1cc   :  { %v732_v61 = vsel %vm50_vm1, %v727_v32, %v731_v59  ;;  %v756_v63 = vsel %vm67_vm3, %v751_v45, %v755_v60  ;;  %v743_v8 = vsel %vm737_vm11, %v731_v59, %v736_v20  ;;  %v764_v15 = vsel %vm761_vm12, %v755_v60, %v759_v1  ;;  %1980 = vmatpush.bf16.msrb.mxu2 %v3846_v47  ;;  %v3837_v32 = vld [vmem:[%s7303_s3 + $0x1c0] sm:$0xf]  ;;  %v4442_v20 = vld [vmem:[%s7303_s3 + $0xe4] sm:$0xf0]  ;;  %v3781_v1 = vld [vmem:[%s7303_s3 + $0x150] sm:$0xf] }
 0x1cd   :  { %808 = vrot.lane.b32.xlu1 %v726_v4, %s4818_s25  ;;  %v730_v42 = vsel %vm50_vm1, %v725_v57, %v729_v19  ;;  %v740_v28 = vsel %vm737_vm11, %v729_v19, %v735_v6  ;;  %v3838_v22 = vor.u32 %v4470_v51, %v3837_v32  ;;  %v3789_v45 = vld [vmem:[%s7303_s3 + $0x160] sm:$0xf]  ;;  %v769_v57 = vrot.slane %v5339_v24, 3  ;;  %v4454_v6 = vld [vmem:[%s7303_s3 + $0x144] sm:$0xf0] }
 0x1ce   :  { %814 = vrot.lane.b32.xlu2 %v732_v61, %s4818_s25  ;;  %839 = vrot.lane.b32.xlu0 %v756_v63, %s4822_s17  ;;  %v3790_v25 = vor.u32 %v4458_v17, %v3789_v45  ;;  %v754_v59 = vsel %vm67_vm3, %v749_v34, %v753_v46  ;;  %v782_v61 = vsel %vm84_vm0, %v777_v43, %v781_v53  ;;  %v757_v63 = vrot.slane %v5429_v55, 2  ;;  %v4464_v34 = vld [vmem:[%s7303_s3 + $0x194] sm:$0xf0]  ;;  %v3765_v32 = vld [vmem:[%s7303_s3 + $0x130] sm:$0xf] }
 0x1cf   :  { %v771_v60 = vsel %vm84_vm0, %v769_v57, %v770_v49  ;;  %v775_v4 = vrot.slane %v5405_v35, 3  ;;  %v3830_v19 = vor.u32 %v4468_v12, %v3829_v37  ;;  %v3774_v30 = vor.u32 %v4454_v6, %v3773_v26  ;;  %v4452_v51 = vld [vmem:[%s7303_s3 + $0x134] sm:$0xf0]  ;;  %v4450_v37 = vld [vmem:[%s7303_s3 + $0x124] sm:$0xf0] }
 0x1d0   :  { %1981 = vmatpush.bf16.msrb.mxu2 %v3838_v22  ;;  %1951 = vmatpush.bf16.msrb.mxu0 %v3790_v25  ;;  %v758_v14 = vsel %vm67_vm3, %v753_v46, %v757_v63  ;;  %v779_v47 = vrot.slane %v5427_v54, 3  ;;  %v3814_v43 = vor.u32 %v4464_v34, %v3813_v9  ;;  %v3766_v22 = vor.u32 %v4452_v51, %v3765_v32  ;;  %v4436_v57 = vld [vmem:[%s7303_s3 + $0xb4] sm:$0xf0]  ;;  %v3693_v12 = vld [vmem:[%s7303_s3 + $0xa0] sm:$0xf] }
 0x1d1   :  { %v776_v18 = vsel %vm84_vm0, %v770_v49, %v775_v4  ;;  %v760_v45 = vrot.slane %v5448_v7, 6  ;;  %v4490_v49 = vld [vmem:[%s7303_s3 + $0x264] sm:$0xf0]  ;;  %v4448_v26 = vld [vmem:[%s7303_s3 + $0x114] sm:$0xf0]  ;;  %vm1881_vm1 = vcmask 392192  }
 0x1d2   :  { %v788_v17 = vsel %vm785_vm13, %v779_v47, %v783_v52  ;;  %v3893_v6 = vld [vmem:[%s7303_s3 + $0x230] sm:$0xf]  ;;  %v4482_v9 = vld [vmem:[%s7303_s3 + $0x224] sm:$0xf0]  ;;  %v4109_v34 = vld [vmem:[%s7303_s3 + $0x3e0] sm:$0xf] }
 0x1d3   :  { %v767_v46 = vsel %vm761_vm12, %v757_v63, %v760_v45  ;;  %v4488_v63 = vld [vmem:[%s7303_s3 + $0x254] sm:$0xf0]  ;;  %v3869_v51 = vld [vmem:[%s7303_s3 + $0x200] sm:$0xf] }
 0x1d4   :  { %1982 = vmatpush.bf16.msrb.mxu2 %v3830_v19  ;;  %v4536_v45 = vld [vmem:[%s7303_s3 + $0x3d4] sm:$0xf0] }
 0x1d5   :  { %812 = vrot.lane.b32.xlu1 %v730_v42, %s4818_s25 }
 0x1d6   :  { %818 = vrot.lane.b32.xlu2 %v743_v8, %s4818_s25  ;;  %843 = vrot.lane.b32.xlu0 %v764_v15, %s4822_s17  ;;  %v4456_v8 = vld [vmem:[%s7303_s3 + $0x154] sm:$0xf0]  ;;  %v3726_v15 = vor.u32 %v4442_v20, %v3725_v13  ;;  %v4434_v13 = vld [vmem:[%s7303_s3 + $0xa4] sm:$0xf0] }
 0x1d7   :  { %v3782_v42 = vor.u32 %v4456_v8, %v3781_v1  ;;  %v3694_v1 = vor.u32 %v4434_v13, %v3693_v12  ;;  %v3901_v8 = vld [vmem:[%s7303_s3 + $0x240] sm:$0xf] }
 0x1d8   :  { %1923 = vmatpush.bf16.msrb.mxu3 %v3726_v15  ;;  %v4486_v15 = vld [vmem:[%s7303_s3 + $0x244] sm:$0xf0] }
 0x1d9   :  { %1917 = vmatmul.bf16.gmra.mxu1 %v5427_v54  ;;  %1952 = vmatpush.bf16.msrb.mxu0 %v3782_v42  ;;  %v3902_v42 = vor.u32 %v4486_v15, %v3901_v8  ;;  %v4532_v8 = vld [vmem:[%s7303_s3 + $0x3b4] sm:$0xf0] }
 0x1dd   :  { %816 = vrot.lane.b32.xlu1 %v740_v28, %s4818_s25  ;;  %v3718_v28 = vor.u32 %v4440_v58, %v3717_v27  ;;  %1953 = vmatpush.bf16.msrb.mxu0 %v3774_v30  ;;  %v3749_v27 = vld [vmem:[%s7303_s3 + $0x110] sm:$0xf]  ;;  %v3677_v30 = vld [vmem:[%s7303_s3 + $0x80] sm:$0xf] }
 0x1de   :  { %860 = vrot.lane.b32.xlu2 %v774_v3, %s4823_s29  ;;  %883 = vrot.lane.b32.xlu0 %v792_v48, %s4824_s2  ;;  %v3822_v48 = vor.u32 %v4466_v39, %v3821_v10  ;;  %v796_v3 = vpack.c.b16 %v5422_v23, %v706_v29  ;;  %v791_v29 = vsel %vm785_vm13, %v781_v53, %v784_v2  ;;  %v4462_v53 = vld [vmem:[%s7303_s3 + $0x184] sm:$0xf0]  ;;  %v3685_v10 = vld [vmem:[%s7303_s3 + $0x90] sm:$0xf] }
 0x1df   :  { %1924 = vmatpush.bf16.msrb.mxu3 %v3718_v28  ;;  %v780_v23 = vsel %vm84_vm0, %v775_v4, %v779_v47  ;;  %v3757_v4 = vld [vmem:[%s7303_s3 + $0x120] sm:$0xf]  ;;  %v4432_v39 = vld [vmem:[%s7303_s3 + $0x94] sm:$0xf0]  ;;  %v4446_v2 = vld [vmem:[%s7303_s3 + $0x104] sm:$0xf0] }
 0x1e0   :  { %1983 = vmatpush.bf16.msrb.mxu2 %v3822_v48  ;;  %v3758_v20 = vor.u32 %v4450_v37, %v3757_v4  ;;  %v3686_v58 = vor.u32 %v4432_v39, %v3685_v10  ;;  %v4484_v48 = vld [vmem:[%s7303_s3 + $0x234] sm:$0xf0]  ;;  %v4522_v4 = vld [vmem:[%s7303_s3 + $0x364] sm:$0xf0]  ;;  %vm874_vm0 = vcmask 654336  }
 0x1e1   :  { %1954 = vmatpush.bf16.msrb.mxu0 %v3766_v22  ;;  %v3894_v28 = vor.u32 %v4484_v48, %v3893_v6  ;;  %v4101_v22 = vld [vmem:[%s7303_s3 + $0x3d0] sm:$0xf]  ;;  %v4520_v39 = vld [vmem:[%s7303_s3 + $0x354] sm:$0xf0] }
 0x1e4   :  { %1984 = vmatpush.bf16.msrb.mxu2 %v3814_v43 }
 0x1e5   :  { %887 = vrot.lane.b32.xlu1 %v794_v41, %s4824_s2  ;;  %v3709_v41 = vld [vmem:[%s7303_s3 + $0xc0] sm:$0xf]  ;;  %1955 = vmatpush.bf16.msrb.mxu0 %v3758_v20 }
 0x1e6   :  { %833 = vrot.lane.b32.xlu2 %v750_v0, %s4822_s17  ;;  %864 = vrot.lane.b32.xlu0 %v778_v31, %s4823_s29  ;;  %v3926_v0 = vor.u32 %v4492_v40, %v3925_v38  ;;  %v4438_v31 = vld [vmem:[%s7303_s3 + $0xc4] sm:$0xf0] }
 0x1e7   :  { %v3710_v21 = vor.u32 %v4438_v31, %v3709_v41  ;;  %v4538_v38 = vld [vmem:[%s7303_s3 + $0x3e4] sm:$0xf0]  ;;  %v3877_v41 = vld [vmem:[%s7303_s3 + $0x210] sm:$0xf] }
 0x1e8   :  { %2006 = vmatpush.bf16.msra.mxu1 %v3926_v0  ;;  %v4110_v40 = vor.u32 %v4538_v38, %v4109_v34  ;;  %v4480_v0 = vld [vmem:[%s7303_s3 + $0x214] sm:$0xf0] }
 0x1e9   :  { %1925 = vmatpush.bf16.msrb.mxu3 %v3710_v21  ;;  %v3878_v31 = vor.u32 %v4480_v0, %v3877_v41  ;;  %v4478_v21 = vld [vmem:[%s7303_s3 + $0x204] sm:$0xf0]  ;;  %v4069_v0 = vld [vmem:[%s7303_s3 + $0x390] sm:$0xf] }
 0x1ea   :  { %v3870_v52 = vor.u32 %v4478_v21, %v3869_v51 }
 0x1ed   :  { %868 = vrot.lane.b32.xlu1 %v782_v61, %s4823_s29  ;;  %v3909_v61 = vld [vmem:[%s7303_s3 + $0x250] sm:$0xf] }
 0x1ee   :  { %837 = vrot.lane.b32.xlu0 %v754_v59, %s4822_s17  ;;  %858 = vrot.lane.b32.xlu2 %v771_v60, %s4823_s29  ;;  %v3806_v59 = vor.u32 %v4462_v53, %v3805_v50  ;;  %v3910_v19 = vor.u32 %v4488_v63, %v3909_v61  ;;  %v4093_v53 = vld [vmem:[%s7303_s3 + $0x3c0] sm:$0xf] }
 0x1ef   :  { %v4045_v61 = vld [vmem:[%s7303_s3 + $0x360] sm:$0xf] }
 0x1f0   :  { %1985 = vmatpush.bf16.msrb.mxu2 %v3806_v59  ;;  %v3989_v59 = vld [vmem:[%s7303_s3 + $0x2f0] sm:$0xf]  ;;  %v4046_v37 = vor.u32 %v4522_v4, %v4045_v61 }
 0x1f1   :  { %v3957_v4 = vld [vmem:[%s7303_s3 + $0x2b0] sm:$0xf] }
 0x1f5   :  { %841 = vrot.lane.b32.xlu1 %v758_v14, %s4822_s17  ;;  %v3741_v14 = vld [vmem:[%s7303_s3 + $0x100] sm:$0xf] }
 0x1f6   :  { %862 = vrot.lane.b32.xlu0 %v776_v18, %s4823_s29  ;;  %891 = vrot.lane.b32.xlu2 %v796_v3, %s4824_s2  ;;  %v3750_v3 = vor.u32 %v4448_v26, %v3749_v27  ;;  %v4430_v18 = vld [vmem:[%s7303_s3 + $0x84] sm:$0xf0] }
 0x1f7   :  { %v3678_v47 = vor.u32 %v4430_v18, %v3677_v30 }
 0x1f8   :  { %1956 = vmatpush.bf16.msrb.mxu0 %v3750_v3  ;;  %v4077_v3 = vld [vmem:[%s7303_s3 + $0x3a0] sm:$0xf] }
 0x1fd   :  { %866 = vrot.lane.b32.xlu1 %v780_v23, %s4823_s29  ;;  %v3885_v23 = vld [vmem:[%s7303_s3 + $0x220] sm:$0xf] }
 0x1fe   :  { %895 = vrot.lane.b32.xlu0 %v5444_v5, %s4824_s2  ;;  %872 = vrot.lane.b32.xlu2 %v791_v29, %s4823_s29  ;;  %v3917_v5 = vld [vmem:[%s7303_s3 + $0x260] sm:$0xf]  ;;  %v3742_v29 = vor.u32 %v4446_v2, %v3741_v14  ;;  %v3886_v43 = vor.u32 %v4482_v9, %v3885_v23  ;;  %v4504_v2 = vld [vmem:[%s7303_s3 + $0x2d4] sm:$0xf0] }
 0x1ff   :  { %v3918_v25 = vor.u32 %v4490_v49, %v3917_v5  ;;  %v4524_v5 = vld [vmem:[%s7303_s3 + $0x374] sm:$0xf0]  ;;  %v4518_v23 = vld [vmem:[%s7303_s3 + $0x344] sm:$0xf0] }
 0x200   :  { %1957 = vmatpush.bf16.msrb.mxu0 %v3742_v29 }
 0x201   :  { %2007 = vmatpush.bf16.msra.mxu1 %v3918_v25 }
 0x205   :  { %885 = vrot.lane.b32.xlu1 %v5367_v62, %s4824_s2  ;;  %v3701_v62 = vld [vmem:[%s7303_s3 + $0xb0] sm:$0xf]  ;;  %2008 = vmatpush.bf16.msra.mxu1 %v3910_v19 }
 0x206   :  { %870 = vrot.lane.b32.xlu0 %v788_v17, %s4823_s29  ;;  %845 = vrot.lane.b32.xlu2 %v767_v46, %s4822_s17  ;;  %v3702_v60 = vor.u32 %v4436_v57, %v3701_v62  ;;  %v4102_v17 = vor.u32 %v4536_v45, %v4101_v22  ;;  %v4053_v46 = vld [vmem:[%s7303_s3 + $0x370] sm:$0xf]  ;;  %v4534_v62 = vld [vmem:[%s7303_s3 + $0x3c4] sm:$0xf0] }
 0x207   :  { %v4054_v49 = vor.u32 %v4524_v5, %v4053_v46  ;;  %v4094_v57 = vor.u32 %v4534_v62, %v4093_v53  ;;  %v3965_v22 = vld [vmem:[%s7303_s3 + $0x2c0] sm:$0xf]  ;;  %v4021_v45 = vld [vmem:[%s7303_s3 + $0x330] sm:$0xf]  ;;  %v4516_v46 = vld [vmem:[%s7303_s3 + $0x334] sm:$0xf0] }
 0x208   :  { %1926 = vmatpush.bf16.msrb.mxu3 %v3702_v60  ;;  %v4508_v60 = vld [vmem:[%s7303_s3 + $0x2f4] sm:$0xf0]  ;;  %v4022_v5 = vor.u32 %v4516_v46, %v4021_v45  ;;  %v4173_v46 = vld [vmem:[%s7303_s3 + $0x460] sm:$0xf] }
 0x209   :  { %2009 = vmatpush.bf16.msra.mxu1 %v3902_v42  ;;  %2062 = vmatpush.bf16.msra.mxu0 %v4054_v49  ;;  %v3990_v63 = vor.u32 %v4508_v60, %v3989_v59  ;;  %v3981_v42 = vld [vmem:[%s7303_s3 + $0x2e0] sm:$0xf]  ;;  %v4526_v59 = vld [vmem:[%s7303_s3 + $0x384] sm:$0xf0] }
 0x20c   :  { %1927 = vmatpush.bf16.msrb.mxu3 %v3694_v1  ;;  %v4085_v1 = vld [vmem:[%s7303_s3 + $0x3b0] sm:$0xf] }
 0x20d   :  { %897 = vrot.lane.b32.xlu1 %v5448_v7, %s4824_s2  ;;  %2010 = vmatpush.bf16.msra.mxu1 %v3894_v28  ;;  %v4530_v28 = vld [vmem:[%s7303_s3 + $0x3a4] sm:$0xf0] }
 0x20e   :  { %893 = vrot.lane.b32.xlu0 %v5431_v56, %s4824_s2  ;;  %889 = vrot.lane.b32.xlu2 %v5412_v44, %s4824_s2  ;;  %v4117_v56 = vld [vmem:[%s7303_s3 + $0x3f0] sm:$0xf]  ;;  %v4540_v44 = vld [vmem:[%s7303_s3 + $0x3f4] sm:$0xf0]  ;;  %v4078_v14 = vor.u32 %v4530_v28, %v4077_v3 }
 0x20f   :  { %v4118_v7 = vor.u32 %v4540_v44, %v4117_v56  ;;  %2063 = vmatpush.bf16.msra.mxu0 %v4046_v37  ;;  %v4086_v56 = vor.u32 %v4532_v8, %v4085_v1  ;;  %v4506_v44 = vld [vmem:[%s7303_s3 + $0x2e4] sm:$0xf0]  ;;  %v4500_v37 = vld [vmem:[%s7303_s3 + $0x2b4] sm:$0xf0] }
 0x210   :  { %1928 = vmatpush.bf16.msrb.mxu3 %v3686_v58  ;;  %v3982_v10 = vor.u32 %v4506_v44, %v3981_v42  ;;  %v4498_v1 = vld [vmem:[%s7303_s3 + $0x2a4] sm:$0xf0]  ;;  %v4496_v28 = vld [vmem:[%s7303_s3 + $0x294] sm:$0xf0] }
 0x211   :  { %2090 = vmatpush.bf16.msra.mxu2 %v4118_v7  ;;  %2011 = vmatpush.bf16.msra.mxu1 %v3886_v43  ;;  %v4037_v7 = vld [vmem:[%s7303_s3 + $0x350] sm:$0xf] }
 0x212   :  { %v4038_v27 = vor.u32 %v4520_v39, %v4037_v7  ;;  %v4443_v39 = vld [vmem:[%s7303_s3 + $0xf4] sm:$0xf] }
 0x214   :  { %1929 = vmatpush.bf16.msrb.mxu3 %v3678_v47  ;;  %2064 = vmatpush.bf16.msra.mxu0 %v4038_v27  ;;  %v3973_v47 = vld [vmem:[%s7303_s3 + $0x2d0] sm:$0xf]  ;;  %v3735_v27 = vld [vmem:[%s7303_s3 + $0xf8] sm:$0xf0] }
 0x215   :  { %2091 = vmatpush.bf16.msra.mxu2 %v4110_v40  ;;  %2012 = vmatpush.bf16.msra.mxu1 %v3878_v31  ;;  %v3974_v29 = vor.u32 %v4504_v2, %v3973_v47  ;;  %v4528_v31 = vld [vmem:[%s7303_s3 + $0x394] sm:$0xf0]  ;;  %v3738_v3 = vor.u32 %v4443_v39, %v3735_v27 }
 0x216   :  { %v4070_v21 = vor.u32 %v4528_v31, %v4069_v0  ;;  %v4512_v47 = vld [vmem:[%s7303_s3 + $0x314] sm:$0xf0]  ;;  %v4494_v0 = vld [vmem:[%s7303_s3 + $0x284] sm:$0xf0]  ;;  %v3997_v31 = vld [vmem:[%s7303_s3 + $0x300] sm:$0xf] }
 0x218   :  { %2034 = vmatpush.bf16.msra.mxu3 %v3990_v63 }
 0x219   :  { %2013 = vmatpush.bf16.msra.mxu1 %v3870_v52  ;;  %2092 = vmatpush.bf16.msra.mxu2 %v4102_v17  ;;  %v4502_v52 = vld [vmem:[%s7303_s3 + $0x2c4] sm:$0xf0] }
 0x21a   :  { %v3966_v17 = vor.u32 %v4502_v52, %v3965_v22 }
 0x21c   :  { %2035 = vmatpush.bf16.msra.mxu3 %v3982_v10 }
 0x21d   :  { %2093 = vmatpush.bf16.msra.mxu2 %v4094_v57  ;;  %v4061_v57 = vld [vmem:[%s7303_s3 + $0x380] sm:$0xf] }
 0x21e   :  { %v5745_v50 = vpop.f32.mrf.mxu1  ;;  %v4062_v63 = vor.u32 %v4526_v59, %v4061_v57 }
 0x220   :  { %v5725_v32 = vpop.permute.xlu2 %810  ;;  %2036 = vmatpush.bf16.msra.mxu3 %v3974_v29  ;;  %v4181_v29 = vld [vmem:[%s7303_s3 + $0x470] sm:$0xf] }
 0x221   :  { %2094 = vmatpush.bf16.msra.mxu2 %v4086_v56 }
 0x224   :  { %2037 = vmatpush.bf16.msra.mxu3 %v3966_v17 }
 0x225   :  { %2095 = vmatpush.bf16.msra.mxu2 %v4078_v14  ;;  %v4005_v14 = vld [vmem:[%s7303_s3 + $0x310] sm:$0xf] }
 0x226   :  { %v5767_v13 = vpop.f32.mrf.mxu1 }
 0x228   :  { %v5747_v25 = vpop.permute.xlu2 %814 }
 0x229   :  { %2096 = vmatpush.bf16.msra.mxu2 %v4070_v21  ;;  %v4510_v21 = vld [vmem:[%s7303_s3 + $0x304] sm:$0xf0] }
 0x22a   :  { %v3998_v45 = vor.u32 %v4510_v21, %v3997_v31 }
 0x22d   :  { %2097 = vmatpush.bf16.msra.mxu2 %v4062_v63 }
 0x22e   :  { %v807_v12 = vpop.permute.xlu0 %806 }
 0x22f   :  { %v832_v20 = vpop.permute.xlu1 %831 }
 0x230   :  { %v5769_v19 = vpop.permute.xlu2 %818  ;;  %v5778_v15 = vsel %vm847_vm14, %v807_v12, %v832_v20 }
 0x231   :  { %1986 = vmatmul.bf16.vlgmr.msrb.gmra.mxu2 %v5778_v15 }
 0x232   :  { %2202 = vmatpush.bf16.msrb.mxu2 %v3738_v3  ;;  %v4439_v3 = vld [vmem:[%s7303_s3 + $0xd4] sm:$0xf] }
 0x236   :  { %v5793_v58 = vpop.f32.mrf.mxu1 }
 0x237   :  { %v805_v6 = vpop.permute.xlu1 %804 }
 0x238   :  { %v5795_v26 = vpop.permute.xlu2 %860  ;;  %v5797_v48 = vpop.permute.xlu0 %835  ;;  %v5807_v30 = vsel %vm230_vm8, %v5357_v33, %v805_v6  ;;  %v5810_v18 = vsel %vm230_vm8, %v805_v6, %v807_v12  ;;  %v4029_v33 = vld [vmem:[%s7303_s3 + $0x340] sm:$0xf]  ;;  %v4514_v12 = vld [vmem:[%s7303_s3 + $0x324] sm:$0xf0]  ;;  %v3941_v6 = vld [vmem:[%s7303_s3 + $0x290] sm:$0xf] }
 0x239   :  { %1930 = vmatmul.bf16.vlgmr.msrb.gmra.mxu3 %v5807_v30  ;;  %1958 = vmatmul.bf16.vlgmr.msrb.gmra.mxu0 %v5810_v18  ;;  %v4030_v9 = vor.u32 %v4518_v23, %v4029_v33  ;;  %v5845_v51 = vsel %vm847_vm14, %v5725_v32, %v5797_v48  ;;  %v3942_v2 = vor.u32 %v4496_v28, %v3941_v6  ;;  %v4556_v23 = vld [vmem:[%s7303_s3 + $0x474] sm:$0xf0]  ;;  %v3719_v28 = vld [vmem:[%s7303_s3 + $0xd8] sm:$0xf0] }
 0x23a   :  { %v4006_v33 = vor.u32 %v4512_v47, %v4005_v14  ;;  %v4149_v14 = vld [vmem:[%s7303_s3 + $0x430] sm:$0xf]  ;;  %v3722_v47 = vor.u32 %v4439_v3, %v3719_v28 }
 0x23b   :  { %2065 = vmatpush.bf16.msra.mxu0 %v4030_v9  ;;  %v3933_v9 = vld [vmem:[%s7303_s3 + $0x280] sm:$0xf] }
 0x23c   :  { %v3934_v52 = vor.u32 %v4494_v0, %v3933_v9  ;;  %v4546_v0 = vld [vmem:[%s7303_s3 + $0x424] sm:$0xf0] }
 0x23e   :  { %v5826_v34 = vpop.f32.mrf.mxu1 }
 0x23f   :  { %v809_v38 = vpop.permute.xlu1 %808  ;;  %2066 = vmatpush.bf16.msra.mxu0 %v4022_v5  ;;  %v4554_v5 = vld [vmem:[%s7303_s3 + $0x464] sm:$0xf0] }
 0x240   :  { %v5828_v43 = vpop.permute.xlu2 %833  ;;  %v5834_v41 = vpop.permute.xlu0 %839  ;;  %v5873_v60 = vsel %vm230_vm8, %v5369_v16, %v809_v38  ;;  %v5877_v61 = vsel %vm230_vm8, %v809_v38, %v5725_v32  ;;  %v4013_v16 = vld [vmem:[%s7303_s3 + $0x320] sm:$0xf]  ;;  %v3958_v32 = vor.u32 %v4500_v37, %v3957_v4  ;;  %v4182_v38 = vor.u32 %v4556_v23, %v4181_v29  ;;  %v4441_v37 = vld [vmem:[%s7303_s3 + $0xe4] sm:$0xf] }
 0x241   :  { %v5832_v40 = vsel %vm847_vm14, %v832_v20, %v5828_v43  ;;  %1991 = vmatmul.bf16.gmra.mxu2 %v5845_v51  ;;  %v3949_v20 = vld [vmem:[%s7303_s3 + $0x2a0] sm:$0xf]  ;;  %v4014_v8 = vor.u32 %v4514_v12, %v4013_v16  ;;  %v5908_v10 = vsel %vm847_vm14, %v5747_v25, %v5834_v41  ;;  %v4174_v63 = vor.u32 %v4554_v5, %v4173_v46  ;;  %v4552_v16 = vld [vmem:[%s7303_s3 + $0x454] sm:$0xf0]  ;;  %v4437_v46 = vld [vmem:[%s7303_s3 + $0xc4] sm:$0xf] }
 0x242   :  { %2014 = vmatmul.bf16.vlgmr.msra.gmra.mxu1 %v5832_v40  ;;  %2038 = vmatpush.bf16.msra.mxu3 %v3958_v32  ;;  %v3950_v56 = vor.u32 %v4498_v1, %v3949_v20  ;;  %v4133_v5 = vld [vmem:[%s7303_s3 + $0x410] sm:$0xf] }
 0x243   :  { %2067 = vmatpush.bf16.msra.mxu0 %v4014_v8  ;;  %2118 = vmatpush.bf16.msrb.mxu1 %v4182_v38  ;;  %v4157_v8 = vld [vmem:[%s7303_s3 + $0x440] sm:$0xf] }
 0x244   :  { %v4141_v38 = vld [vmem:[%s7303_s3 + $0x420] sm:$0xf] }
 0x245   :  { %v4142_v31 = vor.u32 %v4546_v0, %v4141_v38  ;;  %v4433_v0 = vld [vmem:[%s7303_s3 + $0xa4] sm:$0xf] }
 0x246   :  { %v5861_v49 = vpop.f32.mrf.mxu1  ;;  %2039 = vmatpush.bf16.msra.mxu3 %v3950_v56  ;;  %v4550_v56 = vld [vmem:[%s7303_s3 + $0x444] sm:$0xf0] }
 0x247   :  { %v813_v53 = vpop.permute.xlu1 %812  ;;  %2068 = vmatpush.bf16.msra.mxu0 %v4006_v33  ;;  %2119 = vmatpush.bf16.msrb.mxu1 %v4174_v63  ;;  %v4158_v6 = vor.u32 %v4550_v56, %v4157_v8  ;;  %v3671_v33 = vld [vmem:[%s7303_s3 + $0x78] sm:$0xf0]  ;;  %v4205_v63 = vld [vmem:[%s7303_s3 + $0x4a0] sm:$0xf]  ;;  %v4542_v8 = vld [vmem:[%s7303_s3 + $0x404] sm:$0xf0] }
 0x248   :  { %v5863_v62 = vpop.permute.xlu0 %843  ;;  %v5959_v57 = vsel %vm230_vm8, %v5407_v36, %v813_v53  ;;  %v5963_v59 = vsel %vm230_vm8, %v813_v53, %v5747_v25  ;;  %v3727_v36 = vld [vmem:[%s7303_s3 + $0xe8] sm:$0xf0]  ;;  %v4165_v25 = vld [vmem:[%s7303_s3 + $0x450] sm:$0xf]  ;;  %v5981_v20 = vpop.permute.xlu2 %858 }
 0x249   :  { %1935 = vmatmul.bf16.gmra.mxu3 %v5873_v60  ;;  %1963 = vmatmul.bf16.gmra.mxu0 %v5877_v61  ;;  %v3730_v53 = vor.u32 %v4441_v37, %v3727_v36  ;;  %v4166_v32 = vor.u32 %v4552_v16, %v4165_v25  ;;  %v5994_v39 = vsel %vm847_vm14, %v5769_v19, %v5863_v62  ;;  %v4562_v37 = vld [vmem:[%s7303_s3 + $0x4a4] sm:$0xf0]  ;;  %v3663_v16 = vld [vmem:[%s7303_s3 + $0x68] sm:$0xf0] }
 0x24a   :  { %2040 = vmatpush.bf16.msra.mxu3 %v3942_v2  ;;  %v4427_v2 = vld [vmem:[%s7303_s3 + $0x74] sm:$0xf]  ;;  %v4206_v25 = vor.u32 %v4562_v37, %v4205_v63  ;;  %v6109_v38 = vsel %vm874_vm0, %v5828_v43, %v5981_v20  ;;  %v3647_v43 = vld [vmem:[%s7303_s3 + $0x48] sm:$0xf0]  ;;  %v3687_v63 = vld [vmem:[%s7303_s3 + $0x98] sm:$0xf0] }
 0x24b   :  { %2069 = vmatpush.bf16.msra.mxu0 %v3998_v45  ;;  %2203 = vmatpush.bf16.msrb.mxu2 %v3730_v53  ;;  %v3674_v9 = vor.u32 %v4427_v2, %v3671_v33  ;;  %v4425_v53 = vld [vmem:[%s7303_s3 + $0x64] sm:$0xf]  ;;  %v4197_v37 = vld [vmem:[%s7303_s3 + $0x490] sm:$0xf] }
 0x24c   :  { %2120 = vmatpush.bf16.msrb.mxu1 %v4166_v32  ;;  %v3666_v32 = vor.u32 %v4425_v53, %v3663_v16  ;;  %v3639_v53 = vld [vmem:[%s7303_s3 + $0x38] sm:$0xf0] }
 0x24e   :  { %v5899_v42 = vpop.f32.mrf.mxu1  ;;  %2041 = vmatpush.bf16.msra.mxu3 %v3934_v52 }
 0x24f   :  { %v5901_v44 = vpop.permute.xlu1 %816  ;;  %2204 = vmatpush.bf16.msrb.mxu2 %v3722_v47  ;;  %2174 = vmatpush.bf16.msrb.mxu0 %v3674_v9  ;;  %v3703_v47 = vld [vmem:[%s7303_s3 + $0xb8] sm:$0xf0]  ;;  %v6104_v9 = vsel %vm874_vm0, %v5981_v20, %v5795_v26 }
 0x250   :  { %v5903_v7 = vpop.permute.xlu0 %883  ;;  %2121 = vmatpush.bf16.msrb.mxu1 %v4158_v6  ;;  %v6032_v21 = vsel %vm230_vm8, %v5429_v55, %v5901_v44  ;;  %v6037_v52 = vsel %vm230_vm8, %v5901_v44, %v5769_v19  ;;  %v6039_v45 = vpop.permute.xlu2 %891  ;;  %v3711_v55 = vld [vmem:[%s7303_s3 + $0xc8] sm:$0xf0]  ;;  %v4544_v44 = vld [vmem:[%s7303_s3 + $0x414] sm:$0xf0] }
 0x251   :  { %1996 = vmatmul.bf16.gmra.mxu2 %v5908_v10  ;;  %v3714_v19 = vor.u32 %v4437_v46, %v3711_v55  ;;  %v4134_v36 = vor.u32 %v4544_v44, %v4133_v5  ;;  %v6078_v3 = vsel %vm899_vm15, %v5795_v26, %v5903_v7  ;;  %v4421_v26 = vld [vmem:[%s7303_s3 + $0x44] sm:$0xf]  ;;  %v4431_v44 = vld [vmem:[%s7303_s3 + $0x94] sm:$0xf] }
 0x252   :  { %2151 = vmatpush.bf16.msrb.mxu3 %v4206_v25  ;;  %v3650_v20 = vor.u32 %v4421_v26, %v3647_v43  ;;  %v4419_v25 = vld [vmem:[%s7303_s3 + $0x34] sm:$0xf] }
 0x253   :  { %2205 = vmatpush.bf16.msrb.mxu2 %v3714_v19  ;;  %2175 = vmatpush.bf16.msrb.mxu0 %v3666_v32  ;;  %v4507_v26 = vld [vmem:[%s7303_s3 + $0x2f4] sm:$0xf] }
 0x256   :  { %v5947_v22 = vpop.f32.mrf.mxu1 }
 0x257   :  { %v5965_v4 = vpop.permute.xlu1 %887 }
 0x258   :  { %v5949_v17 = vpop.permute.xlu0 %864  ;;  %v6099_v33 = vpop.permute.xlu2 %872 }
 0x259   :  { %1940 = vmatmul.bf16.gmra.mxu3 %v5959_v57  ;;  %1968 = vmatmul.bf16.gmra.mxu0 %v5963_v59  ;;  %v6130_v5 = vsel %vm899_vm15, %v5949_v17, %v5965_v4 }
 0x25e   :  { %v1920_v12 = vpop.f32.mrf.mxu1 }
 0x25f   :  { %v6021_v29 = vpop.permute.xlu1 %868  ;;  %v4125_v12 = vld [vmem:[%s7303_s3 + $0x400] sm:$0xf] }
 0x260   :  { %v5983_v1 = vpop.permute.xlu0 %837  ;;  %v4126_v6 = vor.u32 %v4542_v8, %v4125_v12  ;;  %v6125_v55 = vpop.permute.xlu2 %845  ;;  %v3642_v12 = vor.u32 %v4419_v25, %v3639_v53  ;;  %v4558_v25 = vld [vmem:[%s7303_s3 + $0x484] sm:$0xf0]  ;;  %v4413_v53 = vld [vmem:[%s7303_s3 + $0x4] sm:$0xf] }
 0x261   :  { %v5999_v27 = vsel %vm847_vm14, %v5797_v48, %v5983_v1  ;;  %2001 = vmatmul.bf16.gmra.mxu2 %v5994_v39  ;;  %v4548_v48 = vld [vmem:[%s7303_s3 + $0x434] sm:$0xf0]  ;;  %v6135_v19 = vsel %vm847_vm14, %v5863_v62, %v6125_v55 }
 0x262   :  { %2019 = vmatmul.bf16.gmra.mxu1 %v5999_v27  ;;  %v4150_v23 = vor.u32 %v4548_v48, %v4149_v14  ;;  %v4435_v14 = vld [vmem:[%s7303_s3 + $0xb4] sm:$0xf]  ;;  %v4560_v62 = vld [vmem:[%s7303_s3 + $0x494] sm:$0xf0] }
 0x263   :  { %v4423_v48 = vld [vmem:[%s7303_s3 + $0x54] sm:$0xf]  ;;  %v3706_v2 = vor.u32 %v4435_v14, %v3703_v47  ;;  %v4198_v32 = vor.u32 %v4560_v62, %v4197_v37  ;;  %v4429_v47 = vld [vmem:[%s7303_s3 + $0x84] sm:$0xf]  ;;  %v3799_v37 = vld [vmem:[%s7303_s3 + $0x178] sm:$0xf0] }
 0x264   :  { %2122 = vmatpush.bf16.msrb.mxu1 %v4150_v23  ;;  %v4189_v62 = vld [vmem:[%s7303_s3 + $0x480] sm:$0xf] }
 0x265   :  { %2206 = vmatpush.bf16.msrb.mxu2 %v3706_v2  ;;  %2152 = vmatpush.bf16.msrb.mxu3 %v4198_v32  ;;  %v4190_v32 = vor.u32 %v4558_v25, %v4189_v62  ;;  %v4503_v25 = vld [vmem:[%s7303_s3 + $0x2d4] sm:$0xf] }
 0x267   :  { %v6073_v56 = vpop.permute.xlu1 %841 }
 0x268   :  { %2123 = vmatpush.bf16.msrb.mxu1 %v4142_v31  ;;  %v6083_v28 = vsel %vm847_vm14, %v5834_v41, %v6073_v56  ;;  %v3655_v41 = vld [vmem:[%s7303_s3 + $0x58] sm:$0xf0]  ;;  %v3695_v31 = vld [vmem:[%s7303_s3 + $0xa8] sm:$0xf0]  ;;  %v863_v8 = vpop.permute.xlu0 %862 }
 0x269   :  { %1945 = vmatmul.bf16.gmra.mxu3 %v6032_v21  ;;  %1973 = vmatmul.bf16.gmra.mxu0 %v6037_v52  ;;  %v3658_v23 = vor.u32 %v4423_v48, %v3655_v41  ;;  %v3698_v46 = vor.u32 %v4433_v0, %v3695_v31  ;;  %v6163_v14 = vsel %vm874_vm0, %v863_v8, %v5949_v17  ;;  %v3679_v48 = vld [vmem:[%s7303_s3 + $0x88] sm:$0xf0] }
 0x26a   :  { %v3682_v2 = vor.u32 %v4429_v47, %v3679_v48  ;;  %v3631_v17 = vld [vmem:[%s7303_s3 + $0x28] sm:$0xf0]  ;;  %v6189_v31 = vsel %vm899_vm15, %v6021_v29, %v6039_v45  ;;  %2153 = vmatpush.bf16.msrb.mxu3 %v4190_v32 }
 0x26b   :  { %2176 = vmatpush.bf16.msrb.mxu0 %v3658_v23  ;;  %2207 = vmatpush.bf16.msrb.mxu2 %v3698_v46  ;;  %v3991_v46 = vld [vmem:[%s7303_s3 + $0x2f8] sm:$0xf0]  ;;  %v3791_v47 = vld [vmem:[%s7303_s3 + $0x168] sm:$0xf0] }
 0x26c   :  { %2124 = vmatpush.bf16.msrb.mxu1 %v4134_v36  ;;  %v3690_v36 = vor.u32 %v4431_v44, %v3687_v63  ;;  %v3994_v43 = vor.u32 %v4507_v26, %v3991_v46  ;;  %v4459_v63 = vld [vmem:[%s7303_s3 + $0x174] sm:$0xf]  ;;  %v4505_v26 = vld [vmem:[%s7303_s3 + $0x2e4] sm:$0xf] }
 0x26f   :  { %2177 = vmatpush.bf16.msrb.mxu0 %v3650_v20  ;;  %v867_v16 = vpop.permute.xlu1 %866  ;;  %2208 = vmatpush.bf16.msrb.mxu2 %v3690_v36  ;;  %v3623_v20 = vld [vmem:[%s7303_s3 + $0x18] sm:$0xf0]  ;;  %v3802_v36 = vor.u32 %v4459_v63, %v3799_v37 }
 0x270   :  { %2125 = vmatpush.bf16.msrb.mxu1 %v4126_v6  ;;  %v6159_v6 = vsel %vm874_vm0, %v5983_v1, %v863_v8  ;;  %v4417_v1 = vld [vmem:[%s7303_s3 + $0x24] sm:$0xf] }
 0x271   :  { %2098 = vmatmul.bf16.vlgmr.msra.gmra.mxu2 %v6078_v3  ;;  %v3634_v41 = vor.u32 %v4417_v1, %v3631_v17  ;;  %v4457_v8 = vld [vmem:[%s7303_s3 + $0x164] sm:$0xf]  ;;  %v6235_v17 = vsel %vm874_vm0, %v867_v16, %v6021_v29  ;;  %v4455_v29 = vld [vmem:[%s7303_s3 + $0x154] sm:$0xf] }
 0x272   :  { %2024 = vmatmul.bf16.gmra.mxu1 %v6083_v28  ;;  %v3794_v1 = vor.u32 %v4457_v8, %v3791_v47  ;;  %v4491_v47 = vld [vmem:[%s7303_s3 + $0x274] sm:$0xf] }
 0x273   :  { %2178 = vmatpush.bf16.msrb.mxu0 %v3642_v12  ;;  %2209 = vmatpush.bf16.msrb.mxu2 %v3682_v2  ;;  %v3615_v12 = vld [vmem:[%s7303_s3 + $0x8] sm:$0xf0]  ;;  %v6231_v2 = vsel %vm874_vm0, %v6073_v56, %v867_v16  ;;  %v3783_v16 = vld [vmem:[%s7303_s3 + $0x158] sm:$0xf0] }
 0x274   :  { %2230 = vmatpush.bf16.msra.mxu1 %v3802_v36  ;;  %v3618_v48 = vor.u32 %v4413_v53, %v3615_v12  ;;  %v3983_v56 = vld [vmem:[%s7303_s3 + $0x2e8] sm:$0xf0]  ;;  %v3975_v53 = vld [vmem:[%s7303_s3 + $0x2d8] sm:$0xf0] }
 0x275   :  { %v3986_v46 = vor.u32 %v4505_v26, %v3983_v56  ;;  %v3978_v32 = vor.u32 %v4503_v25, %v3975_v53  ;;  %v3767_v12 = vld [vmem:[%s7303_s3 + $0x138] sm:$0xf0]  ;;  %v4475_v25 = vld [vmem:[%s7303_s3 + $0x1f4] sm:$0xf] }
 0x276   :  { %v3863_v53 = vld [vmem:[%s7303_s3 + $0x1f8] sm:$0xf0] }
 0x277   :  { %v6179_v23 = vpop.permute.xlu1 %885  ;;  %2179 = vmatpush.bf16.msrb.mxu0 %v3634_v41  ;;  %2314 = vmatpush.bf16.msra.mxu2 %v3994_v43  ;;  %v6237_v41 = vpop.permute.xlu0 %895 }
 0x278   :  { %v6184_v0 = vsel %vm899_vm15, %v5903_v7, %v6179_v23  ;;  %v4415_v7 = vld [vmem:[%s7303_s3 + $0x14] sm:$0xf]  ;;  %2231 = vmatpush.bf16.msra.mxu1 %v3794_v1  ;;  %v6253_v43 = vpop.permute.xlu2 %889  ;;  %v6264_v63 = vsel %vm899_vm15, %v6099_v33, %v6237_v41  ;;  %v4449_v1 = vld [vmem:[%s7303_s3 + $0x124] sm:$0xf] }
 0x279   :  { %2042 = vmatmul.bf16.vlgmr.msra.gmra.mxu3 %v6109_v38  ;;  %2070 = vmatmul.bf16.vlgmr.msra.gmra.mxu0 %v6104_v9  ;;  %v3626_v44 = vor.u32 %v4415_v7, %v3623_v20  ;;  %v3786_v7 = vor.u32 %v4455_v29, %v3783_v16  ;;  %v4453_v20 = vld [vmem:[%s7303_s3 + $0x144] sm:$0xf]  ;;  %v6269_v37 = vsel %vm899_vm15, %v5965_v4, %v6253_v43  ;;  %v4451_v4 = vld [vmem:[%s7303_s3 + $0x134] sm:$0xf]  ;;  %v3759_v29 = vld [vmem:[%s7303_s3 + $0x128] sm:$0xf0] }
 0x27a   :  { %v3770_v8 = vor.u32 %v4451_v4, %v3767_v12  ;;  %v3762_v16 = vor.u32 %v4449_v1, %v3759_v29  ;;  %v4489_v4 = vld [vmem:[%s7303_s3 + $0x264] sm:$0xf]  ;;  %v3866_v12 = vor.u32 %v4475_v25, %v3863_v53  ;;  %v3959_v29 = vld [vmem:[%s7303_s3 + $0x2b8] sm:$0xf0] }
 0x27b   :  { %2180 = vmatpush.bf16.msrb.mxu0 %v3626_v44  ;;  %2315 = vmatpush.bf16.msra.mxu2 %v3986_v46  ;;  %v3775_v44 = vld [vmem:[%s7303_s3 + $0x148] sm:$0xf0]  ;;  %v3911_v53 = vld [vmem:[%s7303_s3 + $0x258] sm:$0xf0] }
 0x27c   :  { %2232 = vmatpush.bf16.msra.mxu1 %v3786_v7  ;;  %v3778_v36 = vor.u32 %v4453_v20, %v3775_v44  ;;  %v4447_v7 = vld [vmem:[%s7303_s3 + $0x114] sm:$0xf]  ;;  %v3751_v44 = vld [vmem:[%s7303_s3 + $0x118] sm:$0xf0]  ;;  %2258 = vmatpush.bf16.msra.mxu3 %v3866_v12  ;;  %v4497_v12 = vld [vmem:[%s7303_s3 + $0x2a4] sm:$0xf] }
 0x27f   :  { %2181 = vmatpush.bf16.msrb.mxu0 %v3618_v48  ;;  %v871_v62 = vpop.permute.xlu0 %870  ;;  %2316 = vmatpush.bf16.msra.mxu2 %v3978_v32  ;;  %v3927_v48 = vld [vmem:[%s7303_s3 + $0x278] sm:$0xf0] }
 0x280   :  { %2233 = vmatpush.bf16.msra.mxu1 %v3778_v36  ;;  %v6296_v26 = vsel %vm874_vm0, %v6125_v55, %v871_v62  ;;  %v6300_v56 = vsel %vm874_vm0, %v871_v62, %v6099_v33  ;;  %v3930_v46 = vor.u32 %v4491_v47, %v3927_v48  ;;  %v4501_v55 = vld [vmem:[%s7303_s3 + $0x2c4] sm:$0xf]  ;;  %v3967_v33 = vld [vmem:[%s7303_s3 + $0x2c8] sm:$0xf0]  ;;  %v3754_v62 = vor.u32 %v4447_v7, %v3751_v44 }
 0x281   :  { %2103 = vmatmul.bf16.gmra.mxu2 %v6130_v5  ;;  %v3970_v20 = vor.u32 %v4501_v55, %v3967_v33  ;;  %v4445_v47 = vld [vmem:[%s7303_s3 + $0x104] sm:$0xf]  ;;  %v3743_v48 = vld [vmem:[%s7303_s3 + $0x108] sm:$0xf0]  ;;  %v6355_v55 = vld [vmem:[%s7304_s4] sm:$0x3] }
 0x282   :  { %2029 = vmatmul.bf16.gmra.mxu1 %v6135_v19  ;;  %v6358_v33 = vperm.slane %v6355_v55, 0  ;;  %v3855_v44 = vld [vmem:[%s7303_s3 + $0x1e8] sm:$0xf0] }
 0x283   :  { %2286 = vmatpush.bf16.msra.mxu0 %v3930_v46  ;;  %2317 = vmatpush.bf16.msra.mxu2 %v3970_v20  ;;  %v4499_v46 = vld [vmem:[%s7303_s3 + $0x2b4] sm:$0xf]  ;;  %v4473_v20 = vld [vmem:[%s7303_s3 + $0x1e4] sm:$0xf] }
 0x284   :  { %2234 = vmatpush.bf16.msra.mxu1 %v3770_v8  ;;  %v3919_v8 = vld [vmem:[%s7303_s3 + $0x268] sm:$0xf0]  ;;  %v3858_v25 = vor.u32 %v4473_v20, %v3855_v44  ;;  %v4471_v20 = vld [vmem:[%s7303_s3 + $0x1d4] sm:$0xf]  ;;  %v3847_v44 = vld [vmem:[%s7303_s3 + $0x1d8] sm:$0xf0] }
 0x285   :  { %v3922_v1 = vor.u32 %v4489_v4, %v3919_v8  ;;  %v3951_v8 = vld [vmem:[%s7303_s3 + $0x2a8] sm:$0xf0] }
 0x286   :  { %2259 = vmatpush.bf16.msra.mxu3 %v3858_v25  ;;  %v3850_v25 = vor.u32 %v4471_v20, %v3847_v44  ;;  %v3839_v20 = vld [vmem:[%s7303_s3 + $0x1c8] sm:$0xf0] }
 0x287   :  { %v6319_v36 = vpop.permute.xlu0 %893  ;;  %2287 = vmatpush.bf16.msra.mxu0 %v3922_v1 }
 0x288   :  { %2235 = vmatpush.bf16.msra.mxu1 %v3762_v16  ;;  %v6333_v32 = vsel %vm899_vm15, %v6039_v45, %v6319_v36  ;;  %v3746_v45 = vor.u32 %v4445_v47, %v3743_v48  ;;  %v3962_v16 = vor.u32 %v4499_v46, %v3959_v29  ;;  %v3954_v47 = vor.u32 %v4497_v12, %v3951_v8  ;;  %v6383_v46 = vpop.permute.xlu1 %897  ;;  %v4495_v12 = vld [vmem:[%s7303_s3 + $0x294] sm:$0xf] }
 0x289   :  { %2047 = vmatmul.bf16.gmra.mxu3 %v6159_v6  ;;  %2075 = vmatmul.bf16.gmra.mxu0 %v6163_v14  ;;  %v1904_v48 = vadd.f32 %v5745_v50, %v6358_v33  ;;  %v4485_v50 = vld [vmem:[%s7303_s3 + $0x244] sm:$0xf] }
 0x28a   :  { %2318 = vmatpush.bf16.msra.mxu2 %v3962_v16  ;;  %2260 = vmatpush.bf16.msra.mxu3 %v3850_v25 }
 0x28c   :  { %2236 = vmatpush.bf16.msra.mxu1 %v3754_v62  ;;  %v4487_v62 = vld [vmem:[%s7303_s3 + $0x254] sm:$0xf] }
 0x28d   :  { %v3914_v4 = vor.u32 %v4487_v62, %v3911_v53  ;;  %v6397_v62 = vsel %vm899_vm15, %v6237_v41, %v6383_v46  ;;  %v3943_v41 = vld [vmem:[%s7303_s3 + $0x298] sm:$0xf0] }
 0x28e   :  { %2319 = vmatpush.bf16.msra.mxu2 %v3954_v47  ;;  %v3946_v47 = vor.u32 %v4495_v12, %v3943_v41  ;;  %v3935_v12 = vld [vmem:[%s7303_s3 + $0x288] sm:$0xf0]  ;;  %v4467_v41 = vld [vmem:[%s7303_s3 + $0x1b4] sm:$0xf] }
 0x28f   :  { %2288 = vmatpush.bf16.msra.mxu0 %v3914_v4 }
 0x290   :  { %2237 = vmatpush.bf16.msra.mxu1 %v3746_v45 }
 0x291   :  { %2108 = vmatmul.bf16.gmra.mxu2 %v6189_v31 }
 0x292   :  { %2126 = vmatmul.bf16.vlgmr.msrb.gmra.mxu1 %v6184_v0  ;;  %2320 = vmatpush.bf16.msra.mxu2 %v3946_v47 }
 0x299   :  { %2052 = vmatmul.bf16.gmra.mxu3 %v6231_v2  ;;  %2080 = vmatmul.bf16.gmra.mxu0 %v6235_v17 }
 0x2a1   :  { %2113 = vmatmul.bf16.gmra.mxu2 %v6264_v63 }
 0x2a2   :  { %2131 = vmatmul.bf16.gmra.mxu1 %v6269_v37 }
 0x2a9   :  { %2057 = vmatmul.bf16.gmra.mxu3 %v6296_v26  ;;  %2085 = vmatmul.bf16.gmra.mxu0 %v6300_v56 }
 0x2b1   :  { %2210 = vmatmul.bf16.vlgmr.msrb.gmra.mxu2 %v5807_v30 }
 0x2b2   :  { %2136 = vmatmul.bf16.gmra.mxu1 %v6333_v32 }
 0x2b4   :  { %v1987_v30 = vpop.f32.mrf.mxu2 }
 0x2b6   :  { %v1959_v7 = vpop.f32.mrf.mxu0 }
 0x2b9   :  { %4211 = vmatmul.msk.bf16.vlgmr.msrb.gmra.mxu3 %vm1881_vm1, %v6179_v23  ;;  %2182 = vmatmul.bf16.vlgmr.msrb.gmra.mxu0 %v5339_v24 }
 0x2bc   :  { %v1931_v1 = vpop.f32.mrf.mxu3  ;;  %v1989_v45 = vpop.f32.mrf.mxu2 }
 0x2bd   :  { %v1932_v24 = vadd.f32 %v1931_v1, %v1904_v48  ;;  %v1906_v48 = vadd.f32 %v5767_v13, %v6358_v33  ;;  %v4483_v13 = vld [vmem:[%s7303_s3 + $0x234] sm:$0xf] }
 0x2be   :  { %v1961_v29 = vpop.f32.mrf.mxu0 }
 0x2bf   :  { %v1960_v16 = vadd.f32 %v1959_v7, %v1932_v24  ;;  %v3903_v7 = vld [vmem:[%s7303_s3 + $0x248] sm:$0xf0]  ;;  %v2015_v8 = vpop.f32.mrf.mxu1 }
 0x2c0   :  { %v3906_v4 = vor.u32 %v4485_v50, %v3903_v7  ;;  %v3895_v7 = vld [vmem:[%s7303_s3 + $0x238] sm:$0xf0] }
 0x2c1   :  { %v1988_v53 = vadd.f32 %v1987_v30, %v1960_v16  ;;  %2215 = vmatmul.bf16.gmra.mxu2 %v5873_v60  ;;  %v4469_v16 = vld [vmem:[%s7303_s3 + $0x1c4] sm:$0xf] }
 0x2c2   :  { %2141 = vmatmul.bf16.gmra.mxu1 %v6397_v62  ;;  %2289 = vmatpush.bf16.msra.mxu0 %v3906_v4  ;;  %v3842_v50 = vor.u32 %v4469_v16, %v3839_v20  ;;  %v4481_v16 = vld [vmem:[%s7303_s3 + $0x224] sm:$0xf]  ;;  %v3887_v20 = vld [vmem:[%s7303_s3 + $0x228] sm:$0xf0] }
 0x2c3   :  { %v6412_v30 = vadd.f32 %v2015_v8, %v1988_v53  ;;  %v3898_v53 = vor.u32 %v4483_v13, %v3895_v7  ;;  %v3831_v8 = vld [vmem:[%s7303_s3 + $0x1b8] sm:$0xf0]  ;;  %v3823_v13 = vld [vmem:[%s7303_s3 + $0x1a8] sm:$0xf0] }
 0x2c4   :  { %v1933_v60 = vpop.f32.mrf.mxu3  ;;  %v1992_v1 = vpop.f32.mrf.mxu2  ;;  %2261 = vmatpush.bf16.msra.mxu3 %v3842_v50  ;;  %v3834_v47 = vor.u32 %v4467_v41, %v3831_v8  ;;  %v4465_v50 = vld [vmem:[%s7303_s3 + $0x1a4] sm:$0xf]  ;;  %v4119_v41 = vld [vmem:[%s7303_s3 + $0x3f8] sm:$0xf0]  ;;  %v1911_v8 = vadd.f32 %v5826_v34, %v6358_v33 }
 0x2c5   :  { %v1934_v24 = vadd.f32 %v1933_v60, %v1906_v48  ;;  %v4461_v34 = vld [vmem:[%s7303_s3 + $0x184] sm:$0xf] }
 0x2c6   :  { %v1964_v44 = vpop.f32.mrf.mxu0  ;;  %2290 = vmatpush.bf16.msra.mxu0 %v3898_v53  ;;  %v3826_v53 = vor.u32 %v4465_v50, %v3823_v13  ;;  %v3807_v13 = vld [vmem:[%s7303_s3 + $0x188] sm:$0xf0] }
 0x2c7   :  { %v1962_v25 = vadd.f32 %v1961_v29, %v1934_v24  ;;  %v4493_v29 = vld [vmem:[%s7303_s3 + $0x284] sm:$0xf] }
 0x2c8   :  { %2262 = vmatpush.bf16.msra.mxu3 %v3834_v47 }
 0x2c9   :  { %v6426_v4 = vadd.f32 %v1989_v45, %v1962_v25  ;;  %4212 = vmatmul.msk.bf16.gmra.mxu3 %vm1881_vm1, %v6253_v43  ;;  %2187 = vmatmul.bf16.gmra.mxu0 %v5380_v11  ;;  %v3938_v45 = vor.u32 %v4493_v29, %v3935_v12  ;;  %v1909_v11 = vadd.f32 %v5793_v58, %v6358_v33  ;;  %v4539_v12 = vld [vmem:[%s7303_s3 + $0x3f4] sm:$0xf] }
 0x2ca   :  { %v3890_v58 = vor.u32 %v4481_v16, %v3887_v20 }
 0x2cb   :  { %2321 = vmatpush.bf16.msra.mxu2 %v3938_v45  ;;  %v4463_v45 = vld [vmem:[%s7303_s3 + $0x194] sm:$0xf] }
 0x2cc   :  { %v1936_v48 = vpop.f32.mrf.mxu3  ;;  %v1994_v60 = vpop.f32.mrf.mxu2  ;;  %2291 = vmatpush.bf16.msra.mxu0 %v3890_v58  ;;  %2263 = vmatpush.bf16.msra.mxu3 %v3826_v53 }
 0x2cd   :  { %v1937_v24 = vadd.f32 %v1936_v48, %v1909_v11  ;;  %v4523_v48 = vld [vmem:[%s7303_s3 + $0x374] sm:$0xf]  ;;  %v6494_v53 = vpop.f32.mrf.mxu1 }
 0x2ce   :  { %v1966_v25 = vpop.f32.mrf.mxu0 }
 0x2cf   :  { %v1965_v7 = vadd.f32 %v1964_v44, %v1937_v24  ;;  %v4122_v44 = vor.u32 %v4539_v12, %v4119_v41  ;;  %v4055_v24 = vld [vmem:[%s7303_s3 + $0x378] sm:$0xf0]  ;;  %v3810_v41 = vor.u32 %v4461_v34, %v3807_v13 }
 0x2d0   :  { %v4058_v50 = vor.u32 %v4523_v48, %v4055_v24  ;;  %v4111_v48 = vld [vmem:[%s7303_s3 + $0x3e8] sm:$0xf0] }
 0x2d1   :  { %2220 = vmatmul.bf16.gmra.mxu2 %v5959_v57  ;;  %v1993_v29 = vadd.f32 %v1992_v1, %v1965_v7  ;;  %v3815_v57 = vld [vmem:[%s7303_s3 + $0x198] sm:$0xf0]  ;;  %v4477_v7 = vld [vmem:[%s7303_s3 + $0x204] sm:$0xf] }
 0x2d2   :  { %2238 = vmatmul.bf16.vlgmr.msra.gmra.mxu1 %v5810_v18  ;;  %v4479_v18 = vld [vmem:[%s7303_s3 + $0x214] sm:$0xf]  ;;  %v3879_v1 = vld [vmem:[%s7303_s3 + $0x218] sm:$0xf0]  ;;  %v3818_v11 = vor.u32 %v4463_v45, %v3815_v57  ;;  %2370 = vmatpush.bf16.msrb.mxu2 %v4122_v44  ;;  %v3871_v45 = vld [vmem:[%s7303_s3 + $0x208] sm:$0xf0] }
 0x2d3   :  { %v3882_v47 = vor.u32 %v4479_v18, %v3879_v1  ;;  %2342 = vmatpush.bf16.msrb.mxu1 %v4058_v50  ;;  %v3874_v18 = vor.u32 %v4477_v7, %v3871_v45  ;;  %v4521_v1 = vld [vmem:[%s7303_s3 + $0x364] sm:$0xf] }
 0x2d4   :  { %v1938_v16 = vpop.f32.mrf.mxu3  ;;  %v1997_v20 = vpop.f32.mrf.mxu2  ;;  %2264 = vmatpush.bf16.msra.mxu3 %v3818_v11 }
 0x2d5   :  { %v1939_v58 = vadd.f32 %v1938_v16, %v1911_v8  ;;  %2292 = vmatpush.bf16.msra.mxu0 %v3882_v47  ;;  %v4047_v8 = vld [vmem:[%s7303_s3 + $0x368] sm:$0xf0]  ;;  %v1914_v16 = vadd.f32 %v5861_v49, %v6358_v33  ;;  %v4517_v49 = vld [vmem:[%s7303_s3 + $0x344] sm:$0xf] }
 0x2d6   :  { %v1969_v12 = vpop.f32.mrf.mxu0  ;;  %v4050_v47 = vor.u32 %v4521_v1, %v4047_v8 }
 0x2d7   :  { %v1967_v57 = vadd.f32 %v1966_v25, %v1939_v58  ;;  %v4537_v25 = vld [vmem:[%s7303_s3 + $0x3e4] sm:$0xf] }
 0x2d8   :  { %2265 = vmatpush.bf16.msra.mxu3 %v3810_v41  ;;  %v4114_v24 = vor.u32 %v4537_v25, %v4111_v48  ;;  %2343 = vmatpush.bf16.msrb.mxu1 %v4050_v47  ;;  %v1916_v47 = vadd.f32 %v5899_v42, %v6358_v33  ;;  %v4555_v42 = vld [vmem:[%s7303_s3 + $0x474] sm:$0xf] }
 0x2d9   :  { %4213 = vmatmul.msk.bf16.gmra.mxu3 %vm1881_vm1, %v6319_v36  ;;  %2192 = vmatmul.bf16.gmra.mxu0 %v5405_v35  ;;  %v1995_v11 = vadd.f32 %v1994_v60, %v1967_v57  ;;  %v4519_v35 = vld [vmem:[%s7303_s3 + $0x354] sm:$0xf]  ;;  %v4039_v60 = vld [vmem:[%s7303_s3 + $0x358] sm:$0xf0] }
 0x2da   :  { %2293 = vmatpush.bf16.msra.mxu0 %v3874_v18  ;;  %2371 = vmatpush.bf16.msrb.mxu2 %v4114_v24  ;;  %v4042_v34 = vor.u32 %v4519_v35, %v4039_v60  ;;  %v4031_v18 = vld [vmem:[%s7303_s3 + $0x348] sm:$0xf0] }
 0x2dc   :  { %4606 = vmatpush.bf16.msrb.mxu3 %v4122_v44  ;;  %v1941_v50 = vpop.f32.mrf.mxu3  ;;  %v1999_v58 = vpop.f32.mrf.mxu2  ;;  %2344 = vmatpush.bf16.msrb.mxu1 %v4042_v34  ;;  %v4034_v44 = vor.u32 %v4517_v49, %v4031_v18  ;;  %v4183_v34 = vld [vmem:[%s7303_s3 + $0x478] sm:$0xf0]  ;;  %v4533_v49 = vld [vmem:[%s7303_s3 + $0x3c4] sm:$0xf]  ;;  %v4095_v18 = vld [vmem:[%s7303_s3 + $0x3c8] sm:$0xf0] }
 0x2dd   :  { %v1942_v13 = vadd.f32 %v1941_v50, %v1914_v16 }
 0x2de   :  { %v1971_v7 = vpop.f32.mrf.mxu0 }
 0x2df   :  { %v2020_v41 = vpop.f32.mrf.mxu1  ;;  %v1970_v45 = vadd.f32 %v1969_v12, %v1942_v13  ;;  %v4103_v12 = vld [vmem:[%s7303_s3 + $0x3d8] sm:$0xf0]  ;;  %v4513_v13 = vld [vmem:[%s7303_s3 + $0x324] sm:$0xf] }
 0x2e0   :  { %v6522_v57 = vadd.f32 %v2020_v41, %v1993_v29  ;;  %4607 = vmatpush.bf16.msrb.mxu3 %v4114_v24  ;;  %v4535_v29 = vld [vmem:[%s7303_s3 + $0x3d4] sm:$0xf]  ;;  %2345 = vmatpush.bf16.msrb.mxu1 %v4034_v44  ;;  %v4186_v41 = vor.u32 %v4555_v42, %v4183_v34  ;;  %v4098_v44 = vor.u32 %v4533_v49, %v4095_v18  ;;  %v4167_v18 = vld [vmem:[%s7303_s3 + $0x458] sm:$0xf0] }
 0x2e1   :  { %2225 = vmatmul.bf16.gmra.mxu2 %v6032_v21  ;;  %v1998_v1 = vadd.f32 %v1997_v20, %v1970_v45  ;;  %v4106_v8 = vor.u32 %v4535_v29, %v4103_v12  ;;  %v4515_v21 = vld [vmem:[%s7303_s3 + $0x334] sm:$0xf]  ;;  %v1919_v29 = vadd.f32 %v5947_v22, %v6358_v33  ;;  %v4553_v22 = vld [vmem:[%s7303_s3 + $0x464] sm:$0xf]  ;;  %v4175_v33 = vld [vmem:[%s7303_s3 + $0x468] sm:$0xf0] }
 0x2e2   :  { %2243 = vmatmul.bf16.gmra.mxu1 %v5877_v61  ;;  %v4023_v61 = vld [vmem:[%s7303_s3 + $0x338] sm:$0xf0]  ;;  %2398 = vmatpush.bf16.msrb.mxu0 %v4186_v41  ;;  %v4531_v34 = vld [vmem:[%s7303_s3 + $0x3b4] sm:$0xf] }
 0x2e3   :  { %2372 = vmatpush.bf16.msrb.mxu2 %v4106_v8  ;;  %v4026_v48 = vor.u32 %v4515_v21, %v4023_v61 }
 0x2e4   :  { %v1943_v20 = vpop.f32.mrf.mxu3  ;;  %v2002_v25 = vpop.f32.mrf.mxu2  ;;  %4608 = vmatpush.bf16.msrb.mxu3 %v4106_v8 }
 0x2e5   :  { %v1944_v24 = vadd.f32 %v1943_v20, %v1916_v47  ;;  %2346 = vmatpush.bf16.msrb.mxu1 %v4026_v48 }
 0x2e6   :  { %v1974_v16 = vpop.f32.mrf.mxu0 }
 0x2e7   :  { %v2022_v35 = vpop.f32.mrf.mxu1  ;;  %v1972_v60 = vadd.f32 %v1971_v7, %v1944_v24  ;;  %v4015_v7 = vld [vmem:[%s7303_s3 + $0x328] sm:$0xf0]  ;;  %2373 = vmatpush.bf16.msrb.mxu2 %v4098_v44 }
 0x2e8   :  { %v6546_v50 = vadd.f32 %v2022_v35, %v1995_v11  ;;  %v4018_v45 = vor.u32 %v4513_v13, %v4015_v7  ;;  %4609 = vmatpush.bf16.msrb.mxu3 %v4098_v44  ;;  %v4509_v35 = vld [vmem:[%s7303_s3 + $0x304] sm:$0xf]  ;;  %v4087_v13 = vld [vmem:[%s7303_s3 + $0x3b8] sm:$0xf0] }
 0x2e9   :  { %4214 = vmatmul.msk.bf16.gmra.mxu3 %vm1881_vm1, %v6383_v46  ;;  %2197 = vmatmul.bf16.gmra.mxu0 %v5427_v54  ;;  %v2000_v11 = vadd.f32 %v1999_v58, %v1972_v60  ;;  %v4511_v54 = vld [vmem:[%s7303_s3 + $0x314] sm:$0xf]  ;;  %v4007_v58 = vld [vmem:[%s7303_s3 + $0x318] sm:$0xf0]  ;;  %v4178_v60 = vor.u32 %v4553_v22, %v4175_v33  ;;  %v4090_v41 = vor.u32 %v4531_v34, %v4087_v13 }
 0x2ea   :  { %2347 = vmatpush.bf16.msrb.mxu1 %v4018_v45  ;;  %v4010_v47 = vor.u32 %v4511_v54, %v4007_v58  ;;  %v4071_v33 = vld [vmem:[%s7303_s3 + $0x398] sm:$0xf0]  ;;  %v4547_v13 = vld [vmem:[%s7303_s3 + $0x434] sm:$0xf] }
 0x2eb   :  { %2399 = vmatpush.bf16.msrb.mxu0 %v4178_v60  ;;  %2374 = vmatpush.bf16.msrb.mxu2 %v4090_v41  ;;  %v2018_v60 = vadd.f32 %v6494_v53, %v6426_v4  ;;  %v4525_v53 = vld [vmem:[%s7303_s3 + $0x384] sm:$0xf] }
 0x2ec   :  { %v1946_v12 = vpop.f32.mrf.mxu3  ;;  %v2004_v8 = vpop.f32.mrf.mxu2  ;;  %4610 = vmatpush.bf16.msrb.mxu3 %v4090_v41  ;;  %v4151_v41 = vld [vmem:[%s7303_s3 + $0x438] sm:$0xf0] }
 0x2ed   :  { %v1947_v21 = vadd.f32 %v1946_v12, %v1919_v29  ;;  %v4529_v29 = vld [vmem:[%s7303_s3 + $0x3a4] sm:$0xf] }
 0x2ee   :  { %v1976_v61 = vpop.f32.mrf.mxu0  ;;  %2348 = vmatpush.bf16.msrb.mxu1 %v4010_v47 }
 0x2ef   :  { %v2025_v20 = vpop.f32.mrf.mxu1  ;;  %v1975_v48 = vadd.f32 %v1974_v16, %v1947_v21  ;;  %v3999_v16 = vld [vmem:[%s7303_s3 + $0x308] sm:$0xf0]  ;;  %v4549_v61 = vld [vmem:[%s7303_s3 + $0x444] sm:$0xf] }
 0x2f0   :  { %v6577_v24 = vadd.f32 %v2025_v20, %v1998_v1  ;;  %v4002_v42 = vor.u32 %v4509_v35, %v3999_v16  ;;  %v4159_v20 = vld [vmem:[%s7303_s3 + $0x448] sm:$0xf0] }
 0x2f1   :  { %2322 = vmatmul.bf16.vlgmr.msra.gmra.mxu2 %v6109_v38  ;;  %v2003_v1 = vadd.f32 %v2002_v25, %v1975_v48  ;;  %v4551_v25 = vld [vmem:[%s7303_s3 + $0x454] sm:$0xf]  ;;  %v4162_v48 = vor.u32 %v4549_v61, %v4159_v20 }
 0x2f2   :  { %2248 = vmatmul.bf16.gmra.mxu1 %v5963_v59  ;;  %v4170_v44 = vor.u32 %v4551_v25, %v4167_v18  ;;  %v4143_v18 = vld [vmem:[%s7303_s3 + $0x428] sm:$0xf0] }
 0x2f3   :  { %2349 = vmatpush.bf16.msrb.mxu1 %v4002_v42 }
 0x2f4   :  { %v1948_v7 = vpop.f32.mrf.mxu3  ;;  %v2099_v45 = vpop.f32.mrf.mxu2  ;;  %2400 = vmatpush.bf16.msrb.mxu0 %v4170_v44 }
 0x2f5   :  { %v4154_v7 = vor.u32 %v4547_v13, %v4151_v41  ;;  %v4557_v13 = vld [vmem:[%s7303_s3 + $0x484] sm:$0xf]  ;;  %v4191_v41 = vld [vmem:[%s7303_s3 + $0x488] sm:$0xf0] }
 0x2f6   :  { %v2071_v38 = vpop.f32.mrf.mxu0 }
 0x2f7   :  { %v2027_v49 = vpop.f32.mrf.mxu1 }
 0x2f8   :  { %v6599_v59 = vadd.f32 %v2027_v49, %v2000_v11  ;;  %v4079_v11 = vld [vmem:[%s7303_s3 + $0x3a8] sm:$0xf0]  ;;  %2401 = vmatpush.bf16.msrb.mxu0 %v4162_v48  ;;  %v4541_v48 = vld [vmem:[%s7303_s3 + $0x404] sm:$0xf] }
 0x2f9   :  { %2266 = vmatmul.bf16.vlgmr.msra.gmra.mxu3 %v5778_v15  ;;  %2294 = vmatmul.bf16.vlgmr.msra.gmra.mxu0 %v5832_v40  ;;  %v4082_v54 = vor.u32 %v4529_v29, %v4079_v11 }
 0x2fb   :  { %2375 = vmatpush.bf16.msrb.mxu2 %v4082_v54  ;;  %4611 = vmatpush.bf16.msrb.mxu3 %v4082_v54 }
 0x2fc   :  { %v2043_v58 = vpop.f32.mrf.mxu3  ;;  %v2101_v12 = vpop.f32.mrf.mxu2  ;;  %2402 = vmatpush.bf16.msrb.mxu0 %v4154_v7 }
 0x2fd   :  { %v2044_v8 = vadd.f32 %v2043_v58, %v6412_v30  ;;  %v4527_v30 = vld [vmem:[%s7303_s3 + $0x394] sm:$0xf] }
 0x2fe   :  { %v2073_v47 = vpop.f32.mrf.mxu0  ;;  %v4074_v35 = vor.u32 %v4527_v30, %v4071_v33 }
 0x2ff   :  { %v2030_v15 = vpop.f32.mrf.mxu1  ;;  %v2072_v21 = vadd.f32 %v2071_v38, %v2044_v8  ;;  %v4207_v8 = vld [vmem:[%s7303_s3 + $0x4a8] sm:$0xf0] }
 0x300   :  { %v6616_v40 = vadd.f32 %v2030_v15, %v2003_v1  ;;  %2376 = vmatpush.bf16.msrb.mxu2 %v4074_v35  ;;  %4612 = vmatpush.bf16.msrb.mxu3 %v4074_v35 }
 0x301   :  { %2327 = vmatmul.bf16.gmra.mxu2 %v6159_v6  ;;  %v2100_v22 = vadd.f32 %v2099_v45, %v2072_v21  ;;  %v4063_v45 = vld [vmem:[%s7303_s3 + $0x388] sm:$0xf0] }
 0x302   :  { %2253 = vmatmul.bf16.gmra.mxu1 %v6037_v52  ;;  %v4066_v38 = vor.u32 %v4525_v53, %v4063_v45  ;;  %v4194_v53 = vor.u32 %v4557_v13, %v4191_v41 }
 0x304   :  { %v2045_v16 = vpop.f32.mrf.mxu3  ;;  %v2104_v1 = vpop.f32.mrf.mxu2  ;;  %2377 = vmatpush.bf16.msrb.mxu2 %v4066_v38  ;;  %4613 = vmatpush.bf16.msrb.mxu3 %v4066_v38 }
 0x305   :  { %v2046_v6 = vadd.f32 %v2045_v16, %v2018_v60  ;;  %v4559_v16 = vld [vmem:[%s7303_s3 + $0x494] sm:$0xf] }
 0x306   :  { %v2076_v52 = vpop.f32.mrf.mxu0 }
 0x307   :  { %v2032_v42 = vpop.f32.mrf.mxu1  ;;  %v2074_v34 = vadd.f32 %v2073_v47, %v2046_v6  ;;  %v4543_v47 = vld [vmem:[%s7303_s3 + $0x414] sm:$0xf] }
 0x309   :  { %2271 = vmatmul.bf16.gmra.mxu3 %v5845_v51  ;;  %2299 = vmatmul.bf16.gmra.mxu0 %v5999_v27  ;;  %v6642_v4 = vadd.f32 %v2101_v12, %v2074_v34  ;;  %v4545_v27 = vld [vmem:[%s7303_s3 + $0x424] sm:$0xf] }
 0x30a   :  { %v4146_v11 = vor.u32 %v4545_v27, %v4143_v18  ;;  %v4561_v12 = vld [vmem:[%s7303_s3 + $0x4a4] sm:$0xf] }
 0x30b   :  { %v4210_v15 = vor.u32 %v4561_v12, %v4207_v8  ;;  %v6708_v8 = vperm.slane %v6355_v55, 1 }
 0x30c   :  { %v2048_v49 = vpop.f32.mrf.mxu3  ;;  %v2106_v25 = vpop.f32.mrf.mxu2  ;;  %2403 = vmatpush.bf16.msrb.mxu0 %v4146_v11 }
 0x30d   :  { %v2049_v51 = vadd.f32 %v2048_v49, %v6522_v57  ;;  %2431 = vmatpush.bf16.msra.mxu2 %v4210_v15 }
 0x30e   :  { %v2078_v44 = vpop.f32.mrf.mxu0 }
 0x30f   :  { %v2127_v29 = vpop.f32.mrf.mxu1  ;;  %v2077_v54 = vadd.f32 %v2076_v52, %v2049_v51 }
 0x310   :  { %v6657_v58 = vadd.f32 %v2127_v29, %v2100_v22  ;;  %v4127_v22 = vld [vmem:[%s7303_s3 + $0x408] sm:$0xf0] }
 0x311   :  { %2332 = vmatmul.bf16.gmra.mxu2 %v6231_v2  ;;  %v2105_v57 = vadd.f32 %v2104_v1, %v2077_v54  ;;  %v4135_v2 = vld [vmem:[%s7303_s3 + $0x418] sm:$0xf0]  ;;  %v4130_v35 = vor.u32 %v4541_v48, %v4127_v22 }
 0x312   :  { %2350 = vmatmul.bf16.vlgmr.msrb.gmra.mxu1 %v6104_v9  ;;  %v4138_v21 = vor.u32 %v4543_v47, %v4135_v2 }
 0x314   :  { %v2050_v9 = vpop.f32.mrf.mxu3  ;;  %v2109_v61 = vpop.f32.mrf.mxu2  ;;  %2404 = vmatpush.bf16.msrb.mxu0 %v4138_v21 }
 0x315   :  { %v2051_v20 = vadd.f32 %v2050_v9, %v6546_v50  ;;  %v4199_v50 = vld [vmem:[%s7303_s3 + $0x498] sm:$0xf0]  ;;  %s4825_s3 = smov 108  }
 0x316   :  { %v2081_v30 = vpop.f32.mrf.mxu0  ;;  %v4202_v1 = vor.u32 %v4559_v16, %v4199_v50 }
 0x317   :  { %v2129_v33 = vpop.f32.mrf.mxu1  ;;  %v2079_v60 = vadd.f32 %v2078_v44, %v2051_v20 }
 0x318   :  { %2405 = vmatpush.bf16.msrb.mxu0 %v4130_v35  ;;  %2432 = vmatpush.bf16.msra.mxu2 %v4202_v1 }
 0x319   :  { %2276 = vmatmul.bf16.gmra.mxu3 %v5908_v10  ;;  %2304 = vmatmul.bf16.gmra.mxu0 %v6083_v28  ;;  %v6688_v6 = vadd.f32 %v2106_v25, %v2079_v60 }
 0x31c   :  { %v2053_v52 = vpop.f32.mrf.mxu3  ;;  %v2111_v42 = vpop.f32.mrf.mxu2  ;;  %2433 = vmatpush.bf16.msra.mxu2 %v4194_v53 }
 0x31d   :  { %v2054_v34 = vadd.f32 %v2053_v52, %v6577_v24 }
 0x31e   :  { %v2083_v7 = vpop.f32.mrf.mxu0 }
 0x31f   :  { %v2132_v10 = vpop.f32.mrf.mxu1  ;;  %v2082_v28 = vadd.f32 %v2081_v30, %v2054_v34 }
 0x320   :  { %v2133_v45 = vadd.f32 %v2132_v10, %v2105_v57 }
 0x321   :  { %2337 = vmatmul.bf16.gmra.mxu2 %v6296_v26  ;;  %v2110_v38 = vadd.f32 %v2109_v61, %v2082_v28 }
 0x322   :  { %2355 = vmatmul.bf16.gmra.mxu1 %v6163_v14 }
 0x324   :  { %v2055_v24 = vpop.f32.mrf.mxu3  ;;  %v2114_v49 = vpop.f32.mrf.mxu2 }
 0x325   :  { %v2056_v25 = vadd.f32 %v2055_v24, %v6599_v59 }
 0x326   :  { %v2086_v51 = vpop.f32.mrf.mxu0 }
 0x327   :  { %v2134_v27 = vpop.f32.mrf.mxu1  ;;  %v2084_v18 = vadd.f32 %v2083_v7, %v2056_v25 }
 0x329   :  { %2281 = vmatmul.bf16.gmra.mxu3 %v5994_v39  ;;  %2309 = vmatmul.bf16.gmra.mxu0 %v6135_v19  ;;  %v6702_v44 = vadd.f32 %v2111_v42, %v2084_v18 }
 0x32c   :  { %v2058_v29 = vpop.f32.mrf.mxu3  ;;  %v2116_v11 = vpop.f32.mrf.mxu2 }
 0x32d   :  { %v2059_v26 = vadd.f32 %v2058_v29, %v6616_v40 }
 0x32e   :  { %v2088_v54 = vpop.f32.mrf.mxu0 }
 0x32f   :  { %v2137_v14 = vpop.f32.mrf.mxu1  ;;  %v2087_v57 = vadd.f32 %v2086_v51, %v2059_v26 }
 0x330   :  { %v2138_v12 = vadd.f32 %v2137_v14, %v2110_v38 }
 0x331   :  { %2378 = vmatmul.bf16.vlgmr.msrb.gmra.mxu2 %v6078_v3  ;;  %v2115_v59 = vadd.f32 %v2114_v49, %v2087_v57 }
 0x332   :  { %2360 = vmatmul.bf16.gmra.mxu1 %v6235_v17 }
 0x334   :  { %v2060_v39 = vpop.f32.mrf.mxu3  ;;  %v2211_v19 = vpop.f32.mrf.mxu2 }
 0x336   :  { %v2183_v47 = vpop.f32.mrf.mxu0 }
 0x337   :  { %v2139_v15 = vpop.f32.mrf.mxu1  ;;  %v2184_v2 = vadd.f32 %v2183_v47, %v6708_v8 }
 0x339   :  { %2383 = vmatmul.bf16.vlgmr.msrb.gmra.mxu3 %v6130_v5  ;;  %2406 = vmatmul.bf16.vlgmr.msrb.gmra.mxu0 %v6184_v0  ;;  %v2212_v40 = vadd.f32 %v2211_v19, %v2184_v2  ;;  %v2130_v5 = vadd.f32 %v2129_v33, %v6642_v4 }
 0x33c   :  { %v2155_v21 = vpop.f32.mrf.mxu3  ;;  %v6713_v9 = vpop.f32.mrf.mxu2 }
 0x33d   :  { %v6716_v3 = vadd.f32 %v2155_v21, %v6657_v58 }
 0x33e   :  { %v6718_v17 = vpop.f32.mrf.mxu0 }
 0x33f   :  { %v2142_v55 = vpop.f32.mrf.mxu1  ;;  %v2468_v58 = vrot.slane %v6716_v3, 2 }
 0x340   :  { %v6720_v61 = vadd.f32 %v2142_v55, %v2115_v59 }
 0x341   :  { %4215 = vmatmul.msk.bf16.vlgmr.msra.gmra.mxu2 %vm1881_vm1, %v6179_v23 }
 0x342   :  { %2365 = vmatmul.bf16.gmra.mxu1 %v6300_v56 }
 0x344   :  { %v2157_v0 = vpop.f32.mrf.mxu3  ;;  %v2216_v20 = vpop.f32.mrf.mxu2 }
 0x345   :  { %v2158_v48 = vadd.f32 %v2157_v0, %v2130_v5 }
 0x346   :  { %v2188_v22 = vpop.f32.mrf.mxu0 }
 0x347   :  { %v2144_v30 = vpop.f32.mrf.mxu1  ;;  %v2469_v35 = vrot.slane %v2158_v48, 2  ;;  %v2189_v60 = vadd.f32 %v2188_v22, %v6708_v8 }
 0x349   :  { %v2470_v16 = vsel %vm67_vm3, %v2468_v58, %v2469_v35  ;;  %2388 = vmatmul.bf16.gmra.mxu3 %v6189_v31  ;;  %2411 = vmatmul.bf16.gmra.mxu0 %v6269_v37  ;;  %v2217_v23 = vadd.f32 %v2216_v20, %v2189_v60  ;;  %v2135_v37 = vadd.f32 %v2134_v27, %v6688_v6 }
 0x34a   :  { %v6732_v56 = vmax.f32 %v6716_v3, %v2470_v16 }
 0x34c   :  { %v2160_v4 = vpop.f32.mrf.mxu3  ;;  %v6734_v33 = vpop.f32.mrf.mxu2 }
 0x34d   :  { %v2161_v50 = vadd.f32 %v2160_v4, %v2133_v45 }
 0x34e   :  { %v6736_v1 = vpop.f32.mrf.mxu0 }
 0x34f   :  { %v2239_v52 = vpop.f32.mrf.mxu1  ;;  %v2474_v42 = vrot.slane %v2161_v50, 2 }
 0x350   :  { %v2240_v34 = vadd.f32 %v2239_v52, %v2212_v40 }
 0x351   :  { %v2475_v13 = vsel %vm67_vm3, %v2469_v35, %v2474_v42  ;;  %4216 = vmatmul.msk.bf16.gmra.mxu2 %vm1881_vm1, %v6253_v43 }
 0x352   :  { %v6741_v31 = vmax.f32 %v2158_v48, %v2475_v13 }
 0x354   :  { %v2162_v41 = vpop.f32.mrf.mxu3  ;;  %v2221_v7 = vpop.f32.mrf.mxu2 }
 0x355   :  { %v2163_v10 = vadd.f32 %v2162_v41, %v2135_v37 }
 0x356   :  { %v2193_v53 = vpop.f32.mrf.mxu0 }
 0x357   :  { %v6744_v28 = vpop.f32.mrf.mxu1  ;;  %v2478_v45 = vrot.slane %v2163_v10, 2  ;;  %v2194_v38 = vadd.f32 %v2193_v53, %v6708_v8  ;;  %v2191_v53 = vadd.f32 %v6736_v1, %v6708_v8 }
 0x359   :  { %v2479_v24 = vsel %vm67_vm3, %v2474_v42, %v2478_v45  ;;  %2393 = vmatmul.bf16.gmra.mxu3 %v6264_v63  ;;  %2416 = vmatmul.bf16.gmra.mxu0 %v6333_v32  ;;  %v2222_v43 = vadd.f32 %v2221_v7, %v2194_v38  ;;  %v2140_v32 = vadd.f32 %v2139_v15, %v6702_v44 }
 0x35a   :  { %v6750_v49 = vmax.f32 %v2161_v50, %v2479_v24 }
 0x35c   :  { %v2165_v25 = vpop.f32.mrf.mxu3  ;;  %v6752_v6 = vpop.f32.mrf.mxu2 }
 0x35d   :  { %v2166_v51 = vadd.f32 %v2165_v25, %v2138_v12 }
 0x35e   :  { %v6754_v27 = vpop.f32.mrf.mxu0 }
 0x35f   :  { %v2244_v18 = vpop.f32.mrf.mxu1  ;;  %v2482_v29 = vrot.slane %v2166_v51, 2  ;;  %v2196_v1 = vadd.f32 %v6754_v27, %v6708_v8 }
 0x360   :  { %v2245_v11 = vadd.f32 %v2244_v18, %v2217_v23 }
 0x361   :  { %v2483_v26 = vsel %vm67_vm3, %v2478_v45, %v2482_v29  ;;  %4217 = vmatmul.msk.bf16.gmra.mxu2 %vm1881_vm1, %v6319_v36 }
 0x362   :  { %v6759_v63 = vmax.f32 %v2163_v10, %v2483_v26 }
 0x364   :  { %v2167_v54 = vpop.f32.mrf.mxu3  ;;  %v2226_v14 = vpop.f32.mrf.mxu2 }
 0x365   :  { %v2168_v57 = vadd.f32 %v2167_v54, %v2140_v32 }
 0x366   :  { %v2198_v59 = vpop.f32.mrf.mxu0 }
 0x367   :  { %v2246_v39 = vpop.f32.mrf.mxu1  ;;  %v2486_v12 = vrot.slane %v2168_v57, 2  ;;  %v2199_v19 = vadd.f32 %v2198_v59, %v6708_v8 }
 0x369   :  { %v2487_v47 = vsel %vm67_vm3, %v2482_v29, %v2486_v12  ;;  %2421 = vmatmul.bf16.gmra.mxu0 %v6397_v62  ;;  %v2227_v2 = vadd.f32 %v2226_v14, %v2199_v19 }
 0x36a   :  { %v6765_v40 = vmax.f32 %v2166_v51, %v2487_v47 }
 0x36c   :  { %v2170_v36 = vpop.f32.mrf.mxu3  ;;  %v2228_v21 = vpop.f32.mrf.mxu2 }
 0x36d   :  { %v2171_v3 = vadd.f32 %v2170_v36, %v6720_v61 }
 0x36e   :  { %v2200_v44 = vpop.f32.mrf.mxu0 }
 0x36f   :  { %v2249_v15 = vpop.f32.mrf.mxu1  ;;  %v2490_v55 = vrot.slane %v2171_v3, 2 }
 0x370   :  { %v2250_v5 = vadd.f32 %v2249_v15, %v2222_v43 }
 0x371   :  { %v2491_v0 = vsel %vm67_vm3, %v2486_v12, %v2490_v55  ;;  %v2510_v20 = vsel %vm67_vm3, %v2490_v55, %v2468_v58  ;;  %4218 = vmatmul.msk.bf16.gmra.mxu2 %vm1881_vm1, %v6383_v46 }
 0x372   :  { %v6772_v48 = vmax.f32 %v2168_v57, %v2491_v0  ;;  %v6774_v62 = vmax.f32 %v2171_v3, %v2510_v20 }
 0x374   :  { %v2172_v22 = vpop.f32.mrf.mxu3  ;;  %v2323_v30 = vpop.f32.mrf.mxu2 }
 0x376   :  { %v2295_v35 = vpop.f32.mrf.mxu0 }
 0x377   :  { %v2251_v60 = vpop.f32.mrf.mxu1 }
 0x37c   :  { %v2267_v61 = vpop.f32.mrf.mxu3  ;;  %v6776_v16 = vpop.f32.mrf.mxu2 }
 0x37d   :  { %v2268_v23 = vadd.f32 %v2267_v61, %v2240_v34  ;;  %v2219_v34 = vadd.f32 %v6734_v33, %v2191_v53  ;;  %v2224_v33 = vadd.f32 %v6752_v6, %v2196_v1  ;;  %v2186_v6 = vadd.f32 %v6718_v17, %v6708_v8 }
 0x37e   :  { %v2297_v4 = vpop.f32.mrf.mxu0 }
 0x37f   :  { %v2254_v50 = vpop.f32.mrf.mxu1  ;;  %v2296_v52 = vadd.f32 %v2295_v35, %v2268_v23  ;;  %v2247_v51 = vadd.f32 %v2246_v39, %v2219_v34  ;;  %v2252_v36 = vadd.f32 %v2251_v60, %v2224_v33 }
 0x380   :  { %v2255_v42 = vadd.f32 %v2254_v50, %v2227_v2 }
 0x381   :  { %v2324_v58 = vadd.f32 %v2323_v30, %v2296_v52 }
 0x384   :  { %v2269_v13 = vpop.f32.mrf.mxu3  ;;  %v2328_v37 = vpop.f32.mrf.mxu2 }
 0x386   :  { %v2300_v46 = vpop.f32.mrf.mxu0 }
 0x387   :  { %v2256_v41 = vpop.f32.mrf.mxu1 }
 0x38c   :  { %v2272_v7 = vpop.f32.mrf.mxu3  ;;  %v2330_v10 = vpop.f32.mrf.mxu2 }
 0x38d   :  { %v2273_v45 = vadd.f32 %v2272_v7, %v2245_v11 }
 0x38e   :  { %v2302_v38 = vpop.f32.mrf.mxu0 }
 0x38f   :  { %v2351_v24 = vpop.f32.mrf.mxu1  ;;  %v2301_v43 = vadd.f32 %v2300_v46, %v2273_v45  ;;  %v2214_v46 = vadd.f32 %v6713_v9, %v2186_v6 }
 0x391   :  { %v2329_v25 = vadd.f32 %v2328_v37, %v2301_v43  ;;  %v2242_v41 = vadd.f32 %v6744_v28, %v2214_v46  ;;  %v2352_v43 = vadd.f32 %v2351_v24, %v2324_v58 }
 0x393   :  { %v2270_v7 = vadd.f32 %v2269_v13, %v2242_v41 }
 0x394   :  { %v2274_v18 = vpop.f32.mrf.mxu3  ;;  %v2333_v29 = vpop.f32.mrf.mxu2 }
 0x395   :  { %v2275_v26 = vadd.f32 %v2274_v18, %v2247_v51 }
 0x396   :  { %v2305_v32 = vpop.f32.mrf.mxu0 }
 0x397   :  { %v2353_v54 = vpop.f32.mrf.mxu1  ;;  %v2303_v14 = vadd.f32 %v2302_v38, %v2275_v26  ;;  %v2298_v38 = vadd.f32 %v2297_v4, %v2270_v7 }
 0x399   :  { %v6781_v57 = vadd.f32 %v2330_v10, %v2303_v14  ;;  %v2326_v34 = vadd.f32 %v6776_v16, %v2298_v38 }
 0x39b   :  { %v2354_v51 = vadd.f32 %v2353_v54, %v2326_v34 }
 0x39c   :  { %v2277_v59 = vpop.f32.mrf.mxu3  ;;  %v2335_v12 = vpop.f32.mrf.mxu2 }
 0x39d   :  { %v2278_v11 = vadd.f32 %v2277_v59, %v2250_v5 }
 0x39e   :  { %v2307_v19 = vpop.f32.mrf.mxu0 }
 0x39f   :  { %v2356_v47 = vpop.f32.mrf.mxu1  ;;  %v2306_v2 = vadd.f32 %v2305_v32, %v2278_v11 }
 0x3a0   :  { %v2357_v11 = vadd.f32 %v2356_v47, %v2329_v25 }
 0x3a1   :  { %v6786_v39 = vadd.f32 %v2333_v29, %v2306_v2 }
 0x3a4   :  { %v2279_v21 = vpop.f32.mrf.mxu3  ;;  %v2338_v3 = vpop.f32.mrf.mxu2 }
 0x3a5   :  { %v2280_v44 = vadd.f32 %v2279_v21, %v2252_v36 }
 0x3a6   :  { %v2310_v15 = vpop.f32.mrf.mxu0 }
 0x3a7   :  { %v2358_v55 = vpop.f32.mrf.mxu1  ;;  %v2308_v0 = vadd.f32 %v2307_v19, %v2280_v44 }
 0x3a8   :  { %v2359_v25 = vadd.f32 %v2358_v55, %v6781_v57 }
 0x3a9   :  { %v6788_v20 = vadd.f32 %v2335_v12, %v2308_v0 }
 0x3ac   :  { %v2282_v22 = vpop.f32.mrf.mxu3  ;;  %v2340_v30 = vpop.f32.mrf.mxu2 }
 0x3ad   :  { %v2283_v27 = vadd.f32 %v2282_v22, %v2255_v42 }
 0x3ae   :  { %v2312_v5 = vpop.f32.mrf.mxu0 }
 0x3af   :  { %v2361_v35 = vpop.f32.mrf.mxu1  ;;  %v2311_v61 = vadd.f32 %v2310_v15, %v2283_v27 }
 0x3b1   :  { %v6790_v23 = vadd.f32 %v2338_v3, %v2311_v61 }
 0x3b4   :  { %v2284_v60 = vpop.f32.mrf.mxu3  ;;  %v2379_v50 = vpop.f32.mrf.mxu2 }
 0x3b5   :  { %v2380_v18 = vadd.f32 %v2379_v50, %v2352_v43  ;;  %v2362_v60 = vadd.f32 %v2361_v35, %v6786_v39 }
 0x3b6   :  { %v2407_v52 = vpop.f32.mrf.mxu0 }
 0x3b7   :  { %v6794_v37 = vpop.f32.mrf.mxu1  ;;  %v2408_v9 = vadd.f32 %v2407_v52, %v2380_v18  ;;  %v4770_v18 = vpack.i.bf16 %v6759_v63, %v6750_v49 }
 0x3b8   :  { %v2364_v39 = vadd.f32 %v6794_v37, %v6788_v20 }
 0x3bc   :  { %v2381_v10 = vpop.f32.mrf.mxu2  ;;  %v2384_v42 = vpop.f32.mrf.mxu3 }
 0x3bd   :  { %v2382_v32 = vadd.f32 %v2381_v10, %v2354_v51  ;;  %v2385_v16 = vadd.f32 %v2384_v42, %v2357_v11  ;;  %v4765_v42 = vpack.i.bf16 %v6741_v31, %v6732_v56  ;;  %v4785_v11 = vpack.i.bf16 %v6772_v48, %v6765_v40 }
 0x3be   :  { %v2409_v53 = vpop.f32.mrf.mxu0 }
 0x3bf   :  { %v6798_v45 = vpop.f32.mrf.mxu1  ;;  %v2410_v14 = vadd.f32 %v2409_v53, %v2382_v32 }
 0x3c0   :  { %v2367_v20 = vadd.f32 %v6798_v45, %v6790_v23 }
 0x3c4   :  { %v2386_v8 = vpop.f32.mrf.mxu3  ;;  %v2435_v17 = vpop.f32.mrf.mxu2 }
 0x3c5   :  { %v6801_v28 = vadd.f32 %v2435_v17, %v2408_v9  ;;  %v2387_v44 = vadd.f32 %v2386_v8, %v2359_v25  ;;  %v4566_v25 = vld [vmem:[%s7305_s5 + $0x18] sm:$0xff] }
 0x3c6   :  { %v2412_v29 = vpop.f32.mrf.mxu0 }
 0x3c7   :  { %v2368_v26 = vpop.f32.mrf.mxu1  ;;  %v2471_v4 = vrot.slane %v6801_v28, 2  ;;  %v2413_v19 = vadd.f32 %v2412_v29, %v2385_v16 }
 0x3cc   :  { %v2389_v13 = vpop.f32.mrf.mxu3  ;;  %v2437_v59 = vpop.f32.mrf.mxu2 }
 0x3cd   :  { %v2438_v12 = vadd.f32 %v2437_v59, %v2410_v14  ;;  %v2390_v57 = vadd.f32 %v2389_v13, %v2362_v60 }
 0x3ce   :  { %v2414_v1 = vpop.f32.mrf.mxu0 }
 0x3cf   :  { %v2472_v58 = vrot.slane %v2438_v12, 2  ;;  %v2415_v22 = vadd.f32 %v2414_v1, %v2387_v44  ;;  %v4564_v44 = vld [vmem:[%s7305_s5 + $0x8] sm:$0xff] }
 0x3d1   :  { %v2473_v24 = vsel %vm67_vm3, %v2471_v4, %v2472_v58 }
 0x3d2   :  { %v6808_v54 = vmax.f32 %v6801_v28, %v2473_v24  ;;  %v4570_v28 = vld [vmem:[%s7305_s5 + $0x38] sm:$0xff] }
 0x3d3   :  { %3174 = vmatpush.bf16.msra.mxu1 %v4570_v28 }
 0x3d4   :  { %v2391_v2 = vpop.f32.mrf.mxu3  ;;  %v2440_v33 = vpop.f32.mrf.mxu2  ;;  %v4745_v36 = vpack.i.bf16 %v6808_v54, %v6732_v56 }
 0x3d5   :  { %v2441_v21 = vadd.f32 %v2440_v33, %v2413_v19  ;;  %v2392_v43 = vadd.f32 %v2391_v2, %v2364_v39 }
 0x3d6   :  { %v2417_v3 = vpop.f32.mrf.mxu0  ;;  %4746 = vrot.lane.b32.xlu2 %v4745_v36, %s4825_s3 }
 0x3d7   :  { %v2476_v47 = vrot.slane %v2441_v21, 2  ;;  %v2418_v46 = vadd.f32 %v2417_v3, %v2390_v57  ;;  %v4567_v3 = vld [vmem:[%s7305_s5 + $0x20] sm:$0xff] }
 0x3d9   :  { %v2477_v15 = vsel %vm67_vm3, %v2472_v58, %v2476_v47 }
 0x3da   :  { %v6815_v0 = vmax.f32 %v2438_v12, %v2477_v15  ;;  %v4563_v15 = vld [vmem:[%s7305_s5] sm:$0xff] }
 0x3dc   :  { %v2394_v30 = vpop.f32.mrf.mxu3  ;;  %v2442_v27 = vpop.f32.mrf.mxu2  ;;  %v4750_v5 = vpack.i.bf16 %v6815_v0, %v6741_v31 }
 0x3dd   :  { %v2443_v61 = vadd.f32 %v2442_v27, %v2415_v22  ;;  %v2395_v9 = vadd.f32 %v2394_v30, %v2367_v20 }
 0x3de   :  { %v2419_v6 = vpop.f32.mrf.mxu0  ;;  %4751 = vrot.lane.b32.xlu0 %v4750_v5, %s4825_s3 }
 0x3df   :  { %v2480_v50 = vrot.slane %v2443_v61, 2  ;;  %v2420_v17 = vadd.f32 %v2419_v6, %v2392_v43 }
 0x3e1   :  { %v2481_v55 = vsel %vm67_vm3, %v2476_v47, %v2480_v50  ;;  %v4565_v47 = vld [vmem:[%s7305_s5 + $0x10] sm:$0xff] }
 0x3e2   :  { %v6822_v52 = vmax.f32 %v2441_v21, %v2481_v55  ;;  %v4568_v21 = vld [vmem:[%s7305_s5 + $0x28] sm:$0xff] }
 0x3e4   :  { %v2396_v41 = vpop.f32.mrf.mxu3  ;;  %v2445_v7 = vpop.f32.mrf.mxu2  ;;  %v4755_v10 = vpack.i.bf16 %v6822_v52, %v6750_v49 }
 0x3e5   :  { %v2446_v53 = vadd.f32 %v2445_v7, %v2418_v46 }
 0x3e6   :  { %v2422_v38 = vpop.f32.mrf.mxu0  ;;  %4756 = vrot.lane.b32.xlu1 %v4755_v10, %s4825_s3  ;;  %4766 = vrot.lane.b32.xlu0 %v4765_v42, %s4826_s0 }
 0x3e7   :  { %v2484_v35 = vrot.slane %v2446_v53, 2  ;;  %v2423_v59 = vadd.f32 %v2422_v38, %v2395_v9 }
 0x3e9   :  { %v2485_v34 = vsel %vm67_vm3, %v2480_v50, %v2484_v35 }
 0x3ea   :  { %v6833_v8 = vmax.f32 %v2443_v61, %v2485_v34 }
 0x3ec   :  { %v2447_v51 = vpop.f32.mrf.mxu2  ;;  %v4760_v29 = vpack.i.bf16 %v6833_v8, %v6759_v63 }
 0x3ed   :  { %v2448_v26 = vadd.f32 %v2447_v51, %v2420_v17 }
 0x3ee   :  { %v2424_v32 = vpop.f32.mrf.mxu0  ;;  %4771 = vrot.lane.b32.xlu1 %v4770_v18, %s4826_s0  ;;  %4761 = vrot.lane.b32.xlu2 %v4760_v29, %s4825_s3 }
 0x3ef   :  { %v2488_v37 = vrot.slane %v2448_v26, 2 }
 0x3f1   :  { %v2489_v14 = vsel %vm67_vm3, %v2484_v35, %v2488_v37 }
 0x3f2   :  { %v6844_v13 = vmax.f32 %v2446_v53, %v2489_v14 }
 0x3f4   :  { %v2450_v12 = vpop.f32.mrf.mxu2  ;;  %v4775_v1 = vpack.i.bf16 %v6844_v13, %v6765_v40 }
 0x3f5   :  { %v2451_v58 = vadd.f32 %v2450_v12, %v2423_v59 }
 0x3f6   :  { %4776 = vrot.lane.b32.xlu2 %v4775_v1, %s4825_s3  ;;  %4786 = vrot.lane.b32.xlu1 %v4785_v11, %s4826_s0 }
 0x3f7   :  { %v2492_v23 = vrot.slane %v2451_v58, 2 }
 0x3f9   :  { %v2511_v45 = vsel %vm67_vm3, %v2492_v23, %v2471_v4  ;;  %v2493_v16 = vsel %vm67_vm3, %v2488_v37, %v2492_v23  ;;  %v4569_v4 = vld [vmem:[%s7305_s5 + $0x30] sm:$0xff] }
 0x3fa   :  { %v6856_v24 = vmax.f32 %v2451_v58, %v2511_v45  ;;  %v6858_v19 = vmax.f32 %v2448_v26, %v2493_v16  ;;  %3175 = vmatpush.bf16.msra.mxu1 %v4569_v4 }
 0x3fc   :  { %v2452_v2 = vpop.f32.mrf.mxu2  ;;  %v4790_v33 = vpack.i.bf16 %v6856_v24, %v6774_v62  ;;  %v4780_v36 = vpack.i.bf16 %v6858_v19, %v6772_v48 }
 0x3fe   :  { %4791 = vrot.lane.b32.xlu2 %v4790_v33, %s4825_s3  ;;  %4781 = vrot.lane.b32.xlu0 %v4780_v36, %s4825_s3 }
 0x3ff   :  { %3176 = vmatpush.bf16.msra.mxu1 %v4568_v21 }
 0x403   :  { %3177 = vmatpush.bf16.msra.mxu1 %v4567_v3 }
 0x406   :  { %2602 = vrot.lane.b32.xlu0 %v6774_v62, %s4826_s0 }
 0x407   :  { %3178 = vmatpush.bf16.msra.mxu1 %v4566_v25 }
 0x40b   :  { %3179 = vmatpush.bf16.msra.mxu1 %v4565_v47 }
 0x40f   :  { %3180 = vmatpush.bf16.msra.mxu1 %v4564_v44 }
 0x413   :  { %3181 = vmatpush.bf16.msra.mxu1 %v4563_v15 }
 0x430   :  { %v4747_v22 = vpop.permute.xlu2 %4746 }
 0x431   :  { %v4749_v27 = vunpack.i.h.bf16 %v4747_v22  ;;  %v4748_v5 = vunpack.i.l.bf16 %v4747_v22 }
 0x433   :  { %v2569_v50 = vsel %vm2568_vm2, %v4748_v5, %v4749_v27 }
 0x434   :  { %v2618_v41 = vmax.f32 %v6732_v56, %v2569_v50 }
 0x436   :  { %v2632_v18 = vmax.f32 %v2618_v41, 0.0 }
 0x448   :  { %v4762_v60 = vpop.permute.xlu2 %4761 }
 0x449   :  { %v4764_v42 = vunpack.i.h.bf16 %v4762_v60  ;;  %v4763_v53 = vunpack.i.l.bf16 %v4762_v60 }
 0x44b   :  { %v2572_v29 = vsel %vm2568_vm2, %v4763_v53, %v4764_v42 }
 0x44c   :  { %v2624_v59 = vmax.f32 %v6759_v63, %v2572_v29 }
 0x44e   :  { %v2638_v36 = vmax.f32 %v2624_v59, 0.0 }
 0x450   :  { %v4752_v30 = vpop.permute.xlu0 %4751  ;;  %v4777_v26 = vpop.permute.xlu2 %4776 }
 0x451   :  { %v4754_v61 = vunpack.i.h.bf16 %v4752_v30  ;;  %v4753_v6 = vunpack.i.l.bf16 %v4752_v30  ;;  %v4779_v12 = vunpack.i.h.bf16 %v4777_v26  ;;  %v4778_v11 = vunpack.i.l.bf16 %v4777_v26 }
 0x453   :  { %v2570_v57 = vsel %vm2568_vm2, %v4753_v6, %v4754_v61 }
 0x454   :  { %v2620_v38 = vmax.f32 %v6741_v31, %v2570_v57 }
 0x456   :  { %v2634_v56 = vmax.f32 %v2620_v38, 0.0 }
 0x458   :  { %v4757_v55 = vpop.permute.xlu1 %4756  ;;  %v4767_v46 = vpop.permute.xlu0 %4766 }
 0x459   :  { %v4769_v7 = vunpack.i.h.bf16 %v4767_v46  ;;  %v4768_v10 = vunpack.i.l.bf16 %v4767_v46  ;;  %v4759_v39 = vunpack.i.h.bf16 %v4757_v55  ;;  %v4758_v35 = vunpack.i.l.bf16 %v4757_v55  ;;  %v4792_v46 = vpop.permute.xlu2 %4791 }
 0x45a   :  { %v4794_v53 = vunpack.i.h.bf16 %v4792_v46 }
 0x45b   :  { %v2611_v43 = vsel %vm358_vm6, %v4749_v27, %v4768_v10  ;;  %v2612_v34 = vsel %vm358_vm6, %v4754_v61, %v4769_v7  ;;  %v2571_v37 = vsel %vm2568_vm2, %v4758_v35, %v4759_v39 }
 0x45c   :  { %v2619_v17 = vmax.f32 %v6808_v54, %v2611_v43  ;;  %v2621_v51 = vmax.f32 %v6815_v0, %v2612_v34  ;;  %v2622_v0 = vmax.f32 %v6750_v49, %v2571_v37  ;;  %v2573_v49 = vsel %vm2568_vm2, %v4778_v11, %v4779_v12 }
 0x45d   :  { %v4793_v34 = vunpack.i.l.bf16 %v4792_v46 }
 0x45e   :  { %v2633_v32 = vmax.f32 %v2619_v17, 0.0  ;;  %v2635_v20 = vmax.f32 %v2621_v51, 0.0  ;;  %v2636_v21 = vmax.f32 %v2622_v0, 0.0 }
 0x460   :  { %v2646_v31 = vpack.c.bf16 %v2633_v32, %v2632_v18  ;;  %v6902_v9 = vpack.c.bf16 %v2635_v20, %v2634_v56  ;;  %v4772_v14 = vpop.permute.xlu1 %4771 }
 0x461   :  { %v4774_v1 = vunpack.i.h.bf16 %v4772_v14  ;;  %v4773_v54 = vunpack.i.l.bf16 %v4772_v14 }
 0x462   :  { %v6906_v58 = vunpack.c.l.b16 %v2646_v31  ;;  %v2662_v23 = vunpack.c.l.b16 %v6902_v9  ;;  %v6914_v28 = vunpack.c.h.b16 %v2646_v31  ;;  %v2663_v4 = vunpack.c.h.b16 %v6902_v9  ;;  %v4584_v9 = vld [vmem:[%s7305_s5 + $0xa8] sm:$0xff] }
 0x463   :  { %v2613_v45 = vsel %vm358_vm6, %v4759_v39, %v4773_v54  ;;  %v2614_v16 = vsel %vm358_vm6, %v4764_v42, %v4774_v1  ;;  %v2575_v31 = vsel %vm2568_vm2, %v4793_v34, %v4794_v53 }
 0x464   :  { %v2623_v2 = vmax.f32 %v6822_v52, %v2613_v45  ;;  %v2625_v33 = vmax.f32 %v6833_v8, %v2614_v16  ;;  %v2674_v63 = vpack.c.b16 %v2662_v23, %v6906_v58  ;;  %v2626_v52 = vmax.f32 %v6765_v40, %v2573_v49 }
 0x465   :  { %v6926_v22 = vpack.c.b16 %v2663_v4, %v6914_v28 }
 0x466   :  { %v2637_v3 = vmax.f32 %v2623_v2, 0.0  ;;  %v2639_v25 = vmax.f32 %v2625_v33, 0.0  ;;  %3182 = vmatmul.bf16.vlgmr.msra.gmra.mxu1 %v2674_v63  ;;  %v2640_v55 = vmax.f32 %v2626_v52, 0.0  ;;  %v6948_v10 = vrot.slane %v2674_v63, 2 }
 0x467   :  { %v6943_v41 = vrot.slane %v6926_v22, 2 }
 0x468   :  { %v6918_v47 = vpack.c.bf16 %v2639_v25, %v2638_v36  ;;  %v4787_v44 = vpop.permute.xlu1 %4786  ;;  %v6920_v15 = vpack.c.bf16 %v2637_v3, %v2636_v21 }
 0x469   :  { %v4788_v8 = vunpack.i.l.bf16 %v4787_v44  ;;  %v4789_v17 = vunpack.i.h.bf16 %v4787_v44 }
 0x46a   :  { %v2664_v30 = vunpack.c.l.b16 %v6920_v15  ;;  %v2665_v27 = vunpack.c.h.b16 %v6920_v15  ;;  %v2666_v5 = vunpack.c.l.b16 %v6918_v47  ;;  %v2667_v61 = vunpack.c.h.b16 %v6918_v47 }
 0x46b   :  { %v2615_v6 = vsel %vm358_vm6, %v4779_v12, %v4788_v8  ;;  %v2630_v12 = vmax.f32 %v6774_v62, %v2575_v31  ;;  %v4580_v31 = vld [vmem:[%s7305_s5 + $0x88] sm:$0xff] }
 0x46c   :  { %v2627_v60 = vmax.f32 %v6844_v13, %v2615_v6  ;;  %v2676_v50 = vpack.c.b16 %v2666_v5, %v2664_v30  ;;  %v6934_v40 = vpack.c.b16 %v2664_v30, %v2662_v23  ;;  %v6940_v57 = vpack.c.b16 %v2667_v61, %v2665_v27 }
 0x46d   :  { %v2644_v16 = vmax.f32 %v2630_v12, 0.0  ;;  %v4594_v12 = vld [vmem:[%s7305_s5 + $0xf8] sm:$0xff] }
 0x46e   :  { %v2641_v7 = vmax.f32 %v2627_v60, 0.0  ;;  %2755 = vrot.lane.b32.xlu0 %v6934_v40, %s4824_s2  ;;  %v2686_v13 = vrot.slane %v6940_v57, 2  ;;  %v2683_v42 = vrot.slane %v2676_v50, 2  ;;  %3258 = vmatpush.bf16.msrb.mxu2 %v4594_v12 }
 0x470   :  { %v4782_v38 = vpop.permute.xlu0 %4781  ;;  %v2687_v39 = vsel %vm67_vm3, %v6943_v41, %v2686_v13  ;;  %v2684_v35 = vsel %vm67_vm3, %v6948_v10, %v2683_v42  ;;  %v2650_v43 = vpack.c.bf16 %v2641_v7, %v2640_v55  ;;  %v2697_v55 = vpack.c.b16 %v6914_v28, %v6914_v28  ;;  %v4585_v7 = vld [vmem:[%s7305_s5 + $0xb0] sm:$0xff] }
 0x471   :  { %v4784_v51 = vunpack.i.h.bf16 %v4782_v38  ;;  %v4783_v18 = vunpack.i.l.bf16 %v4782_v38  ;;  %2736 = vrot.lane.b32.xlu2 %v2687_v39, %s4827_s14  ;;  %2734 = vrot.lane.b32.xlu1 %v2684_v35, %s4827_s14  ;;  %v4583_v38 = vld [vmem:[%s7305_s5 + $0xa0] sm:$0xff]  ;;  %v4577_v35 = vld [vmem:[%s7305_s5 + $0x70] sm:$0xff] }
 0x472   :  { %v2668_v29 = vunpack.c.l.b16 %v2650_v43  ;;  %v2669_v0 = vunpack.c.h.b16 %v2650_v43  ;;  %v2712_v43 = vrot.slane %v6934_v40, 2 }
 0x473   :  { %v2616_v56 = vsel %vm358_vm6, %v4784_v51, %v4789_v17  ;;  %v2574_v26 = vsel %vm2568_vm2, %v4783_v18, %v4784_v51  ;;  %v4582_v17 = vld [vmem:[%s7305_s5 + $0x98] sm:$0xff] }
 0x474   :  { %v2629_v32 = vmax.f32 %v6858_v19, %v2616_v56  ;;  %v2628_v20 = vmax.f32 %v6772_v48, %v2574_v26  ;;  %v6960_v37 = vpack.c.b16 %v2668_v29, %v2666_v5  ;;  %v4586_v5 = vld [vmem:[%s7305_s5 + $0xb8] sm:$0xff]  ;;  %v2709_v46 = vpack.c.b16 %v2669_v0, %v2667_v61 }
 0x475   :  { %3230 = vmatpush.bf16.msra.mxu0 %v4586_v5  ;;  %v4596_v5 = vld [vmem:[%s7305_s5 + $0x108] sm:$0xff] }
 0x476   :  { %v2643_v14 = vmax.f32 %v2629_v32, 0.0  ;;  %v2642_v59 = vmax.f32 %v2628_v20, 0.0  ;;  %3187 = vmatmul.bf16.gmra.mxu1 %v2676_v50  ;;  %2759 = vrot.lane.b32.xlu0 %v6960_v37, %s4824_s2  ;;  %v2696_v50 = vpack.c.b16 %v6906_v58, %v6906_v58  ;;  %v2716_v58 = vrot.slane %v2709_v46, 2  ;;  %v4576_v32 = vld [vmem:[%s7305_s5 + $0x68] sm:$0xff]  ;;  %v4581_v20 = vld [vmem:[%s7305_s5 + $0x90] sm:$0xff] }
 0x477   :  { %v2713_v39 = vrot.slane %v6960_v37, 2  ;;  %v4575_v37 = vld [vmem:[%s7305_s5 + $0x60] sm:$0xff] }
 0x478   :  { %v2651_v1 = vpack.c.bf16 %v2643_v14, %v2642_v59  ;;  %v2603_v54 = vpop.permute.xlu0 %2602  ;;  %v4573_v14 = vld [vmem:[%s7305_s5 + $0x50] sm:$0xff]  ;;  %v4572_v59 = vld [vmem:[%s7305_s5 + $0x48] sm:$0xff] }
 0x479   :  { %v2617_v11 = vsel %vm358_vm6, %v4794_v53, %v2603_v54  ;;  %v2699_v53 = vrot.slane %v2697_v55, 6  ;;  %3231 = vmatpush.bf16.msra.mxu0 %v4585_v7  ;;  %v2714_v51 = vsel %vm67_vm3, %v2712_v43, %v2713_v39  ;;  %v4593_v54 = vld [vmem:[%s7305_s5 + $0xf0] sm:$0xff] }
 0x47a   :  { %v2670_v19 = vunpack.c.l.b16 %v2651_v1  ;;  %v2631_v48 = vmax.f32 %v6856_v24, %v2617_v11  ;;  %v2671_v23 = vunpack.c.h.b16 %v2651_v1  ;;  %v4571_v1 = vld [vmem:[%s7305_s5 + $0x40] sm:$0xff]  ;;  %v4602_v11 = vld [vmem:[%s7305_s5 + $0x138] sm:$0xff]  ;;  %3259 = vmatpush.bf16.msrb.mxu2 %v4593_v54 }
 0x47b   :  { %4614 = vmatpush.bf16.msrb.mxu1 %v4602_v11 }
 0x47c   :  { %v2678_v45 = vpack.c.b16 %v2670_v19, %v2668_v29  ;;  %v2645_v2 = vmax.f32 %v2631_v48, 0.0  ;;  %v6968_v33 = vpack.c.b16 %v2671_v23, %v2669_v0  ;;  %v4592_v0 = vld [vmem:[%s7305_s5 + $0xe8] sm:$0xff]  ;;  %v4591_v48 = vld [vmem:[%s7305_s5 + $0xe0] sm:$0xff] }
 0x47d   :  { %3232 = vmatpush.bf16.msra.mxu0 %v4584_v9 }
 0x47e   :  { %v2652_v63 = vpack.c.bf16 %v2645_v2, %v2644_v16  ;;  %v2690_v36 = vrot.slane %v6968_v33, 2  ;;  %v2688_v49 = vrot.slane %v2678_v45, 2  ;;  %3260 = vmatpush.bf16.msrb.mxu2 %v4592_v0  ;;  %v4590_v16 = vld [vmem:[%s7305_s5 + $0xd8] sm:$0xff] }
 0x480   :  { %v2673_v21 = vunpack.c.h.b16 %v2652_v63  ;;  %v2691_v62 = vsel %vm67_vm3, %v2686_v13, %v2690_v36  ;;  %v2689_v3 = vsel %vm67_vm3, %v2683_v42, %v2688_v49  ;;  %v2672_v25 = vunpack.c.l.b16 %v2652_v63  ;;  %v4598_v63 = vld [vmem:[%s7305_s5 + $0x118] sm:$0xff] }
 0x481   :  { %2740 = vrot.lane.b32.xlu2 %v2691_v62, %s4827_s14  ;;  %2738 = vrot.lane.b32.xlu1 %v2689_v3, %s4827_s14  ;;  %v2707_v13 = vpack.c.b16 %v2665_v27, %v2663_v4  ;;  %v2698_v42 = vrot.slane %v2696_v50, 6  ;;  %v4578_v4 = vld [vmem:[%s7305_s5 + $0x78] sm:$0xff] }
 0x482   :  { %v2680_v24 = vpack.c.b16 %v2672_v25, %v2672_v25  ;;  %v2710_v44 = vpack.c.b16 %v2672_v25, %v2670_v19  ;;  %v6975_v52 = vpack.c.b16 %v2673_v21, %v2673_v21  ;;  %v2711_v27 = vpack.c.b16 %v2673_v21, %v2671_v23  ;;  %3202 = vmatpush.bf16.msra.mxu3 %v4578_v4  ;;  %v4601_v19 = vld [vmem:[%s7305_s5 + $0x130] sm:$0xff]  ;;  %v4600_v23 = vld [vmem:[%s7305_s5 + $0x128] sm:$0xff] }
 0x483   :  { %v2715_v61 = vrot.slane %v2707_v13, 2  ;;  %3233 = vmatpush.bf16.msra.mxu0 %v4583_v38  ;;  %4615 = vmatpush.bf16.msrb.mxu1 %v4601_v19 }
 0x484   :  { %2763 = vrot.lane.b32.xlu0 %v2710_v44, %s4824_s2  ;;  %v2694_v8 = vrot.slane %v6975_v52, 2  ;;  %v2692_v30 = vrot.slane %v2680_v24, 2  ;;  %v2720_v34 = vrot.slane %v2711_v27, 2  ;;  %v2718_v29 = vrot.slane %v2710_v44, 2  ;;  %3261 = vmatpush.bf16.msrb.mxu2 %v4591_v48  ;;  %v4597_v44 = vld [vmem:[%s7305_s5 + $0x110] sm:$0xff] }
 0x485   :  { %v2717_v15 = vsel %vm67_vm3, %v2715_v61, %v2716_v58 }
 0x486   :  { %3192 = vmatmul.bf16.gmra.mxu1 %v2678_v45  ;;  %v2695_v6 = vsel %vm67_vm3, %v2690_v36, %v2694_v8  ;;  %v2693_v60 = vsel %vm67_vm3, %v2688_v49, %v2692_v30  ;;  %v2705_v28 = vsel %vm761_vm12, %v2694_v8, %v2699_v53  ;;  %v2702_v47 = vsel %vm761_vm12, %v2692_v30, %v2698_v42  ;;  %v4599_v45 = vld [vmem:[%s7305_s5 + $0x120] sm:$0xff]  ;;  %v4589_v36 = vld [vmem:[%s7305_s5 + $0xd0] sm:$0xff]  ;;  %v4588_v30 = vld [vmem:[%s7305_s5 + $0xc8] sm:$0xff] }
 0x487   :  { %3203 = vmatpush.bf16.msra.mxu3 %v4577_v35  ;;  %v2721_v18 = vsel %vm67_vm3, %v2716_v58, %v2720_v34  ;;  %3234 = vmatpush.bf16.msra.mxu0 %v4582_v17  ;;  %v2719_v40 = vsel %vm67_vm3, %v2713_v39, %v2718_v29  ;;  %v2727_v56 = vsel %vm67_vm3, %v2720_v34, %v6943_v41 }
 0x488   :  { %v2724_v26 = vsel %vm67_vm3, %v2718_v29, %v6948_v10  ;;  %4616 = vmatpush.bf16.msrb.mxu1 %v4600_v23  ;;  %3262 = vmatpush.bf16.msrb.mxu2 %v4590_v16  ;;  %vm2750_vm3 = vcmask 261120   ;;  %v3331_v16 = vld [vmem:[%s7307_s7 + $0x18] sm:$0x1] }
 0x489   :  { %2744 = vrot.lane.b32.xlu2 %v2695_v6, %s4827_s14  ;;  %2742 = vrot.lane.b32.xlu1 %v2693_v60, %s4827_s14  ;;  %v4595_v60 = vld [vmem:[%s7305_s5 + $0x100] sm:$0xff] }
 0x48b   :  { %3204 = vmatpush.bf16.msra.mxu3 %v4576_v32  ;;  %3235 = vmatpush.bf16.msra.mxu0 %v4581_v20 }
 0x48c   :  { %2767 = vrot.lane.b32.xlu0 %v2696_v50, %s4824_s2  ;;  %4617 = vmatpush.bf16.msrb.mxu1 %v4599_v45 }
 0x48d   :  { %3263 = vmatpush.bf16.msrb.mxu2 %v4589_v36 }
 0x48f   :  { %3205 = vmatpush.bf16.msra.mxu3 %v4575_v37  ;;  %3236 = vmatpush.bf16.msra.mxu0 %v4580_v31 }
 0x490   :  { %4618 = vmatpush.bf16.msrb.mxu1 %v4598_v63 }
 0x491   :  { %2748 = vrot.lane.b32.xlu2 %v2705_v28, %s4827_s14  ;;  %2746 = vrot.lane.b32.xlu1 %v2702_v47, %s4827_s14 }
 0x492   :  { %3264 = vmatpush.bf16.msrb.mxu2 %v4588_v30 }
 0x494   :  { %2779 = vrot.lane.b32.xlu0 %v2717_v15, %s4822_s17  ;;  %4619 = vmatpush.bf16.msrb.mxu1 %v4597_v44 }
 0x496   :  { %3197 = vmatmul.bf16.gmra.mxu1 %v2680_v24 }
 0x498   :  { %4620 = vmatpush.bf16.msrb.mxu1 %v4596_v5 }
 0x499   :  { %2777 = vrot.lane.b32.xlu2 %v2714_v51, %s4822_s17  ;;  %2757 = vrot.lane.b32.xlu1 %v2707_v13, %s4824_s2 }
 0x49c   :  { %2783 = vrot.lane.b32.xlu0 %v2721_v18, %s4822_s17  ;;  %4621 = vmatpush.bf16.msrb.mxu1 %v4595_v60 }
 0x4a1   :  { %2781 = vrot.lane.b32.xlu2 %v2719_v40, %s4822_s17  ;;  %2761 = vrot.lane.b32.xlu1 %v2709_v46, %s4824_s2 }
 0x4a4   :  { %2787 = vrot.lane.b32.xlu0 %v2727_v56, %s4822_s17 }
 0x4a9   :  { %2785 = vrot.lane.b32.xlu2 %v2724_v26, %s4822_s17  ;;  %2765 = vrot.lane.b32.xlu1 %v2711_v27, %s4824_s2 }
 0x4ac   :  { %2791 = vrot.lane.b32.xlu0 %v6943_v41, %s4822_s17  ;;  %v4574_v41 = vld [vmem:[%s7305_s5 + $0x58] sm:$0xff] }
 0x4ad   :  { %3206 = vmatpush.bf16.msra.mxu3 %v4574_v41 }
 0x4b1   :  { %2789 = vrot.lane.b32.xlu2 %v6948_v10, %s4822_s17  ;;  %2769 = vrot.lane.b32.xlu1 %v2697_v55, %s4824_s2  ;;  %v4579_v10 = vld [vmem:[%s7305_s5 + $0x80] sm:$0xff] }
 0x4b2   :  { %3207 = vmatpush.bf16.msra.mxu3 %v4573_v14  ;;  %3237 = vmatpush.bf16.msra.mxu0 %v4579_v10 }
 0x4b6   :  { %3208 = vmatpush.bf16.msra.mxu3 %v4572_v59  ;;  %3286 = vmatpush.bf16.msrb.mxu0 %v4602_v11 }
 0x4ba   :  { %3209 = vmatpush.bf16.msra.mxu3 %v4571_v1  ;;  %3287 = vmatpush.bf16.msrb.mxu0 %v4601_v19 }
 0x4be   :  { %3288 = vmatpush.bf16.msrb.mxu0 %v4600_v23 }
 0x4c2   :  { %3289 = vmatpush.bf16.msrb.mxu0 %v4599_v45 }
 0x4c6   :  { %3290 = vmatpush.bf16.msrb.mxu0 %v4598_v63 }
 0x4ca   :  { %3291 = vmatpush.bf16.msrb.mxu0 %v4597_v44 }
 0x4cb   :  { %v2737_v2 = vpop.permute.xlu2 %2736 }
 0x4ce   :  { %3292 = vmatpush.bf16.msrb.mxu0 %v4596_v5 }
 0x4d2   :  { %3293 = vmatpush.bf16.msrb.mxu0 %v4595_v60 }
 0x4db   :  { %v2741_v8 = vpop.permute.xlu2 %2740 }
 0x4e0   :  { %v2756_v62 = vpop.permute.xlu0 %2755 }
 0x4e3   :  { %v7103_v49 = vpop.f32.mrf.mxu1  ;;  %v2735_v21 = vpop.permute.xlu1 %2734 }
 0x4e4   :  { %v2751_v3 = vsel %vm2750_vm3, %v2735_v21, %v2737_v2  ;;  %v2804_v25 = vsel %vm2750_vm3, %v6926_v22, %v2735_v21  ;;  %v4587_v22 = vld [vmem:[%s7305_s5 + $0xc0] sm:$0xff]  ;;  %v2745_v55 = vpop.permute.xlu2 %2744  ;;  %v3349_v2 = vunpack.c.l.b16 %v3331_v16  ;;  %v4605_v21 = vld [vmem:[%s7307_s7 + $0x10] sm:$0xff] }
 0x4e5   :  { %v2820_v24 = vsel %vm899_vm15, %v2751_v3, %v2756_v62  ;;  %3210 = vmatmul.bf16.vlgmr.msra.gmra.mxu3 %v2804_v25  ;;  %3265 = vmatpush.bf16.msrb.mxu2 %v4587_v22  ;;  %v4604_v22 = vld [vmem:[%s7307_s7 + $0x8] sm:$0xff] }
 0x4e6   :  { %3238 = vmatmul.bf16.vlgmr.msra.gmra.mxu0 %v2820_v24  ;;  %v3353_v63 = vpack.c.b16 %v3349_v2, %v3349_v2 }
 0x4e8   :  { %v2760_v50 = vpop.permute.xlu0 %2759  ;;  %v3371_v36 = vsel %vm785_vm13, %v3353_v63, 0 }
 0x4e9   :  { %3377 = vmatpush.bf16.msrb.mxu3 %v3371_v36 }
 0x4eb   :  { %v7121_v6 = vpop.f32.mrf.mxu1 }
 0x4ec   :  { %v2749_v28 = vpop.permute.xlu2 %2748 }
 0x4ed   :  { %3378 = vmatpush.bf16.msrb.mxu3 %v4605_v21 }
 0x4f1   :  { %3379 = vmatpush.bf16.msrb.mxu3 %v4604_v22 }
 0x4f3   :  { %v7126_v46 = vpop.f32.mrf.mxu1  ;;  %v2739_v7 = vpop.permute.xlu1 %2738 }
 0x4f4   :  { %v2752_v13 = vsel %vm2750_vm3, %v2739_v7, %v2741_v8  ;;  %v2808_v42 = vsel %vm2750_vm3, %v6940_v57, %v2739_v7  ;;  %v2778_v38 = vpop.permute.xlu2 %2777 }
 0x4f5   :  { %3215 = vmatmul.bf16.gmra.mxu3 %v2808_v42  ;;  %v2824_v53 = vsel %vm899_vm15, %v2752_v13, %v2760_v50 }
 0x4f6   :  { %v2764_v58 = vpop.permute.xlu0 %2763  ;;  %3243 = vmatmul.bf16.gmra.mxu0 %v2824_v53 }
 0x4fb   :  { %v7132_v47 = vpop.f32.mrf.mxu1  ;;  %v2743_v61 = vpop.permute.xlu1 %2742 }
 0x4fc   :  { %v2753_v4 = vsel %vm2750_vm3, %v2743_v61, %v2745_v55  ;;  %v2812_v39 = vsel %vm2750_vm3, %v6968_v33, %v2743_v61  ;;  %v2782_v18 = vpop.permute.xlu2 %2781 }
 0x4fd   :  { %v2828_v57 = vsel %vm899_vm15, %v2753_v4, %v2764_v58 }
 0x4fe   :  { %v2768_v9 = vpop.permute.xlu0 %2767 }
 0x503   :  { %v7135_v15 = vpop.f32.mrf.mxu1  ;;  %v2747_v27 = vpop.permute.xlu1 %2746 }
 0x504   :  { %v2754_v33 = vsel %vm2750_vm3, %v2747_v27, %v2749_v28  ;;  %v2816_v26 = vsel %vm2750_vm3, %v6975_v52, %v2747_v27  ;;  %v2786_v59 = vpop.permute.xlu2 %2785 }
 0x505   :  { %3220 = vmatmul.bf16.gmra.mxu3 %v2812_v39  ;;  %v2832_v32 = vsel %vm899_vm15, %v2754_v33, %v2768_v9 }
 0x506   :  { %v2780_v35 = vpop.permute.xlu0 %2779  ;;  %3248 = vmatmul.bf16.gmra.mxu0 %v2828_v57 }
 0x507   :  { %v2793_v12 = vsel %vm847_vm14, %v2778_v38, %v2780_v35 }
 0x50b   :  { %v7140_v43 = vpop.f32.mrf.mxu1  ;;  %v2758_v34 = vpop.permute.xlu1 %2757 }
 0x50c   :  { %v2771_v17 = vsel %vm899_vm15, %v2756_v62, %v2758_v34  ;;  %v2790_v0 = vpop.permute.xlu2 %2789  ;;  %v7170_v62 = vld [vmem:[%s7306_s6] ss:$0 sm:$0xff] }
 0x50d   :  { %v2836_v51 = vsel %vm847_vm14, %v2771_v17, %v2778_v38  ;;  %v3184_v25 = vadd.f32 %v7170_v62, %v7103_v49  ;;  %v3194_v28 = vadd.f32 %v7170_v62, %v7135_v15 }
 0x50e   :  { %v2784_v29 = vpop.permute.xlu0 %2783  ;;  %3266 = vmatmul.bf16.vlgmr.msrb.gmra.mxu2 %v2836_v51 }
 0x50f   :  { %v2794_v40 = vsel %vm847_vm14, %v2782_v18, %v2784_v29 }
 0x510   :  { %3299 = vmatmul.bf16.vlgmr.msrb.gmra.mxu1 %v2794_v40 }
 0x513   :  { %v7146_v56 = vpop.f32.mrf.mxu1  ;;  %v2762_v20 = vpop.permute.xlu1 %2761 }
 0x514   :  { %v2772_v37 = vsel %vm899_vm15, %v2760_v50, %v2762_v20  ;;  %v3189_v50 = vadd.f32 %v7170_v62, %v7126_v46  ;;  %v3199_v34 = vadd.f32 %v7170_v62, %v7146_v56  ;;  %v3191_v20 = vadd.f32 %v7170_v62, %v7132_v47 }
 0x515   :  { %3225 = vmatmul.bf16.gmra.mxu3 %v2816_v26  ;;  %v2840_v14 = vsel %vm847_vm14, %v2772_v37, %v2782_v18 }
 0x516   :  { %3253 = vmatmul.bf16.gmra.mxu0 %v2832_v32  ;;  %v2788_v41 = vpop.permute.xlu0 %2787  ;;  %v3186_v32 = vadd.f32 %v7170_v62, %v7121_v6 }
 0x517   :  { %v2795_v10 = vsel %vm847_vm14, %v2786_v59, %v2788_v41 }
 0x51b   :  { %v3200_v31 = vpop.f32.mrf.mxu1  ;;  %v2766_v52 = vpop.permute.xlu1 %2765 }
 0x51c   :  { %v2773_v1 = vsel %vm899_vm15, %v2764_v58, %v2766_v52  ;;  %v4603_v58 = vld [vmem:[%s7307_s7] sm:$0xff] }
 0x51d   :  { %v2844_v11 = vsel %vm847_vm14, %v2773_v1, %v2786_v59  ;;  %3380 = vmatpush.bf16.msrb.mxu3 %v4603_v58  ;;  %v4828_v59 = vmov 0   ;;  %v3407_v58 = vld [vmem:[%s7309_s9 + $0x30] sm:$0xff] }
 0x51e   :  { %3271 = vmatmul.bf16.gmra.mxu2 %v2840_v14  ;;  %v2792_v54 = vpop.permute.xlu0 %2791  ;;  %4795 = vset.pattern.permute.xlu1 %v4828_v59 }
 0x51f   :  { %v2796_v19 = vsel %vm847_vm14, %v2790_v0, %v2792_v54  ;;  %4797 = vset.pattern.permute.xlu0 %v4828_v59  ;;  %4796 = vset.pattern.permute.xlu2 %v4828_v59 }
 0x520   :  { %3304 = vmatmul.bf16.gmra.mxu1 %v2795_v10  ;;  %v3401_v10 = vld [vmem:[%s7309_s9] sm:$0xff] }
 0x521   :  { %3410 = vperm.xlu1 %4795, %v3401_v10  }
 0x523   :  { %v2770_v48 = vpop.permute.xlu1 %2769 }
 0x524   :  { %v2774_v23 = vsel %vm899_vm15, %v2768_v9, %v2770_v48 }
 0x525   :  { %v2848_v45 = vsel %vm847_vm14, %v2774_v23, %v2790_v0 }
 0x526   :  { %3294 = vmatmul.bf16.vlgmr.msrb.gmra.mxu0 %v2793_v12 }
 0x52e   :  { %3276 = vmatmul.bf16.gmra.mxu2 %v2844_v11 }
 0x530   :  { %3309 = vmatmul.bf16.gmra.mxu1 %v2796_v19 }
 0x53e   :  { %3281 = vmatmul.bf16.gmra.mxu2 %v2848_v45 }
 0x563   :  { %v3239_v3 = vpop.f32.mrf.mxu0 }
 0x568   :  { %v3211_v24 = vpop.f32.mrf.mxu3 }
 0x569   :  { %v3212_v44 = vadd.f32 %v3211_v24, %v3184_v25  ;;  %v3196_v24 = vadd.f32 %v7170_v62, %v7140_v43 }
 0x56b   :  { %v3241_v8 = vpop.f32.mrf.mxu0  ;;  %v3240_v30 = vadd.f32 %v3239_v3, %v3212_v44  ;;  %v3403_v44 = vld [vmem:[%s7309_s9 + $0x10] sm:$0xff] }
 0x56c   :  { %3420 = vperm.xlu0 %4797, %v3403_v44  }
 0x570   :  { %v3213_v5 = vpop.f32.mrf.mxu3 }
 0x571   :  { %v3214_v31 = vadd.f32 %v3213_v5, %v3186_v32 }
 0x573   :  { %v3244_v60 = vpop.f32.mrf.mxu0  ;;  %v3242_v52 = vadd.f32 %v3241_v8, %v3214_v31  ;;  %v3405_v8 = vld [vmem:[%s7309_s9 + $0x20] sm:$0xff] }
 0x574   :  { %3430 = vperm.xlu1 %4795, %v3405_v8  }
 0x578   :  { %v3216_v55 = vpop.f32.mrf.mxu3 }
 0x579   :  { %v3217_v7 = vadd.f32 %v3216_v55, %v3189_v50 }
 0x57b   :  { %v3246_v13 = vpop.f32.mrf.mxu0  ;;  %v3245_v42 = vadd.f32 %v3244_v60, %v3217_v7 }
 0x57c   :  { %3440 = vperm.xlu1 %4795, %v3407_v58  }
 0x580   :  { %v3218_v53 = vpop.f32.mrf.mxu3 }
 0x581   :  { %v3219_v41 = vadd.f32 %v3218_v53, %v3191_v20 }
 0x583   :  { %v3249_v49 = vpop.f32.mrf.mxu0  ;;  %v3247_v6 = vadd.f32 %v3246_v13, %v3219_v41 }
 0x588   :  { %v3221_v61 = vpop.f32.mrf.mxu3 }
 0x589   :  { %v3222_v9 = vadd.f32 %v3221_v61, %v3194_v28  ;;  %v3406_v28 = vld [vmem:[%s7309_s9 + $0x28] sm:$0xff] }
 0x58b   :  { %v3251_v4 = vpop.f32.mrf.mxu0  ;;  %v3250_v27 = vadd.f32 %v3249_v49, %v3222_v9  ;;  %v3402_v49 = vld [vmem:[%s7309_s9 + $0x8] sm:$0xff]  ;;  %v3404_v9 = vld [vmem:[%s7309_s9 + $0x18] sm:$0xff] }
 0x58c   :  { %3415 = vperm.xlu2 %4796, %v3402_v49  }
 0x58d   :  { %v3300_v38 = vpop.f32.mrf.mxu1 }
 0x590   :  { %v3223_v46 = vpop.f32.mrf.mxu3 }
 0x591   :  { %v3267_v39 = vpop.f32.mrf.mxu2 }
 0x592   :  { %v3268_v12 = vadd.f32 %v3267_v39, %v3240_v30  ;;  %v3224_v30 = vadd.f32 %v3223_v46, %v3196_v24 }
 0x593   :  { %v3254_v57 = vpop.f32.mrf.mxu0 }
 0x594   :  { %v3252_v60 = vadd.f32 %v3251_v4, %v3224_v30  ;;  %3435 = vperm.xlu2 %4796, %v3406_v28  }
 0x595   :  { %v3302_v35 = vpop.f32.mrf.mxu1 }
 0x598   :  { %v3226_v17 = vpop.f32.mrf.mxu3 }
 0x599   :  { %v3227_v51 = vadd.f32 %v3226_v17, %v3199_v34  ;;  %v3269_v18 = vpop.f32.mrf.mxu2 }
 0x59a   :  { %v3270_v54 = vadd.f32 %v3269_v18, %v3242_v52 }
 0x59b   :  { %v3256_v29 = vpop.f32.mrf.mxu0  ;;  %v7186_v40 = vadd.f32 %v3254_v57, %v3227_v51  ;;  %v3411_v51 = vpop.permute.xlu1 %3410 }
 0x59c   :  { %3425 = vperm.xlu2 %4796, %v3404_v9  }
 0x59d   :  { %v3305_v15 = vpop.f32.mrf.mxu1 }
 0x5a0   :  { %v3228_v33 = vpop.f32.mrf.mxu3 }
 0x5a1   :  { %v3272_v26 = vpop.f32.mrf.mxu2 }
 0x5a2   :  { %v3273_v56 = vadd.f32 %v3272_v26, %v3245_v42 }
 0x5a3   :  { %v3295_v37 = vpop.f32.mrf.mxu0 }
 0x5a4   :  { %v3301_v47 = vadd.f32 %v3300_v38, %v3273_v56  ;;  %v3296_v11 = vadd.f32 %v3295_v37, %v3268_v12 }
 0x5a5   :  { %v3307_v14 = vpop.f32.mrf.mxu1 }
 0x5a6   :  { %v3316_v16 = vmax.f32 %v3301_v47, 0.0  ;;  %v3314_v2 = vmax.f32 %v3296_v11, 0.0 }
 0x5a9   :  { %v3274_v1 = vpop.f32.mrf.mxu2 }
 0x5aa   :  { %v3275_v0 = vadd.f32 %v3274_v1, %v3247_v6 }
 0x5ab   :  { %v3297_v19 = vpop.f32.mrf.mxu0 }
 0x5ac   :  { %v3303_v48 = vadd.f32 %v3302_v35, %v3275_v0  ;;  %v3298_v23 = vadd.f32 %v3297_v19, %v3270_v54 }
 0x5ad   :  { %v3310_v45 = vpop.f32.mrf.mxu1 }
 0x5ae   :  { %v3317_v63 = vmax.f32 %v3303_v48, 0.0  ;;  %v3315_v36 = vmax.f32 %v3298_v23, 0.0 }
 0x5b0   :  { %v3322_v21 = vpack.c.bf16 %v3317_v63, %v3316_v16  ;;  %v3321_v3 = vpack.c.bf16 %v3315_v36, %v3314_v2 }
 0x5b1   :  { %v3277_v25 = vpop.f32.mrf.mxu2 }
 0x5b2   :  { %4391 = vmatmul.msk.bf16.vlgmr.msrb.gmra.mxu3 %vm3357_vm4, %v3321_v3  ;;  %v3278_v22 = vadd.f32 %v3277_v25, %v3250_v27 }
 0x5b4   :  { %v3306_v55 = vadd.f32 %v3305_v15, %v3278_v22  ;;  %v4799_v15 = vld [vmem:[%s7308_s8] ss:$0 sm:$0xff] }
 0x5b5   :  { %v3312_v5 = vpop.f32.mrf.mxu1 }
 0x5b6   :  { %v3318_v62 = vmax.f32 %v3306_v55, 0.0 }
 0x5b9   :  { %v3279_v50 = vpop.f32.mrf.mxu2 }
 0x5ba   :  { %v3280_v7 = vadd.f32 %v3279_v50, %v3252_v60 }
 0x5bc   :  { %v3308_v43 = vadd.f32 %v3307_v14, %v3280_v7 }
 0x5be   :  { %v3319_v13 = vmax.f32 %v3308_v43, 0.0 }
 0x5c0   :  { %v3323_v42 = vpack.c.bf16 %v3319_v13, %v3318_v62 }
 0x5c1   :  { %v3282_v53 = vpop.f32.mrf.mxu2 }
 0x5c2   :  { %4392 = vmatmul.msk.bf16.gmra.mxu3 %vm3357_vm4, %v3322_v21  ;;  %v3283_v4 = vadd.f32 %v3282_v53, %v7186_v40 }
 0x5c4   :  { %v3311_v27 = vadd.f32 %v3310_v45, %v3283_v4 }
 0x5c6   :  { %v3320_v38 = vmax.f32 %v3311_v27, 0.0 }
 0x5c8   :  { %v3324_v46 = vpack.c.bf16 %v3320_v38, %v3320_v38 }
 0x5c9   :  { %v3284_v61 = vpop.f32.mrf.mxu2 }
 0x5d2   :  { %4393 = vmatmul.msk.bf16.gmra.mxu3 %vm3357_vm4, %v3323_v42 }
 0x5de   :  { %v3421_v14 = vpop.permute.xlu0 %3420 }
 0x5e2   :  { %4394 = vmatmul.msk.bf16.gmra.mxu3 %vm3357_vm4, %v3324_v46 }
 0x5e6   :  { %v3416_v17 = vpop.permute.xlu2 %3415  ;;  %v3431_v33 = vpop.permute.xlu1 %3430 }
 0x5ee   :  { %v3436_v29 = vpop.permute.xlu2 %3435  ;;  %v3441_v11 = vpop.permute.xlu1 %3440 }
 0x5f6   :  { %v3426_v12 = vpop.permute.xlu2 %3425 }
 0x635   :  { %v3382_v39 = vpop.f32.mrf.mxu3 }
 0x636   :  { %v3383_v37 = vadd.f32 %v4799_v15, %v3382_v39 }
 0x638   :  { %v7229_v6 = vadd.f32 %v3411_v51, %v3383_v37 }
 0x63a   :  { %v3451_v16 = vsel %vm3450_vm5, %v7229_v6, -inf }
 0x63d   :  { %v3384_v57 = vpop.f32.mrf.mxu3 }
 0x63e   :  { %v3385_v32 = vadd.f32 %v4799_v15, %v3384_v57 }
 0x640   :  { %v7225_v56 = vadd.f32 %v3416_v17, %v3385_v32 }
 0x642   :  { %v3452_v0 = vsel %vm3450_vm5, %v7225_v56, -inf }
 0x645   :  { %v3387_v35 = vpop.f32.mrf.mxu3 }
 0x646   :  { %v3388_v31 = vadd.f32 %v4799_v15, %v3387_v35 }
 0x648   :  { %v7231_v1 = vadd.f32 %v3421_v14, %v3388_v31 }
 0x64a   :  { %v3453_v2 = vsel %vm3450_vm5, %v7231_v1, -inf }
 0x64d   :  { %v3389_v34 = vpop.f32.mrf.mxu3 }
 0x64e   :  { %v3390_v59 = vadd.f32 %v4799_v15, %v3389_v34 }
 0x650   :  { %v7237_v19 = vadd.f32 %v3426_v12, %v3390_v59 }
 0x652   :  { %v3454_v3 = vsel %vm3450_vm5, %v7237_v19, -inf }
 0x655   :  { %v3392_v18 = vpop.f32.mrf.mxu3 }
 0x656   :  { %v3393_v20 = vadd.f32 %v4799_v15, %v3392_v18 }
 0x658   :  { %v7227_v10 = vadd.f32 %v3431_v33, %v3393_v20 }
 0x65a   :  { %v3455_v48 = vsel %vm3450_vm5, %v7227_v10, -inf }
 0x65b   :  { %v3456_v36 = vmax.f32 %v3451_v16, %v3455_v48 }
 0x65d   :  { %v3394_v26 = vpop.f32.mrf.mxu3 }
 0x65e   :  { %v3395_v40 = vadd.f32 %v4799_v15, %v3394_v26 }
 0x660   :  { %v7223_v41 = vadd.f32 %v3436_v29, %v3395_v40 }
 0x662   :  { %v3457_v54 = vsel %vm3450_vm5, %v7223_v41, -inf }
 0x663   :  { %v3458_v45 = vmax.f32 %v3452_v0, %v3457_v54 }
 0x665   :  { %v3397_v52 = vpop.f32.mrf.mxu3  ;;  %v3461_v25 = vmax.f32 %v3456_v36, %v3458_v45 }
 0x666   :  { %v3398_v47 = vadd.f32 %v4799_v15, %v3397_v52 }
 0x668   :  { %v7241_v23 = vadd.f32 %v3441_v11, %v3398_v47 }
 0x66a   :  { %v3459_v63 = vsel %vm3450_vm5, %v7241_v23, -inf }
 0x66b   :  { %v3460_v21 = vmax.f32 %v3453_v2, %v3459_v63 }
 0x66d   :  { %v3462_v24 = vmax.f32 %v3460_v21, %v3454_v3  ;;  %v3399_v44 = vpop.f32.mrf.mxu3 }
 0x66f   :  { %v3463_v8 = vmax.f32 %v3461_v25, %v3462_v24 }
 0x671   :  { %v3464_v30 = vrot.slane %v3463_v8, 4 }
 0x673   :  { %v3465_v5 = vmax.f32 %v3463_v8, %v3464_v30 }
 0x675   :  { %v3466_v22 = vrot.slane %v3465_v5, 2 }
 0x677   :  { %v3467_v60 = vmax.f32 %v3465_v5, %v3466_v22 }
 0x679   :  { %v3468_v50 = vrot.slane %v3467_v60, 1 }
 0x67b   :  { %v3469_v55 = vmax.f32 %v3467_v60, %v3468_v50 }
 0x67d   :  { %v3470_v7 = vsub.f32 %v7229_v6, %v3469_v55  ;;  %v3471_v43 = vsub.f32 %v7225_v56, %v3469_v55  ;;  %v3472_v62 = vsub.f32 %v7231_v1, %v3469_v55  ;;  %v3473_v13 = vsub.f32 %v7237_v19, %v3469_v55 }
 0x67e   :  { %v3474_v42 = vsub.f32 %v7227_v10, %v3469_v55  ;;  %v3475_v28 = vsub.f32 %v7223_v41, %v3469_v55  ;;  %v3476_v9 = vsub.f32 %v7241_v23, %v3469_v55 }
 0x67f   :  { %v3477_v53 = vmul.f32 1.442695, %v3470_v7  ;;  %v3479_v49 = vmul.f32 1.442695, %v3471_v43  ;;  %v3481_v58 = vmul.f32 1.442695, %v3472_v62 }
 0x680   :  { %v3483_v61 = vmul.f32 1.442695, %v3473_v13  ;;  %v3485_v4 = vmul.f32 1.442695, %v3474_v42  ;;  %v3487_v27 = vmul.f32 1.442695, %v3475_v28 }
 0x681   :  { %4800 = vpow2.f32 %v3477_v53  ;;  %v3489_v38 = vmul.f32 1.442695, %v3476_v9 }
 0x682   :  { %4802 = vpow2.f32 %v3479_v49 }
 0x683   :  { %4804 = vpow2.f32 %v3481_v58 }
 0x684   :  { %4806 = vpow2.f32 %v3483_v61 }
 0x685   :  { %4808 = vpow2.f32 %v3485_v4 }
 0x686   :  { %4810 = vpow2.f32 %v3487_v27 }
 0x687   :  { %v4801_v46 = vpop.eup %4800  ;;  %4812 = vpow2.f32 %v3489_v38 }
 0x688   :  { %v4803_v39 = vpop.eup %4802  ;;  %v3491_v57 = vsel %vm3450_vm5, %v4801_v46, 0.0 }
 0x689   :  { %v4805_v35 = vpop.eup %4804  ;;  %v3492_v34 = vsel %vm3450_vm5, %v4803_v39, 0.0 }
 0x68a   :  { %v4807_v17 = vpop.eup %4806  ;;  %v3493_v51 = vadd.f32 %v3492_v34, %v3491_v57  ;;  %v3494_v18 = vsel %vm3450_vm5, %v4805_v35, 0.0 }
 0x68b   :  { %v4809_v29 = vpop.eup %4808  ;;  %v3496_v33 = vsel %vm3450_vm5, %v4807_v17, 0.0 }
 0x68c   :  { %v3495_v15 = vadd.f32 %v3494_v18, %v3493_v51  ;;  %v4811_v26 = vpop.eup %4810  ;;  %v3498_v32 = vsel %vm3450_vm5, %v4809_v29, 0.0 }
 0x68d   :  { %v4813_v20 = vpop.eup %4812  ;;  %v3500_v31 = vsel %vm3450_vm5, %v4811_v26, 0.0 }
 0x68e   :  { %v3497_v40 = vadd.f32 %v3496_v33, %v3495_v15  ;;  %v3502_v59 = vsel %vm3450_vm5, %v4813_v20, 0.0 }
 0x690   :  { %v3499_v37 = vadd.f32 %v3498_v32, %v3497_v40 }
 0x692   :  { %v3501_v14 = vadd.f32 %v3500_v31, %v3499_v37 }
 0x694   :  { %v3503_v12 = vadd.f32 %v3502_v59, %v3501_v14 }
 0x696   :  { %v3504_v52 = vrot.slane %v3503_v12, 4 }
 0x698   :  { %v3505_v54 = vadd.f32 %v3504_v52, %v3503_v12 }
 0x69a   :  { %v3506_v47 = vrot.slane %v3505_v54, 2 }
 0x69c   :  { %v3507_v11 = vadd.f32 %v3506_v47, %v3505_v54 }
 0x69e   :  { %v3508_v0 = vrot.slane %v3507_v11, 1 }
 0x6a0   :  { %v3509_v48 = vadd.f32 %v3508_v0, %v3507_v11 }
 0x6a2   :  { %4814 = vlog2.f32 %v3509_v48 }
 0x6a8   :  { %v4815_v45 = vpop.eup %4814 }
 0x6a9   :  { %v3511_v16 = vmul.f32 0.6931472, %v4815_v45 }
 0x6ab   :  { %v3512_v2 = vadd.f32 %v3511_v16, %v3469_v55 }
 0x6ad   :  { %v3513_v63 = vsub.f32 %v7229_v6, %v3512_v2  ;;  %v3514_v36 = vsub.f32 %v7225_v56, %v3512_v2  ;;  %v3515_v21 = vsub.f32 %v7231_v1, %v3512_v2  ;;  %v3516_v3 = vsub.f32 %v7237_v19, %v3512_v2 }
 0x6ae   :  { %v3517_v25 = vsub.f32 %v7227_v10, %v3512_v2  ;;  %v3518_v24 = vsub.f32 %v7223_v41, %v3512_v2  ;;  %v3519_v56 = vsub.f32 %v7241_v23, %v3512_v2 }
 0x6af   :  { %3520 = vst.msk [vmem:[%s7310_s10] sm:$0xff] %vm3450_vm5, %v3513_v63 }
 0x6b0   :  { %3521 = vst.msk [vmem:[%s7310_s10 + $0x8] sm:$0xff] %vm3450_vm5, %v3514_v36 }
 0x6b1   :  { %3522 = vst.msk [vmem:[%s7310_s10 + $0x10] sm:$0xff] %vm3450_vm5, %v3515_v21 }
 0x6b2   :  { %3523 = vst.msk [vmem:[%s7310_s10 + $0x18] sm:$0xff] %vm3450_vm5, %v3516_v3 }
 0x6b3   :  { %3524 = vst.msk [vmem:[%s7310_s10 + $0x20] sm:$0xff] %vm3450_vm5, %v3517_v25 }
 0x6b4   :  { %3525 = vst.msk [vmem:[%s7310_s10 + $0x28] sm:$0xff] %vm3450_vm5, %v3518_v24 }
 0x6b5   :  { %3526 = vst.msk [vmem:[%s7310_s10 + $0x30] sm:$0xff] %vm3450_vm5, %v3519_v56 }

</bundles_post_ra>
